<compile_context>
chip_gen: v6e
topology: v6e:2x2x1
jax: 0.10.0
libtpu: 0.0.40
codegen_flags: <defaults>
</compile_context>

<pallas_src>
import jax
import jax.numpy as jnp
from jax.experimental import pallas as pl
from jax.experimental.pallas import tpu as pltpu


# ----------------------------------------------------------------------------
# In-kernel average pooling (window = stride, non-overlapping), matmul-free.
# ----------------------------------------------------------------------------
def _avg_pool(v2d, scr_h, scr_w, H, W, C, stride):
    """Average-pool a flattened (H*W, C) f32 value.  Returns (Ho*Wo, C) f32.

    Two small VMEM scratch buffers let every access be a plain static slice:
      scr_h : (Ho, stride*W, C)  -- groups the H-window onto the sublane axis
      scr_w : (Ho*Wo, stride, C) -- groups the W-window onto a tiny sublane axis
    """
    Ho, Wo = H // stride, W // stride
    # ---- pool along H ----
    scr_h[...] = v2d.reshape(Ho, stride * W, C)
    hsum = scr_h[:, 0:W, :]
    for dy in range(1, stride):
        hsum = hsum + scr_h[:, dy * W:(dy + 1) * W, :]
    # ---- pool along W ----
    scr_w[...] = hsum.reshape(Ho * Wo, stride, C)
    acc = scr_w[:, 0:1, :].reshape(Ho * Wo, C)
    for dx in range(1, stride):
        acc = acc + scr_w[:, dx:dx + 1, :].reshape(Ho * Wo, C)
    return acc * (1.0 / float(stride * stride))


# ----------------------------------------------------------------------------
# Kernel factory: one batch element per grid step; specialized at trace time
# on (stride, has_downsample).
# ----------------------------------------------------------------------------
def make_bottleneck_kernel(H, W, Cin, C, C4, stride, has_downsample):
    Ho, Wo = H // stride, W // stride
    f32 = jnp.float32
    bf16 = jnp.bfloat16

    def kernel(*refs):
        it = iter(refs)
        x_ref = next(it)
        w1_ref = next(it); b1_ref = next(it)
        w2_ref = next(it); b2_ref = next(it)
        w3_ref = next(it); b3_ref = next(it)
        if has_downsample:
            wd_ref = next(it); bd_ref = next(it)
        o_ref = next(it)
        pad_ref = next(it)
        if stride > 1:
            ph_ref = next(it); pw_ref = next(it)
            qh_ref = next(it); qw_ref = next(it)

        x2d = x_ref[0].reshape(H * W, Cin)               # bf16, (H*W, Cin)

        # ---- conv1 (1x1, BN scale folded) + bias + relu ----
        h1 = jnp.dot(x2d, w1_ref[...], preferred_element_type=f32)
        h1 = jnp.maximum(h1 + b1_ref[...], 0.0)

        # ---- conv2 (3x3, pad=1, BN scale folded) + bias + relu ----
        # Zero border rewritten every step (cheap strips only); interior is
        # fully overwritten, so no cross-iteration scratch dependence.
        zrow = jnp.zeros((1, W + 2, C), pad_ref.dtype)
        zcol = jnp.zeros((H, 1, C), pad_ref.dtype)
        pad_ref[0:1, :, :] = zrow
        pad_ref[H + 1:H + 2, :, :] = zrow
        pad_ref[1:H + 1, 0:1, :] = zcol
        pad_ref[1:H + 1, W + 1:W + 2, :] = zcol
        pad_ref[1:H + 1, 1:W + 1, :] = h1.reshape(H, W, C)

        acc = None
        for k in range(9):
            dy, dx = k // 3, k % 3
            tap = pad_ref[dy:dy + H, dx:dx + W, :].reshape(H * W, C).astype(bf16)
            term = jnp.dot(tap, w2_ref[k], preferred_element_type=f32)
            acc = term if acc is None else acc + term
        h2 = jnp.maximum(acc + b2_ref[...], 0.0)          # (H*W, C) f32

        # ---- avg-pool(stride) ----
        if stride > 1:
            pooled = _avg_pool(h2, ph_ref, pw_ref, H, W, C, stride)
        else:
            pooled = h2                                   # (Ho*Wo, C)

        # ---- conv3 (1x1, BN scale folded) + bias ----
        out3 = jnp.dot(pooled.astype(bf16), w3_ref[...],
                       preferred_element_type=f32) + b3_ref[...]

        # ---- identity / downsample branch ----
        if has_downsample:
            if stride > 1:
                xp = _avg_pool(x2d.astype(f32), qh_ref, qw_ref, H, W, Cin, stride)
            else:
                xp = x2d.astype(f32)
            ident = jnp.dot(xp.astype(bf16), wd_ref[...],
                            preferred_element_type=f32) + bd_ref[...]
        else:
            ident = x2d.astype(f32)                       # Cin == C4, stride == 1

        out = jnp.maximum(out3 + ident, 0.0)
        o_ref[0] = out.astype(o_ref.dtype).reshape(Ho, Wo, C4)

    return kernel


# ----------------------------------------------------------------------------
# Parameter construction: BN folded, scales baked into bf16 conv weights.
# ----------------------------------------------------------------------------
def init_params(key, inplanes, planes, stride, eps=1e-5):
    C = planes
    C4 = planes * 4
    ks = jax.random.split(key, 8)

    def bn(k, ch):
        k1, k2, k3, k4 = jax.random.split(k, 4)
        gamma = jax.random.uniform(k1, (ch,), minval=0.5, maxval=1.5)
        beta = jax.random.normal(k2, (ch,)) * 0.1
        mean = jax.random.normal(k3, (ch,)) * 0.1
        var = jax.random.uniform(k4, (ch,), minval=0.5, maxval=1.5)
        scale = gamma / jnp.sqrt(var + eps)
        bias = beta - mean * scale
        return scale.astype(jnp.float32), bias.astype(jnp.float32)

    w1 = jax.random.normal(ks[0], (inplanes, C)) * 0.1
    s1, b1 = bn(ks[1], C)
    w2 = jax.random.normal(ks[2], (9, C, C)) * 0.1
    s2, b2 = bn(ks[3], C)
    w3 = jax.random.normal(ks[4], (C, C4)) * 0.1
    s3, b3 = bn(ks[5], C4)

    p = {
        "w1": (w1 * s1[None, :]).astype(jnp.bfloat16),
        "b1": b1.reshape(1, C),
        "w2": (w2 * s2[None, None, :]).astype(jnp.bfloat16),
        "b2": b2.reshape(1, C),
        "w3": (w3 * s3[None, :]).astype(jnp.bfloat16),
        "b3": b3.reshape(1, C4),
    }
    if stride > 1 or inplanes != C4:
        wd = jax.random.normal(ks[6], (inplanes, C4)) * 0.1
        sd, bd = bn(ks[7], C4)
        p["wd"] = (wd * sd[None, :]).astype(jnp.bfloat16)
        p["bd"] = bd.reshape(1, C4)
    return p


# ----------------------------------------------------------------------------
# Wrapper: layout plumbing + pallas_call.
# ----------------------------------------------------------------------------
def bottleneck_pallas(x_nchw, params, stride):
    N, Cin, H, W = x_nchw.shape
    C = params["w1"].shape[1]
    C4 = params["w3"].shape[1]
    has_downsample = "wd" in params
    Ho, Wo = H // stride, W // stride

    x = jnp.transpose(x_nchw, (0, 2, 3, 1)).astype(jnp.bfloat16)   # NCHW -> NHWC

    args = [x, params["w1"], params["b1"], params["w2"], params["b2"],
            params["w3"], params["b3"]]
    if has_downsample:
        args += [params["wd"], params["bd"]]

    def full_spec(a):
        return pl.BlockSpec(a.shape, lambda n, _nd=a.ndim: (0,) * _nd)

    in_specs = [pl.BlockSpec((1, H, W, Cin), lambda n: (n, 0, 0, 0))]
    in_specs += [full_spec(a) for a in args[1:]]

    scratch = [pltpu.VMEM((H + 2, W + 2, C), jnp.float32)]          # conv2 pad
    if stride > 1:
        scratch += [
            pltpu.VMEM((Ho, stride * W, C), jnp.float32),           # h2 H-pool
            pltpu.VMEM((Ho * Wo, stride, C), jnp.float32),          # h2 W-pool
            pltpu.VMEM((Ho, stride * W, Cin), jnp.float32),         # x  H-pool
            pltpu.VMEM((Ho * Wo, stride, Cin), jnp.float32),        # x  W-pool
        ]

    kernel = make_bottleneck_kernel(H, W, Cin, C, C4, stride, has_downsample)

    grid_spec = pltpu.PrefetchScalarGridSpec(
        num_scalar_prefetch=0,
        grid=(N,),
        in_specs=in_specs,
        out_specs=pl.BlockSpec((1, Ho, Wo, C4), lambda n: (n, 0, 0, 0)),
        scratch_shapes=scratch,
    )

    out_nhwc = pl.pallas_call(
        kernel,
        out_shape=jax.ShapeDtypeStruct((N, Ho, Wo, C4), jnp.float32),
        grid_spec=grid_spec,
        compiler_params=pltpu.CompilerParams(
            dimension_semantics=("parallel",),
            vmem_limit_bytes=32 * 1024 * 1024,
        ),
    )(*args)

    return jnp.transpose(out_nhwc, (0, 3, 1, 2))                    # NHWC -> NCHW


# ----------------------------------------------------------------------------
# Pure-JAX f32 reference (same folded parameters) for correctness checking.
# ----------------------------------------------------------------------------
def bottleneck_ref(x_nchw, params, stride):
    x = jnp.transpose(x_nchw, (0, 2, 3, 1)).astype(jnp.float32)
    N, H, W, Cin = x.shape
    w1 = params["w1"].astype(jnp.float32); b1 = params["b1"]
    w2 = params["w2"].astype(jnp.float32); b2 = params["b2"]
    w3 = params["w3"].astype(jnp.float32); b3 = params["b3"]
    C = w1.shape[1]

    def pool(t):
        if stride == 1:
            return t
        n, h, w, c = t.shape
        return t.reshape(n, h // stride, stride, w // stride, stride, c).mean(axis=(2, 4))

    h1 = jnp.maximum(jnp.einsum('nhwc,cd->nhwd', x, w1) + b1, 0.0)
    hp = jnp.pad(h1, ((0, 0), (1, 1), (1, 1), (0, 0)))
    acc = jnp.zeros((N, H, W, C), jnp.float32)
    for k in range(9):
        dy, dx = k // 3, k % 3
        acc = acc + jnp.einsum('nhwc,cd->nhwd', hp[:, dy:dy + H, dx:dx + W, :], w2[k])
    h2 = jnp.maximum(acc + b2, 0.0)
    out3 = jnp.einsum('nhwc,cd->nhwd', pool(h2), w3) + b3
    if "wd" in params:
        ident = jnp.einsum('nhwc,cd->nhwd', pool(x),
                           params["wd"].astype(jnp.float32)) + params["bd"]
    else:
        ident = x
    out = jnp.maximum(out3 + ident, 0.0)
    return jnp.transpose(out, (0, 3, 1, 2))


if __name__ == "__main__":
    key = jax.random.PRNGKey(0)
    N, H, W = 2, 16, 16

    configs = [
        (4, 4, 2),    # downsample branch active (stride 2)
        (16, 4, 1),   # pure identity branch (stride 1, inplanes == planes*4)
    ]
    for (inplanes, planes, stride) in configs:
        kx, kp, key = jax.random.split(key, 3)
        x = jax.random.normal(kx, (N, inplanes, H, W), dtype=jnp.float32)
        params = init_params(kp, inplanes, planes, stride)

        out = jax.block_until_ready(bottleneck_pallas(x, params, stride))
        ref = bottleneck_ref(x, params, stride)

        assert out.shape == ref.shape == (N, planes * 4, H // stride, W // stride)
        err = float(jnp.max(jnp.abs(out - ref)))
        tol = 1e-2 + 3e-2 * float(jnp.max(jnp.abs(ref)))   # bf16 matmul tolerance
        if err > tol:
            raise SystemExit(
                f"mismatch (inplanes={inplanes}, planes={planes}, stride={stride}): "
                f"max abs err {err} > tol {tol}")

    print("KERNEL_OK")
</pallas_src>

<mosaic_0001>
module attributes {stable_mosaic.version = 11 : i64} {
  func.func @kernel(%arg0: i32, %arg1: memref<1x16x16x4xbf16, #tpu.memory_space<vmem>>, %arg2: memref<4x4xbf16, #tpu.memory_space<vmem>>, %arg3: memref<1x4xf32, #tpu.memory_space<vmem>>, %arg4: memref<9x4x4xbf16, #tpu.memory_space<vmem>>, %arg5: memref<1x4xf32, #tpu.memory_space<vmem>>, %arg6: memref<4x16xbf16, #tpu.memory_space<vmem>>, %arg7: memref<1x16xf32, #tpu.memory_space<vmem>>, %arg8: memref<4x16xbf16, #tpu.memory_space<vmem>>, %arg9: memref<1x16xf32, #tpu.memory_space<vmem>>, %arg10: memref<1x8x8x16xf32, #tpu.memory_space<vmem>>, %arg11: memref<18x18x4xf32, #tpu.memory_space<vmem>>, %arg12: memref<8x32x4xf32, #tpu.memory_space<vmem>>, %arg13: memref<64x2x4xf32, #tpu.memory_space<vmem>>, %arg14: memref<8x32x4xf32, #tpu.memory_space<vmem>>, %arg15: memref<64x2x4xf32, #tpu.memory_space<vmem>>) attributes {dimension_semantics = [#tpu.dimension_semantics<parallel>], iteration_bounds = array<i64: 2>, scalar_prefetch = 0 : i64, scratch_operands = 5 : i64, tpu.core_type = #tpu.core_type<tc>, window_params = [{transform_indices = @transform_0, window_bounds = array<i64: 1, 16, 16, 4>}, {pipeline_mode = #tpu.pipeline_mode<synchronous>, transform_indices = @transform_1, window_bounds = array<i64: 4, 4>}, {pipeline_mode = #tpu.pipeline_mode<synchronous>, transform_indices = @transform_2, window_bounds = array<i64: 1, 4>}, {pipeline_mode = #tpu.pipeline_mode<synchronous>, transform_indices = @transform_3, window_bounds = array<i64: 9, 4, 4>}, {pipeline_mode = #tpu.pipeline_mode<synchronous>, transform_indices = @transform_4, window_bounds = array<i64: 1, 4>}, {pipeline_mode = #tpu.pipeline_mode<synchronous>, transform_indices = @transform_5, window_bounds = array<i64: 4, 16>}, {pipeline_mode = #tpu.pipeline_mode<synchronous>, transform_indices = @transform_6, window_bounds = array<i64: 1, 16>}, {pipeline_mode = #tpu.pipeline_mode<synchronous>, transform_indices = @transform_7, window_bounds = array<i64: 4, 16>}, {pipeline_mode = #tpu.pipeline_mode<synchronous>, transform_indices = @transform_8, window_bounds = array<i64: 1, 16>}, {transform_indices = @transform_9, window_bounds = array<i64: 1, 8, 8, 16>}]} {
    %c0 = arith.constant 0 : index
    %c0_0 = arith.constant 0 : index
    %c0_1 = arith.constant 0 : index
    %c0_2 = arith.constant 0 : index
    %0 = vector.load %arg1[%c0, %c0_0, %c0_1, %c0_2] : memref<1x16x16x4xbf16, #tpu.memory_space<vmem>>, vector<1x16x16x4xbf16>
    %1 = vector.shape_cast %0 : vector<1x16x16x4xbf16> to vector<16x16x4xbf16>
    %2 = vector.shape_cast %1 : vector<16x16x4xbf16> to vector<256x4xbf16>
    %c0_3 = arith.constant 0 : index
    %c0_4 = arith.constant 0 : index
    %3 = vector.load %arg2[%c0_3, %c0_4] : memref<4x4xbf16, #tpu.memory_space<vmem>>, vector<4x4xbf16>
    %cst = arith.constant dense<0.000000e+00> : vector<256x4xf32>
    %4 = tpu.matmul %2, %3, %cst {dimension_numbers = #tpu.dot_dimension_numbers<[1], [0], [0], [1], [0, 0, 1, 1], [], []>} : vector<256x4xbf16>, vector<4x4xbf16>, vector<256x4xf32> -> vector<256x4xf32>
    %c0_5 = arith.constant 0 : index
    %c0_6 = arith.constant 0 : index
    %5 = vector.load %arg3[%c0_5, %c0_6] : memref<1x4xf32, #tpu.memory_space<vmem>>, vector<1x4xf32>
    %6 = vector.broadcast %5 : vector<1x4xf32> to vector<256x4xf32>
    %7 = arith.addf %4, %6 : vector<256x4xf32>
    %cst_7 = arith.constant 0.000000e+00 : f32
    %8 = vector.broadcast %cst_7 : f32 to vector<256x4xf32>
    %9 = arith.maximumf %7, %8 : vector<256x4xf32>
    %cst_8 = arith.constant 0.000000e+00 : f32
    %10 = vector.broadcast %cst_8 : f32 to vector<1x18x4xf32>
    %cst_9 = arith.constant 0.000000e+00 : f32
    %11 = vector.broadcast %cst_9 : f32 to vector<16x1x4xf32>
    %c0_10 = arith.constant 0 : index
    %c0_11 = arith.constant 0 : index
    %c0_12 = arith.constant 0 : index
    %12 = vector.load %arg11[%c0_10, %c0_11, %c0_12] : memref<18x18x4xf32, #tpu.memory_space<vmem>>, vector<1x18x4xf32>
    tpu.vector_store %arg11[%c0_10, %c0_11, %c0_12], %10 {strides = array<i32>} : memref<18x18x4xf32, #tpu.memory_space<vmem>>, vector<1x18x4xf32>,
    %c17 = arith.constant 17 : index
    %c0_13 = arith.constant 0 : index
    %c0_14 = arith.constant 0 : index
    %13 = vector.load %arg11[%c17, %c0_13, %c0_14] : memref<18x18x4xf32, #tpu.memory_space<vmem>>, vector<1x18x4xf32>
    tpu.vector_store %arg11[%c17, %c0_13, %c0_14], %10 {strides = array<i32>} : memref<18x18x4xf32, #tpu.memory_space<vmem>>, vector<1x18x4xf32>,
    %c1 = arith.constant 1 : index
    %c0_15 = arith.constant 0 : index
    %c0_16 = arith.constant 0 : index
    %14 = vector.load %arg11[%c1, %c0_15, %c0_16] : memref<18x18x4xf32, #tpu.memory_space<vmem>>, vector<16x1x4xf32>
    tpu.vector_store %arg11[%c1, %c0_15, %c0_16], %11 {strides = array<i32>} : memref<18x18x4xf32, #tpu.memory_space<vmem>>, vector<16x1x4xf32>,
    %c1_17 = arith.constant 1 : index
    %c17_18 = arith.constant 17 : index
    %c0_19 = arith.constant 0 : index
    %15 = vector.load %arg11[%c1_17, %c17_18, %c0_19] : memref<18x18x4xf32, #tpu.memory_space<vmem>>, vector<16x1x4xf32>
    tpu.vector_store %arg11[%c1_17, %c17_18, %c0_19], %11 {strides = array<i32>} : memref<18x18x4xf32, #tpu.memory_space<vmem>>, vector<16x1x4xf32>,
    %16 = vector.shape_cast %9 : vector<256x4xf32> to vector<16x16x4xf32>
    %c1_20 = arith.constant 1 : index
    %c1_21 = arith.constant 1 : index
    %c0_22 = arith.constant 0 : index
    %17 = vector.load %arg11[%c1_20, %c1_21, %c0_22] : memref<18x18x4xf32, #tpu.memory_space<vmem>>, vector<16x16x4xf32>
    tpu.vector_store %arg11[%c1_20, %c1_21, %c0_22], %16 {strides = array<i32>} : memref<18x18x4xf32, #tpu.memory_space<vmem>>, vector<16x16x4xf32>,
    %c0_23 = arith.constant 0 : index
    %c0_24 = arith.constant 0 : index
    %c0_25 = arith.constant 0 : index
    %18 = vector.load %arg11[%c0_23, %c0_24, %c0_25] : memref<18x18x4xf32, #tpu.memory_space<vmem>>, vector<16x16x4xf32>
    %19 = vector.shape_cast %18 : vector<16x16x4xf32> to vector<256x4xf32>
    %20 = arith.truncf %19 : vector<256x4xf32> to vector<256x4xbf16>
    %c0_26 = arith.constant 0 : index
    %c0_27 = arith.constant 0 : index
    %c0_28 = arith.constant 0 : index
    %21 = vector.load %arg4[%c0_26, %c0_27, %c0_28] : memref<9x4x4xbf16, #tpu.memory_space<vmem>>, vector<1x4x4xbf16>
    %22 = vector.shape_cast %21 : vector<1x4x4xbf16> to vector<4x4xbf16>
    %cst_29 = arith.constant dense<0.000000e+00> : vector<256x4xf32>
    %23 = tpu.matmul %20, %22, %cst_29 {dimension_numbers = #tpu.dot_dimension_numbers<[1], [0], [0], [1], [0, 0, 1, 1], [], []>} : vector<256x4xbf16>, vector<4x4xbf16>, vector<256x4xf32> -> vector<256x4xf32>
    %c0_30 = arith.constant 0 : index
    %c1_31 = arith.constant 1 : index
    %c0_32 = arith.constant 0 : index
    %24 = vector.load %arg11[%c0_30, %c1_31, %c0_32] : memref<18x18x4xf32, #tpu.memory_space<vmem>>, vector<16x16x4xf32>
    %25 = vector.shape_cast %24 : vector<16x16x4xf32> to vector<256x4xf32>
    %26 = arith.truncf %25 : vector<256x4xf32> to vector<256x4xbf16>
    %c1_33 = arith.constant 1 : index
    %c0_34 = arith.constant 0 : index
    %c0_35 = arith.constant 0 : index
    %27 = vector.load %arg4[%c1_33, %c0_34, %c0_35] : memref<9x4x4xbf16, #tpu.memory_space<vmem>>, vector<1x4x4xbf16>
    %28 = vector.shape_cast %27 : vector<1x4x4xbf16> to vector<4x4xbf16>
    %cst_36 = arith.constant dense<0.000000e+00> : vector<256x4xf32>
    %29 = tpu.matmul %26, %28, %cst_36 {dimension_numbers = #tpu.dot_dimension_numbers<[1], [0], [0], [1], [0, 0, 1, 1], [], []>} : vector<256x4xbf16>, vector<4x4xbf16>, vector<256x4xf32> -> vector<256x4xf32>
    %30 = arith.addf %23, %29 : vector<256x4xf32>
    %c0_37 = arith.constant 0 : index
    %c2 = arith.constant 2 : index
    %c0_38 = arith.constant 0 : index
    %31 = vector.load %arg11[%c0_37, %c2, %c0_38] : memref<18x18x4xf32, #tpu.memory_space<vmem>>, vector<16x16x4xf32>
    %32 = vector.shape_cast %31 : vector<16x16x4xf32> to vector<256x4xf32>
    %33 = arith.truncf %32 : vector<256x4xf32> to vector<256x4xbf16>
    %c2_39 = arith.constant 2 : index
    %c0_40 = arith.constant 0 : index
    %c0_41 = arith.constant 0 : index
    %34 = vector.load %arg4[%c2_39, %c0_40, %c0_41] : memref<9x4x4xbf16, #tpu.memory_space<vmem>>, vector<1x4x4xbf16>
    %35 = vector.shape_cast %34 : vector<1x4x4xbf16> to vector<4x4xbf16>
    %cst_42 = arith.constant dense<0.000000e+00> : vector<256x4xf32>
    %36 = tpu.matmul %33, %35, %cst_42 {dimension_numbers = #tpu.dot_dimension_numbers<[1], [0], [0], [1], [0, 0, 1, 1], [], []>} : vector<256x4xbf16>, vector<4x4xbf16>, vector<256x4xf32> -> vector<256x4xf32>
    %37 = arith.addf %30, %36 : vector<256x4xf32>
    %c1_43 = arith.constant 1 : index
    %c0_44 = arith.constant 0 : index
    %c0_45 = arith.constant 0 : index
    %38 = vector.load %arg11[%c1_43, %c0_44, %c0_45] : memref<18x18x4xf32, #tpu.memory_space<vmem>>, vector<16x16x4xf32>
    %39 = vector.shape_cast %38 : vector<16x16x4xf32> to vector<256x4xf32>
    %40 = arith.truncf %39 : vector<256x4xf32> to vector<256x4xbf16>
    %c3 = arith.constant 3 : index
    %c0_46 = arith.constant 0 : index
    %c0_47 = arith.constant 0 : index
    %41 = vector.load %arg4[%c3, %c0_46, %c0_47] : memref<9x4x4xbf16, #tpu.memory_space<vmem>>, vector<1x4x4xbf16>
    %42 = vector.shape_cast %41 : vector<1x4x4xbf16> to vector<4x4xbf16>
    %cst_48 = arith.constant dense<0.000000e+00> : vector<256x4xf32>
    %43 = tpu.matmul %40, %42, %cst_48 {dimension_numbers = #tpu.dot_dimension_numbers<[1], [0], [0], [1], [0, 0, 1, 1], [], []>} : vector<256x4xbf16>, vector<4x4xbf16>, vector<256x4xf32> -> vector<256x4xf32>
    %44 = arith.addf %37, %43 : vector<256x4xf32>
    %c1_49 = arith.constant 1 : index
    %c1_50 = arith.constant 1 : index
    %c0_51 = arith.constant 0 : index
    %45 = vector.load %arg11[%c1_49, %c1_50, %c0_51] : memref<18x18x4xf32, #tpu.memory_space<vmem>>, vector<16x16x4xf32>
    %46 = vector.shape_cast %45 : vector<16x16x4xf32> to vector<256x4xf32>
    %47 = arith.truncf %46 : vector<256x4xf32> to vector<256x4xbf16>
    %c4 = arith.constant 4 : index
    %c0_52 = arith.constant 0 : index
    %c0_53 = arith.constant 0 : index
    %48 = vector.load %arg4[%c4, %c0_52, %c0_53] : memref<9x4x4xbf16, #tpu.memory_space<vmem>>, vector<1x4x4xbf16>
    %49 = vector.shape_cast %48 : vector<1x4x4xbf16> to vector<4x4xbf16>
    %cst_54 = arith.constant dense<0.000000e+00> : vector<256x4xf32>
    %50 = tpu.matmul %47, %49, %cst_54 {dimension_numbers = #tpu.dot_dimension_numbers<[1], [0], [0], [1], [0, 0, 1, 1], [], []>} : vector<256x4xbf16>, vector<4x4xbf16>, vector<256x4xf32> -> vector<256x4xf32>
    %51 = arith.addf %44, %50 : vector<256x4xf32>
    %c1_55 = arith.constant 1 : index
    %c2_56 = arith.constant 2 : index
    %c0_57 = arith.constant 0 : index
    %52 = vector.load %arg11[%c1_55, %c2_56, %c0_57] : memref<18x18x4xf32, #tpu.memory_space<vmem>>, vector<16x16x4xf32>
    %53 = vector.shape_cast %52 : vector<16x16x4xf32> to vector<256x4xf32>
    %54 = arith.truncf %53 : vector<256x4xf32> to vector<256x4xbf16>
    %c5 = arith.constant 5 : index
    %c0_58 = arith.constant 0 : index
    %c0_59 = arith.constant 0 : index
    %55 = vector.load %arg4[%c5, %c0_58, %c0_59] : memref<9x4x4xbf16, #tpu.memory_space<vmem>>, vector<1x4x4xbf16>
    %56 = vector.shape_cast %55 : vector<1x4x4xbf16> to vector<4x4xbf16>
    %cst_60 = arith.constant dense<0.000000e+00> : vector<256x4xf32>
    %57 = tpu.matmul %54, %56, %cst_60 {dimension_numbers = #tpu.dot_dimension_numbers<[1], [0], [0], [1], [0, 0, 1, 1], [], []>} : vector<256x4xbf16>, vector<4x4xbf16>, vector<256x4xf32> -> vector<256x4xf32>
    %58 = arith.addf %51, %57 : vector<256x4xf32>
    %c2_61 = arith.constant 2 : index
    %c0_62 = arith.constant 0 : index
    %c0_63 = arith.constant 0 : index
    %59 = vector.load %arg11[%c2_61, %c0_62, %c0_63] : memref<18x18x4xf32, #tpu.memory_space<vmem>>, vector<16x16x4xf32>
    %60 = vector.shape_cast %59 : vector<16x16x4xf32> to vector<256x4xf32>
    %61 = arith.truncf %60 : vector<256x4xf32> to vector<256x4xbf16>
    %c6 = arith.constant 6 : index
    %c0_64 = arith.constant 0 : index
    %c0_65 = arith.constant 0 : index
    %62 = vector.load %arg4[%c6, %c0_64, %c0_65] : memref<9x4x4xbf16, #tpu.memory_space<vmem>>, vector<1x4x4xbf16>
    %63 = vector.shape_cast %62 : vector<1x4x4xbf16> to vector<4x4xbf16>
    %cst_66 = arith.constant dense<0.000000e+00> : vector<256x4xf32>
    %64 = tpu.matmul %61, %63, %cst_66 {dimension_numbers = #tpu.dot_dimension_numbers<[1], [0], [0], [1], [0, 0, 1, 1], [], []>} : vector<256x4xbf16>, vector<4x4xbf16>, vector<256x4xf32> -> vector<256x4xf32>
    %65 = arith.addf %58, %64 : vector<256x4xf32>
    %c2_67 = arith.constant 2 : index
    %c1_68 = arith.constant 1 : index
    %c0_69 = arith.constant 0 : index
    %66 = vector.load %arg11[%c2_67, %c1_68, %c0_69] : memref<18x18x4xf32, #tpu.memory_space<vmem>>, vector<16x16x4xf32>
    %67 = vector.shape_cast %66 : vector<16x16x4xf32> to vector<256x4xf32>
    %68 = arith.truncf %67 : vector<256x4xf32> to vector<256x4xbf16>
    %c7 = arith.constant 7 : index
    %c0_70 = arith.constant 0 : index
    %c0_71 = arith.constant 0 : index
    %69 = vector.load %arg4[%c7, %c0_70, %c0_71] : memref<9x4x4xbf16, #tpu.memory_space<vmem>>, vector<1x4x4xbf16>
    %70 = vector.shape_cast %69 : vector<1x4x4xbf16> to vector<4x4xbf16>
    %cst_72 = arith.constant dense<0.000000e+00> : vector<256x4xf32>
    %71 = tpu.matmul %68, %70, %cst_72 {dimension_numbers = #tpu.dot_dimension_numbers<[1], [0], [0], [1], [0, 0, 1, 1], [], []>} : vector<256x4xbf16>, vector<4x4xbf16>, vector<256x4xf32> -> vector<256x4xf32>
    %72 = arith.addf %65, %71 : vector<256x4xf32>
    %c2_73 = arith.constant 2 : index
    %c2_74 = arith.constant 2 : index
    %c0_75 = arith.constant 0 : index
    %73 = vector.load %arg11[%c2_73, %c2_74, %c0_75] : memref<18x18x4xf32, #tpu.memory_space<vmem>>, vector<16x16x4xf32>
    %74 = vector.shape_cast %73 : vector<16x16x4xf32> to vector<256x4xf32>
    %75 = arith.truncf %74 : vector<256x4xf32> to vector<256x4xbf16>
    %c8 = arith.constant 8 : index
    %c0_76 = arith.constant 0 : index
    %c0_77 = arith.constant 0 : index
    %76 = vector.load %arg4[%c8, %c0_76, %c0_77] : memref<9x4x4xbf16, #tpu.memory_space<vmem>>, vector<1x4x4xbf16>
    %77 = vector.shape_cast %76 : vector<1x4x4xbf16> to vector<4x4xbf16>
    %cst_78 = arith.constant dense<0.000000e+00> : vector<256x4xf32>
    %78 = tpu.matmul %75, %77, %cst_78 {dimension_numbers = #tpu.dot_dimension_numbers<[1], [0], [0], [1], [0, 0, 1, 1], [], []>} : vector<256x4xbf16>, vector<4x4xbf16>, vector<256x4xf32> -> vector<256x4xf32>
    %79 = arith.addf %72, %78 : vector<256x4xf32>
    %c0_79 = arith.constant 0 : index
    %c0_80 = arith.constant 0 : index
    %80 = vector.load %arg5[%c0_79, %c0_80] : memref<1x4xf32, #tpu.memory_space<vmem>>, vector<1x4xf32>
    %81 = vector.broadcast %80 : vector<1x4xf32> to vector<256x4xf32>
    %82 = arith.addf %79, %81 : vector<256x4xf32>
    %cst_81 = arith.constant 0.000000e+00 : f32
    %83 = vector.broadcast %cst_81 : f32 to vector<256x4xf32>
    %84 = arith.maximumf %82, %83 : vector<256x4xf32>
    %85 = vector.shape_cast %84 : vector<256x4xf32> to vector<8x32x4xf32>
    %c0_82 = arith.constant 0 : index
    %c0_83 = arith.constant 0 : index
    %c0_84 = arith.constant 0 : index
    %86 = vector.load %arg12[%c0_82, %c0_83, %c0_84] : memref<8x32x4xf32, #tpu.memory_space<vmem>>, vector<8x32x4xf32>
    tpu.vector_store %arg12[%c0_82, %c0_83, %c0_84], %85 {strides = array<i32>} : memref<8x32x4xf32, #tpu.memory_space<vmem>>, vector<8x32x4xf32>,
    %c0_85 = arith.constant 0 : index
    %c0_86 = arith.constant 0 : index
    %c0_87 = arith.constant 0 : index
    %87 = vector.load %arg12[%c0_85, %c0_86, %c0_87] : memref<8x32x4xf32, #tpu.memory_space<vmem>>, vector<8x16x4xf32>
    %c0_88 = arith.constant 0 : index
    %c16 = arith.constant 16 : index
    %c0_89 = arith.constant 0 : index
    %88 = vector.load %arg12[%c0_88, %c16, %c0_89] : memref<8x32x4xf32, #tpu.memory_space<vmem>>, vector<8x16x4xf32>
    %89 = arith.addf %87, %88 : vector<8x16x4xf32>
    %90 = vector.shape_cast %89 : vector<8x16x4xf32> to vector<64x2x4xf32>
    %c0_90 = arith.constant 0 : index
    %c0_91 = arith.constant 0 : index
    %c0_92 = arith.constant 0 : index
    %91 = vector.load %arg13[%c0_90, %c0_91, %c0_92] : memref<64x2x4xf32, #tpu.memory_space<vmem>>, vector<64x2x4xf32>
    tpu.vector_store %arg13[%c0_90, %c0_91, %c0_92], %90 {strides = array<i32>} : memref<64x2x4xf32, #tpu.memory_space<vmem>>, vector<64x2x4xf32>,
    %c0_93 = arith.constant 0 : index
    %c0_94 = arith.constant 0 : index
    %c0_95 = arith.constant 0 : index
    %92 = vector.load %arg13[%c0_93, %c0_94, %c0_95] : memref<64x2x4xf32, #tpu.memory_space<vmem>>, vector<64x1x4xf32>
    %93 = vector.shape_cast %92 : vector<64x1x4xf32> to vector<64x4xf32>
    %c0_96 = arith.constant 0 : index
    %c1_97 = arith.constant 1 : index
    %c0_98 = arith.constant 0 : index
    %94 = vector.load %arg13[%c0_96, %c1_97, %c0_98] : memref<64x2x4xf32, #tpu.memory_space<vmem>>, vector<64x1x4xf32>
    %95 = vector.shape_cast %94 : vector<64x1x4xf32> to vector<64x4xf32>
    %96 = arith.addf %93, %95 : vector<64x4xf32>
    %cst_99 = arith.constant 2.500000e-01 : f32
    %97 = vector.broadcast %cst_99 : f32 to vector<64x4xf32>
    %98 = arith.mulf %96, %97 : vector<64x4xf32>
    %99 = arith.truncf %98 : vector<64x4xf32> to vector<64x4xbf16>
    %c0_100 = arith.constant 0 : index
    %c0_101 = arith.constant 0 : index
    %100 = vector.load %arg6[%c0_100, %c0_101] : memref<4x16xbf16, #tpu.memory_space<vmem>>, vector<4x16xbf16>
    %cst_102 = arith.constant dense<0.000000e+00> : vector<64x16xf32>
    %101 = tpu.matmul %99, %100, %cst_102 {dimension_numbers = #tpu.dot_dimension_numbers<[1], [0], [0], [1], [0, 0, 1, 1], [], []>} : vector<64x4xbf16>, vector<4x16xbf16>, vector<64x16xf32> -> vector<64x16xf32>
    %c0_103 = arith.constant 0 : index
    %c0_104 = arith.constant 0 : index
    %102 = vector.load %arg7[%c0_103, %c0_104] : memref<1x16xf32, #tpu.memory_space<vmem>>, vector<1x16xf32>
    %103 = vector.broadcast %102 : vector<1x16xf32> to vector<64x16xf32>
    %104 = arith.addf %101, %103 : vector<64x16xf32>
    %105 = arith.extf %2 : vector<256x4xbf16> to vector<256x4xf32>
    %106 = vector.shape_cast %105 : vector<256x4xf32> to vector<8x32x4xf32>
    %c0_105 = arith.constant 0 : index
    %c0_106 = arith.constant 0 : index
    %c0_107 = arith.constant 0 : index
    %107 = vector.load %arg14[%c0_105, %c0_106, %c0_107] : memref<8x32x4xf32, #tpu.memory_space<vmem>>, vector<8x32x4xf32>
    tpu.vector_store %arg14[%c0_105, %c0_106, %c0_107], %106 {strides = array<i32>} : memref<8x32x4xf32, #tpu.memory_space<vmem>>, vector<8x32x4xf32>,
    %c0_108 = arith.constant 0 : index
    %c0_109 = arith.constant 0 : index
    %c0_110 = arith.constant 0 : index
    %108 = vector.load %arg14[%c0_108, %c0_109, %c0_110] : memref<8x32x4xf32, #tpu.memory_space<vmem>>, vector<8x16x4xf32>
    %c0_111 = arith.constant 0 : index
    %c16_112 = arith.constant 16 : index
    %c0_113 = arith.constant 0 : index
    %109 = vector.load %arg14[%c0_111, %c16_112, %c0_113] : memref<8x32x4xf32, #tpu.memory_space<vmem>>, vector<8x16x4xf32>
    %110 = arith.addf %108, %109 : vector<8x16x4xf32>
    %111 = vector.shape_cast %110 : vector<8x16x4xf32> to vector<64x2x4xf32>
    %c0_114 = arith.constant 0 : index
    %c0_115 = arith.constant 0 : index
    %c0_116 = arith.constant 0 : index
    %112 = vector.load %arg15[%c0_114, %c0_115, %c0_116] : memref<64x2x4xf32, #tpu.memory_space<vmem>>, vector<64x2x4xf32>
    tpu.vector_store %arg15[%c0_114, %c0_115, %c0_116], %111 {strides = array<i32>} : memref<64x2x4xf32, #tpu.memory_space<vmem>>, vector<64x2x4xf32>,
    %c0_117 = arith.constant 0 : index
    %c0_118 = arith.constant 0 : index
    %c0_119 = arith.constant 0 : index
    %113 = vector.load %arg15[%c0_117, %c0_118, %c0_119] : memref<64x2x4xf32, #tpu.memory_space<vmem>>, vector<64x1x4xf32>
    %114 = vector.shape_cast %113 : vector<64x1x4xf32> to vector<64x4xf32>
    %c0_120 = arith.constant 0 : index
    %c1_121 = arith.constant 1 : index
    %c0_122 = arith.constant 0 : index
    %115 = vector.load %arg15[%c0_120, %c1_121, %c0_122] : memref<64x2x4xf32, #tpu.memory_space<vmem>>, vector<64x1x4xf32>
    %116 = vector.shape_cast %115 : vector<64x1x4xf32> to vector<64x4xf32>
    %117 = arith.addf %114, %116 : vector<64x4xf32>
    %cst_123 = arith.constant 2.500000e-01 : f32
    %118 = vector.broadcast %cst_123 : f32 to vector<64x4xf32>
    %119 = arith.mulf %117, %118 : vector<64x4xf32>
    %120 = arith.truncf %119 : vector<64x4xf32> to vector<64x4xbf16>
    %c0_124 = arith.constant 0 : index
    %c0_125 = arith.constant 0 : index
    %121 = vector.load %arg8[%c0_124, %c0_125] : memref<4x16xbf16, #tpu.memory_space<vmem>>, vector<4x16xbf16>
    %cst_126 = arith.constant dense<0.000000e+00> : vector<64x16xf32>
    %122 = tpu.matmul %120, %121, %cst_126 {dimension_numbers = #tpu.dot_dimension_numbers<[1], [0], [0], [1], [0, 0, 1, 1], [], []>} : vector<64x4xbf16>, vector<4x16xbf16>, vector<64x16xf32> -> vector<64x16xf32>
    %c0_127 = arith.constant 0 : index
    %c0_128 = arith.constant 0 : index
    %123 = vector.load %arg9[%c0_127, %c0_128] : memref<1x16xf32, #tpu.memory_space<vmem>>, vector<1x16xf32>
    %124 = vector.broadcast %123 : vector<1x16xf32> to vector<64x16xf32>
    %125 = arith.addf %122, %124 : vector<64x16xf32>
    %126 = arith.addf %104, %125 : vector<64x16xf32>
    %cst_129 = arith.constant 0.000000e+00 : f32
    %127 = vector.broadcast %cst_129 : f32 to vector<64x16xf32>
    %128 = arith.maximumf %126, %127 : vector<64x16xf32>
    %129 = vector.shape_cast %128 : vector<64x16xf32> to vector<8x8x16xf32>
    %c0_130 = arith.constant 0 : index
    %c0_131 = arith.constant 0 : index
    %c0_132 = arith.constant 0 : index
    %c0_133 = arith.constant 0 : index
    %130 = vector.load %arg10[%c0_130, %c0_131, %c0_132, %c0_133] : memref<1x8x8x16xf32, #tpu.memory_space<vmem>>, vector<1x8x8x16xf32>
    %131 = vector.shape_cast %130 : vector<1x8x8x16xf32> to vector<8x8x16xf32>
    %132 = vector.shape_cast %129 : vector<8x8x16xf32> to vector<1x8x8x16xf32>
    tpu.vector_store %arg10[%c0_130, %c0_131, %c0_132, %c0_133], %132 {strides = array<i32>} : memref<1x8x8x16xf32, #tpu.memory_space<vmem>>, vector<1x8x8x16xf32>,
    return
  }
  func.func @transform_0(%arg0: i32) -> (i32, i32, i32, i32) {
    %c0_i32 = arith.constant 0 : i32
    %c0_i32_0 = arith.constant 0 : i32
    %c0_i32_1 = arith.constant 0 : i32
    %c0_i32_2 = arith.constant 0 : i32
    return %arg0, %c0_i32, %c0_i32_0, %c0_i32_1 : i32, i32, i32, i32
  }
  func.func @transform_1(%arg0: i32) -> (i32, i32) {
    %c0_i32 = arith.constant 0 : i32
    %c0_i32_0 = arith.constant 0 : i32
    %c0_i32_1 = arith.constant 0 : i32
    return %c0_i32, %c0_i32_0 : i32, i32
  }
  func.func @transform_2(%arg0: i32) -> (i32, i32) {
    %c0_i32 = arith.constant 0 : i32
    %c0_i32_0 = arith.constant 0 : i32
    %c0_i32_1 = arith.constant 0 : i32
    return %c0_i32, %c0_i32_0 : i32, i32
  }
  func.func @transform_3(%arg0: i32) -> (i32, i32, i32) {
    %c0_i32 = arith.constant 0 : i32
    %c0_i32_0 = arith.constant 0 : i32
    %c0_i32_1 = arith.constant 0 : i32
    %c0_i32_2 = arith.constant 0 : i32
    return %c0_i32, %c0_i32_0, %c0_i32_1 : i32, i32, i32
  }
  func.func @transform_4(%arg0: i32) -> (i32, i32) {
    %c0_i32 = arith.constant 0 : i32
    %c0_i32_0 = arith.constant 0 : i32
    %c0_i32_1 = arith.constant 0 : i32
    return %c0_i32, %c0_i32_0 : i32, i32
  }
  func.func @transform_5(%arg0: i32) -> (i32, i32) {
    %c0_i32 = arith.constant 0 : i32
    %c0_i32_0 = arith.constant 0 : i32
    %c0_i32_1 = arith.constant 0 : i32
    return %c0_i32, %c0_i32_0 : i32, i32
  }
  func.func @transform_6(%arg0: i32) -> (i32, i32) {
    %c0_i32 = arith.constant 0 : i32
    %c0_i32_0 = arith.constant 0 : i32
    %c0_i32_1 = arith.constant 0 : i32
    return %c0_i32, %c0_i32_0 : i32, i32
  }
  func.func @transform_7(%arg0: i32) -> (i32, i32) {
    %c0_i32 = arith.constant 0 : i32
    %c0_i32_0 = arith.constant 0 : i32
    %c0_i32_1 = arith.constant 0 : i32
    return %c0_i32, %c0_i32_0 : i32, i32
  }
  func.func @transform_8(%arg0: i32) -> (i32, i32) {
    %c0_i32 = arith.constant 0 : i32
    %c0_i32_0 = arith.constant 0 : i32
    %c0_i32_1 = arith.constant 0 : i32
    return %c0_i32, %c0_i32_0 : i32, i32
  }
  func.func @transform_9(%arg0: i32) -> (i32, i32, i32, i32) {
    %c0_i32 = arith.constant 0 : i32
    %c0_i32_0 = arith.constant 0 : i32
    %c0_i32_1 = arith.constant 0 : i32
    %c0_i32_2 = arith.constant 0 : i32
    return %arg0, %c0_i32, %c0_i32_0, %c0_i32_1 : i32, i32, i32, i32
  }
}

</mosaic_0001>

<bundles_post_ra>
// kernel: tpu_custom_call.1
= control target key start
LH: loop header
LB: loop body
LE: loop exit
PB: predicated region body
PF: predicated region fallthrough
CT: control target
= control target key end

     0   :  { %14 = vsyncpa [#allocation8], 0  ;;  %s8876_s0 = inlined_call_operand.vmem [shape: bf16[2,16,16,4], index: 0, kind: input, shape index: {}]   ;;  %s8877_s1 = inlined_call_operand.vmem [shape: bf16[4,4], index: 1, kind: input, shape index: {}]   ;;  %s8878_s2 = inlined_call_operand.vmem [shape: f32[1,4], index: 2, kind: input, shape index: {}]   ;;  %s8879_s3 = inlined_call_operand.vmem [shape: bf16[9,4,4], index: 3, kind: input, shape index: {}]   ;;  %s8880_s4 = inlined_call_operand.vmem [shape: f32[1,4], index: 4, kind: input, shape index: {}]   ;;  %s8881_s5 = inlined_call_operand.vmem [shape: bf16[4,16], index: 5, kind: input, shape index: {}]   ;;  %s8882_s6 = inlined_call_operand.vmem [shape: f32[1,16], index: 6, kind: input, shape index: {}]   ;;  %s8883_s7 = inlined_call_operand.vmem [shape: bf16[4,16], index: 7, kind: input, shape index: {}]   ;;  %s8884_s8 = inlined_call_operand.vmem [shape: f32[1,16], index: 8, kind: input, shape index: {}]   ;;  %s8885_s9 = inlined_call_operand.hbm [shape: f32[2,8,8,16], index: 9, kind: output, shape index: {}]  }
   0x1   :  { %16 = vsyncpa [#allocation8 + $0x1], 0  ;;  %s6816_s30 = smov 0   ;;  %s6818_s10 = smov 0  }
   0x2   :  { %s6820_s11 = smov 0   ;;  %s6822_s12 = smov 0  }
   0x3 LB: > { %s6837_s13 = sadd.s32 4294967295, %s6759_s12   ;;  %s5861_s14 = sadd.s32 4294967294, %s6759_s12   ;;  %s6759_s12 = sphi %s6822_s12, %s8985_s12   ;;  %s6755_s11 = sphi %s6820_s11, %s8984_s11   ;;  %s6751_s10 = sphi %s6818_s10, %s8983_s10   ;;  %s6747_s30 = sphi %s6816_s30, %s8982_s30  }
   0x4   : > { %s6841_s15 = sadd.s32 1, %s6759_s12   ;;  %s223_s16 = sadd.s32 1, %s6755_s11 }
   0x5   : > { %s220_s17 = ssub.s32 %s6759_s12, %s6841_s15  ;;  %p233_p0 = scmp.ne.s32.totalorder %s6755_s11, %s6751_s10 }
   0x6   : > { %p221_p1 = scmp.eq.s32.totalorder %s220_s17, 0  ;;  %p234_p2 = scmp.eq.s32.totalorder %s6837_s13, 1 }
   0x7   : > { %p239_p3 = scmp.ne.s32.totalorder %s6751_s10, %s6747_s30  ;;  %p240_p4 = scmp.eq.s32.totalorder %s5861_s14, 1 }
   0x8   : > { %s6852_s18 = scalar_select %p221_p1, %s6755_s11, %s223_s16  }
   0x9   : > { %p6854_p5 = por %p234_p2, %p233_p0  ;;  %p6858_p6 = por %p240_p4, %p239_p3 }
   0xa   : > { %p5864_p7 = scmp.ge.s32.totalorder %s6759_s12, 1  ;;  %p290_p8 = scmp.lt.s32.totalorder %s6759_s12, 3 }
   0xc   : > { %p291_p9 = pnand %p5864_p7, %p290_p8 }
   0xe   : > { %294 = sbr.rel (%p291_p9) target bundleno = 1129 (0x469), region = 56 }
  0x13   : > { %v364_v0 = vld [vmem:[%s8877_s1] sm:$0x3]  ;;  %vm501_vm0 = vcmask 1041408   ;;  %p326_p10 = scmp.lt.s32.totalorder %s6837_s13, 1  ;;  %v3525_v2 = vlaneseq  ;;  %v6761_v3 = vmov 1983009808  }
  0x14   : > { %6611 = vmatprep.subr.msk.bf16.mxu0 %vm501_vm0, %v364_v0  ;;  %v503_v1 = vsel %vm501_vm0, %v364_v0, 0  ;;  %v3523_v4 = vunpack.c.l.s4 %v6761_v3  ;;  %vm452_vm1 = vcmask 31744   ;;  %vm700_vm2 = vcmask 25600   ;;  %s323_s22 = sand.u32 1, %s6751_s10   ;;  %s6763_s21 = smov [#allocation7]  }
  0x15   : > { %6252 = vmatpush3.bf16.msra.mxu0 %v503_v1  ;;  %s327_s23 = scalar_select %p326_p10, %s6837_s13, 1  ;;  %v3526_v7 = vshrl.u32 %v3525_v2, 7  ;;  %vm707_vm3 = vcmask 24576   ;;  %vm4378_vm4 = vcmask 1041409   ;;  %vm4381_vm5 = vcmask 1042434  }
  0x16   : > { %v3524_v15 = vunpack.c.0.s8 %v3523_v4  ;;  %vm4384_vm6 = vcmask 1043459   ;;  %vm4387_vm7 = vcmask 1044484   ;;  %vm4390_vm8 = vcmask 1045509   ;;  %s5865_s25 = sshll.u32 %s323_s22, 6 }
  0x17   : > { %s6069_s24 = sshll.u32 %s327_s23, 7  ;;  %vm4393_vm9 = vcmask 1046534   ;;  %vm4396_vm10 = vcmask 1047559   ;;  %vm5776_vm11 = vcmask 130048   ;;  %s8807_s26 = scalar_lea.vmem [#allocation7], %s5865_s25 }
  0x18   : > { %s6874_s27 = scalar_lea.vmem %s8876_s0, %s6069_s24  ;;  %v6920_v32 = vsub.s32 %v3524_v15, %v3526_v7  ;;  %s5799_s28 = sshll.u32 %s8807_s26, 4  ;;  %s8828_s28 = int_to_ptr.vmem [resolvable:$true] %s5799_s28 }
  0x19   : > { %v332_v5 = vld [vmem:[%s6874_s27] sm:$0xff]   ;;  %v334_v6 = vld [vmem:[%s6874_s27 + $0x8] sm:$0xff]   ;;  %v336_v8 = vld [vmem:[%s6874_s27 + $0x10] sm:$0xff]   ;;  %s6699_s17 = scalar_lea.vmem %s8828_s28, 1024  ;;  %s6703_s23 = sshll.u32 %s6763_s21, 4  ;;  %s6704_s23 = int_to_ptr.vmem [resolvable:$false] %s6703_s23 }
  0x1a   : > { %v4580_v9 = vunpack.c.l.bf16 %v332_v5  ;;  %v4581_v10 = vunpack.c.h.bf16 %v332_v5  ;;  %v4582_v11 = vunpack.c.l.bf16 %v334_v6  ;;  %v4583_v12 = vunpack.c.h.bf16 %v334_v6  ;;  %v6880_v14 = vld [vmem:[%s6874_s27 + $0x18] sm:$0xff]   ;;  %6253 = vmatprep.mubr.msk.bf16.mxu0 %vm452_vm1, %v332_v5  ;;  %v6888_v19 = vld [vmem:[%s6874_s27 + $0x20] sm:$0xff]   ;;  %v6897_v22 = vld [vmem:[%s6874_s27 + $0x28] sm:$0xff]   ;;  %8894 = vst [vmem:[#allocation10_spill] sm:$0xff] %v6920_v32  ;;  %p6700_p11 = scmp.ne.s32.totalorder %s8828_s28, %s6699_s17  ;;  %s6705_s24 = scalar_lea.vmem %s6704_s23, 2048 }
  0x1b   : > { %v4584_v13 = vunpack.c.l.bf16 %v336_v8  ;;  %v4585_v16 = vunpack.c.h.bf16 %v336_v8  ;;  %v4586_v17 = vunpack.c.l.bf16 %v6880_v14  ;;  %v4587_v18 = vunpack.c.h.bf16 %v6880_v14  ;;  %6254 = vmatmul.mubr.msk.bf16.vlgmr.msra.gmra.mxu0 %vm452_vm1, %v334_v6  ;;  %v6900_v23 = vld [vmem:[%s6874_s27 + $0x30] sm:$0xff]   ;;  %v6910_v27 = vld [vmem:[%s6874_s27 + $0x38] sm:$0xff]   ;;  %v6918_v31 = vld [vmem:[%s6874_s27 + $0x40] sm:$0xff]   ;;  %p6706_p0 = scmp.lt.s32.totalorder %s8828_s28, %s6704_s23  ;;  %p6707_p1 = scmp.lt.s32.totalorder %s6705_s24, %s6699_s17 }
  0x1c   : > { %4612 = vst.msk [vmem:[#allocation5] sm:$0xff] %vm452_vm1, %v4580_v9  ;;  %4613 = vst.msk [vmem:[#allocation5 + $0x8] sm:$0xff] %vm452_vm1, %v4581_v10  ;;  %v4588_v20 = vunpack.c.l.bf16 %v6888_v19  ;;  %v4589_v21 = vunpack.c.h.bf16 %v6888_v19  ;;  %6257 = vmatprep.mubr.msk.bf16.mxu0 %vm452_vm1, %v336_v8  ;;  %v4590_v24 = vunpack.c.l.bf16 %v6897_v22  ;;  %v4591_v25 = vunpack.c.h.bf16 %v6897_v22  ;;  %v6928_v35 = vld [vmem:[%s6874_s27 + $0x48] sm:$0xff]   ;;  %v6931_v36 = vld [vmem:[%s6874_s27 + $0x50] sm:$0xff]   ;;  %p6701_p12 = pnand %p6700_p11, %p6854_p5 }
  0x1d   : > { %4614 = vst.msk [vmem:[#allocation5 + $0x10] sm:$0xff] %vm452_vm1, %v4582_v11  ;;  %4615 = vst.msk [vmem:[#allocation5 + $0x18] sm:$0xff] %vm452_vm1, %v4583_v12  ;;  %v4592_v26 = vunpack.c.l.bf16 %v6900_v23  ;;  %v4593_v28 = vunpack.c.h.bf16 %v6900_v23  ;;  %v4594_v29 = vunpack.c.l.bf16 %v6910_v27  ;;  %v4595_v30 = vunpack.c.h.bf16 %v6910_v27  ;;  %v6940_v40 = vld [vmem:[%s6874_s27 + $0x58] sm:$0xff]   ;;  %v6948_v44 = vld [vmem:[%s6874_s27 + $0x60] sm:$0xff]   ;;  %p6708_p2 = por %p6707_p1, %p6706_p0 }
  0x1e   : > { %4616 = vst.msk [vmem:[#allocation5 + $0x20] sm:$0xff] %vm452_vm1, %v4584_v13  ;;  %4617 = vst.msk [vmem:[#allocation5 + $0x28] sm:$0xff] %vm452_vm1, %v4585_v16  ;;  %v4596_v33 = vunpack.c.l.bf16 %v6918_v31  ;;  %v4597_v34 = vunpack.c.h.bf16 %v6918_v31  ;;  %v4598_v37 = vunpack.c.l.bf16 %v6928_v35  ;;  %v4599_v38 = vunpack.c.h.bf16 %v6928_v35  ;;  %v6951_v45 = vld [vmem:[%s6874_s27 + $0x68] sm:$0xff]   ;;  %v6954_v46 = vld [vmem:[%s6874_s27 + $0x70] sm:$0xff]   ;;  %p6702_p13 = pneg %p6701_p12 }
  0x1f   : > { %4618 = vst.msk [vmem:[#allocation5 + $0x30] sm:$0xff] %vm452_vm1, %v4586_v17  ;;  %4619 = vst.msk [vmem:[#allocation5 + $0x38] sm:$0xff] %vm452_vm1, %v4587_v18  ;;  %v4600_v39 = vunpack.c.l.bf16 %v6931_v36  ;;  %v4601_v41 = vunpack.c.h.bf16 %v6931_v36  ;;  %v4602_v42 = vunpack.c.l.bf16 %v6940_v40  ;;  %v4603_v43 = vunpack.c.h.bf16 %v6940_v40  ;;  %v6962_v51 = vld [vmem:[%s6874_s27 + $0x78] sm:$0xff]   ;;  %s6070_s27 = sshll.u32 %s6837_s13, 10  ;;  %s8836_s13 = scalar_lea.sflag [#allocation8], %s323_s22 }
  0x20   : > { %4620 = vst.msk [vmem:[#allocation5 + $0x40] sm:$0xff] %vm452_vm1, %v4588_v20  ;;  %4621 = vst.msk [vmem:[#allocation5 + $0x48] sm:$0xff] %vm452_vm1, %v4589_v21  ;;  %v4604_v49 = vunpack.c.l.bf16 %v6948_v44  ;;  %v4605_v50 = vunpack.c.h.bf16 %v6948_v44  ;;  %v4606_v55 = vunpack.c.l.bf16 %v6951_v45  ;;  %v4607_v56 = vunpack.c.h.bf16 %v6951_v45  ;;  %s8826_s16 = scalar_lea.hbm %s8885_s9, %s6070_s27  ;;  %p6709_p3 = pnand %p6708_p2, %p6702_p13 }
  0x21   : > { %4622 = vst.msk [vmem:[#allocation5 + $0x50] sm:$0xff] %vm452_vm1, %v4590_v24  ;;  %4623 = vst.msk [vmem:[#allocation5 + $0x58] sm:$0xff] %vm452_vm1, %v4591_v25  ;;  %v4608_v57 = vunpack.c.l.bf16 %v6954_v46  ;;  %v4609_v63 = vunpack.c.h.bf16 %v6954_v46  ;;  %v4610_v3 = vunpack.c.l.bf16 %v6962_v51  ;;  %v4611_v4 = vunpack.c.h.bf16 %v6962_v51 }
  0x22   : > { %4624 = vst.msk [vmem:[#allocation5 + $0x60] sm:$0xff] %vm452_vm1, %v4592_v26  ;;  %4625 = vst.msk [vmem:[#allocation5 + $0x68] sm:$0xff] %vm452_vm1, %v4593_v28 }
  0x23   : > { %4626 = vst.msk [vmem:[#allocation5 + $0x70] sm:$0xff] %vm452_vm1, %v4594_v29  ;;  %4627 = vst.msk [vmem:[#allocation5 + $0x78] sm:$0xff] %vm452_vm1, %v4595_v30  ;;  %v4644_v47 = vld [vmem:[#allocation5] sm:$0xff]  ;;  %v4645_v48 = vld [vmem:[#allocation5 + $0x8] sm:$0xff]  ;;  %6258 = vmatmul.mubr.msk.bf16.gmra.mxu0 %vm452_vm1, %v6880_v14 }
  0x24   : > { %4628 = vst.msk [vmem:[#allocation5 + $0x80] sm:$0xff] %vm452_vm1, %v4596_v33  ;;  %4629 = vst.msk [vmem:[#allocation5 + $0x88] sm:$0xff] %vm452_vm1, %v4597_v34  ;;  %v4660_v52 = vld [vmem:[#allocation5 + $0x10] sm:$0xff]  ;;  %v4661_v53 = vld [vmem:[#allocation5 + $0x18] sm:$0xff]  ;;  %6261 = vmatprep.mubr.msk.bf16.mxu0 %vm452_vm1, %v6888_v19 }
  0x25   : > { %4630 = vst.msk [vmem:[#allocation5 + $0x90] sm:$0xff] %vm452_vm1, %v4598_v37  ;;  %4631 = vst.msk [vmem:[#allocation5 + $0x98] sm:$0xff] %vm452_vm1, %v4599_v38  ;;  %v4646_v54 = vld [vmem:[#allocation5 + $0x20] sm:$0xff]  ;;  %v4676_v58 = vadd.f32 %v4660_v52, %v4644_v47  ;;  %v4677_v59 = vadd.f32 %v4661_v53, %v4645_v48  ;;  %v4647_v60 = vld [vmem:[#allocation5 + $0x28] sm:$0xff] }
  0x26   : > { %4632 = vst.msk [vmem:[#allocation5 + $0xa0] sm:$0xff] %vm452_vm1, %v4600_v39  ;;  %4633 = vst.msk [vmem:[#allocation5 + $0xa8] sm:$0xff] %vm452_vm1, %v4601_v41  ;;  %v4662_v61 = vld [vmem:[#allocation5 + $0x30] sm:$0xff]  ;;  %v4663_v62 = vld [vmem:[#allocation5 + $0x38] sm:$0xff] }
  0x27   : > { %4634 = vst.msk [vmem:[#allocation5 + $0xb0] sm:$0xff] %vm452_vm1, %v4602_v42  ;;  %4635 = vst.msk [vmem:[#allocation5 + $0xb8] sm:$0xff] %vm452_vm1, %v4603_v43  ;;  %v4678_v0 = vadd.f32 %v4662_v61, %v4646_v54  ;;  %v4679_v1 = vadd.f32 %v4663_v62, %v4647_v60  ;;  %v4648_v2 = vld [vmem:[#allocation5 + $0x40] sm:$0xff]  ;;  %v4708_v5 = vcombine.high %v4676_v58, %v4676_v58  ;;  %v4649_v9 = vld [vmem:[#allocation5 + $0x48] sm:$0xff] }
  0x28   : > { %4636 = vst.msk [vmem:[#allocation5 + $0xc0] sm:$0xff] %vm452_vm1, %v4604_v49  ;;  %4637 = vst.msk [vmem:[#allocation5 + $0xc8] sm:$0xff] %vm452_vm1, %v4605_v50  ;;  %v4715_v6 = vrot.slane %v4676_v58, %v6920_v32  ;;  %v4725_v7 = vcombine.high %v4677_v59, %v4677_v59  ;;  %v4732_v8 = vrot.slane %v4677_v59, %v6920_v32  ;;  %v4664_v10 = vld [vmem:[#allocation5 + $0x50] sm:$0xff]  ;;  %v4665_v11 = vld [vmem:[#allocation5 + $0x58] sm:$0xff] }
  0x29   : > { %4638 = vst.msk [vmem:[#allocation5 + $0xd0] sm:$0xff] %vm452_vm1, %v4606_v55  ;;  %4639 = vst.msk [vmem:[#allocation5 + $0xd8] sm:$0xff] %vm452_vm1, %v4607_v56  ;;  %v4742_v12 = vcombine.high %v4678_v0, %v4678_v0  ;;  %v4749_v13 = vrot.slane %v4678_v0, %v6920_v32  ;;  %v4759_v14 = vcombine.high %v4679_v1, %v4679_v1  ;;  %v4650_v16 = vld [vmem:[#allocation5 + $0x60] sm:$0xff]  ;;  %v4651_v17 = vld [vmem:[#allocation5 + $0x68] sm:$0xff] }
  0x2a   : > { %4640 = vst.msk [vmem:[#allocation5 + $0xe0] sm:$0xff] %vm452_vm1, %v4608_v57  ;;  %4641 = vst.msk [vmem:[#allocation5 + $0xe8] sm:$0xff] %vm452_vm1, %v4609_v63  ;;  %v4766_v15 = vrot.slane %v4679_v1, %v6920_v32  ;;  %v4666_v18 = vld [vmem:[#allocation5 + $0x70] sm:$0xff]  ;;  %v4722_v19 = vrot.slane %v4708_v5, %v6920_v32  ;;  %v4723_v20 = vcombine.high %v4715_v6, %v4715_v6  ;;  %v4667_v25 = vld [vmem:[#allocation5 + $0x78] sm:$0xff] }
  0x2b   : > { %4642 = vst.msk [vmem:[#allocation5 + $0xf0] sm:$0xff] %vm452_vm1, %v4610_v3  ;;  %4643 = vst.msk [vmem:[#allocation5 + $0xf8] sm:$0xff] %vm452_vm1, %v4611_v4  ;;  %v6991_v21 = vrot.slane %v4725_v7, %v6920_v32  ;;  %v4740_v24 = vcombine.high %v4732_v8, %v4732_v8  ;;  %v4652_v26 = vld [vmem:[#allocation5 + $0x80] sm:$0xff]  ;;  %v4653_v28 = vld [vmem:[#allocation5 + $0x88] sm:$0xff]  ;;  %v4756_v29 = vrot.slane %v4742_v12, %v6920_v32  ;;  %6262 = vmatmul.mubr.msk.bf16.gmra.mxu0 %vm452_vm1, %v6897_v22 }
  0x2c   : > { %5044 = vst.msk [vmem:[#allocation6] sm:$0x3] %vm700_vm2, %v4715_v6  ;;  %5048 = vst.msk [vmem:[#allocation6 + $0x8] sm:$0x3] %vm700_vm2, %v4732_v8  ;;  %v4757_v30 = vcombine.high %v4749_v13, %v4749_v13  ;;  %v6997_v33 = vrot.slane %v4759_v14, %v6920_v32  ;;  %v4774_v34 = vcombine.high %v4766_v15, %v4766_v15  ;;  %v4668_v37 = vld [vmem:[#allocation5 + $0x90] sm:$0xff]  ;;  %v4669_v38 = vld [vmem:[#allocation5 + $0x98] sm:$0xff]  ;;  %6265 = vmatprep.mubr.msk.bf16.mxu0 %vm452_vm1, %v6900_v23 }
  0x2d   : > { %8895 = vst [vmem:[#allocation11_spill] sm:$0xff] %v6991_v21  ;;  %5052 = vst.msk [vmem:[#allocation6 + $0x10] sm:$0x3] %vm700_vm2, %v4749_v13  ;;  %v4724_v39 = vcombine.high %v4722_v19, %v4722_v19  ;;  %v4680_v41 = vadd.f32 %v4664_v10, %v4648_v2  ;;  %v4681_v42 = vadd.f32 %v4665_v11, %v4649_v9  ;;  %v4654_v63 = vld [vmem:[#allocation5 + $0xa0] sm:$0xff]  ;;  %v4655_v0 = vld [vmem:[#allocation5 + $0xa8] sm:$0xff] }
  0x2e   : > { %8896 = vst [vmem:[#allocation12_spill] sm:$0xff] %v6997_v33  ;;  %5056 = vst.msk [vmem:[#allocation6 + $0x18] sm:$0x3] %vm700_vm2, %v4766_v15  ;;  %v4682_v43 = vadd.f32 %v4666_v18, %v4650_v16  ;;  %v4758_v47 = vcombine.high %v4756_v29, %v4756_v29  ;;  %v4683_v48 = vadd.f32 %v4667_v25, %v4651_v17  ;;  %v4670_v4 = vld [vmem:[#allocation5 + $0xb0] sm:$0xff]  ;;  %v4671_v5 = vld [vmem:[#allocation5 + $0xb8] sm:$0xff] }
  0x2f   : > { %5045 = vst.msk [vmem:[#allocation6 + $0x2] sm:$0x3] %vm700_vm2, %v4723_v20  ;;  %5046 = vst.msk [vmem:[#allocation6 + $0x4] sm:$0x3] %vm700_vm2, %v4722_v19  ;;  %v4684_v49 = vadd.f32 %v4668_v37, %v4652_v26  ;;  %v4685_v50 = vadd.f32 %v4669_v38, %v4653_v28  ;;  %v4776_v52 = vcombine.high %v4680_v41, %v4680_v41  ;;  %v4656_v6 = vld [vmem:[#allocation5 + $0xc0] sm:$0xff]  ;;  %v4657_v11 = vld [vmem:[#allocation5 + $0xc8] sm:$0xff] }
  0x30   : > { %5049 = vst.msk [vmem:[#allocation6 + $0xa] sm:$0x3] %vm700_vm2, %v4740_v24  ;;  %5050 = vst.msk [vmem:[#allocation6 + $0xc] sm:$0x3] %vm700_vm2, %v6991_v21  ;;  %v4783_v53 = vrot.slane %v4680_v41, %v6920_v32  ;;  %v4793_v54 = vcombine.high %v4681_v42, %v4681_v42  ;;  %v4800_v55 = vrot.slane %v4681_v42, %v6920_v32  ;;  %v4672_v12 = vld [vmem:[#allocation5 + $0xd0] sm:$0xff]  ;;  %v4673_v13 = vld [vmem:[#allocation5 + $0xd8] sm:$0xff] }
  0x31   : > { %5053 = vst.msk [vmem:[#allocation6 + $0x12] sm:$0x3] %vm700_vm2, %v4757_v30  ;;  %5054 = vst.msk [vmem:[#allocation6 + $0x14] sm:$0x3] %vm700_vm2, %v4756_v29  ;;  %v4810_v56 = vcombine.high %v4682_v43, %v4682_v43  ;;  %v4817_v57 = vrot.slane %v4682_v43, %v6920_v32  ;;  %v4827_v58 = vcombine.high %v4683_v48, %v4683_v48 }
  0x32   : > { %5057 = vst.msk [vmem:[#allocation6 + $0x1a] sm:$0x3] %vm700_vm2, %v4774_v34  ;;  %5058 = vst.msk [vmem:[#allocation6 + $0x1c] sm:$0x3] %vm700_vm2, %v6997_v33  ;;  %v4834_v59 = vrot.slane %v4683_v48, %v6920_v32  ;;  %v4790_v60 = vrot.slane %v4776_v52, %v6920_v32  ;;  %v4791_v22 = vcombine.high %v4783_v53, %v4783_v53  ;;  %v4674_v48 = vld [vmem:[#allocation5 + $0xf0] sm:$0xff] }
  0x33   : > { %5047 = vst.msk [vmem:[#allocation6 + $0x6] sm:$0x3] %vm700_vm2, %v4724_v39  ;;  %5055 = vst.msk [vmem:[#allocation6 + $0x16] sm:$0x3] %vm700_vm2, %v4758_v47  ;;  %v4807_v61 = vrot.slane %v4793_v54, %v6920_v32  ;;  %v4808_v62 = vcombine.high %v4800_v55, %v4800_v55  ;;  %v4824_v23 = vrot.slane %v4810_v56, %v6920_v32  ;;  %6266 = vmatmul.mubr.msk.bf16.gmra.mxu0 %vm452_vm1, %v6910_v27  ;;  %v4658_v39 = vld [vmem:[#allocation5 + $0xe0] sm:$0xff]  ;;  %v4659_v47 = vld [vmem:[#allocation5 + $0xe8] sm:$0xff] }
  0x34   : > { %5060 = vst.msk [vmem:[#allocation6 + $0x20] sm:$0x3] %vm700_vm2, %v4783_v53  ;;  %5064 = vst.msk [vmem:[#allocation6 + $0x28] sm:$0x3] %vm700_vm2, %v4800_v55  ;;  %v4825_v1 = vcombine.high %v4817_v57, %v4817_v57  ;;  %v4841_v2 = vrot.slane %v4827_v58, %v6920_v32  ;;  %v4842_v3 = vcombine.high %v4834_v59, %v4834_v59  ;;  %6269 = vmatprep.mubr.msk.bf16.mxu0 %vm452_vm1, %v6918_v31 }
  0x35   : > { %5068 = vst.msk [vmem:[#allocation6 + $0x30] sm:$0x3] %vm700_vm2, %v4817_v57  ;;  %5072 = vst.msk [vmem:[#allocation6 + $0x38] sm:$0x3] %vm700_vm2, %v4834_v59  ;;  %v4792_v7 = vcombine.high %v4790_v60, %v4790_v60  ;;  %v4809_v8 = vcombine.high %v4807_v61, %v4807_v61  ;;  %v4844_v9 = vcombine.high %v4684_v49, %v4684_v49 }
  0x36   : > { %5061 = vst.msk [vmem:[#allocation6 + $0x22] sm:$0x3] %vm700_vm2, %v4791_v22  ;;  %5062 = vst.msk [vmem:[#allocation6 + $0x24] sm:$0x3] %vm700_vm2, %v4790_v60  ;;  %v4851_v10 = vrot.slane %v4684_v49, %v6920_v32  ;;  %v4826_v14 = vcombine.high %v4824_v23, %v4824_v23  ;;  %v4843_v15 = vcombine.high %v4841_v2, %v4841_v2  ;;  %v4675_v49 = vld [vmem:[#allocation5 + $0xf8] sm:$0xff] }
  0x37   : > { %5065 = vst.msk [vmem:[#allocation6 + $0x2a] sm:$0x3] %vm700_vm2, %v4808_v62  ;;  %5066 = vst.msk [vmem:[#allocation6 + $0x2c] sm:$0x3] %vm700_vm2, %v4807_v61  ;;  %v4861_v16 = vcombine.high %v4685_v50, %v4685_v50  ;;  %v4868_v17 = vrot.slane %v4685_v50, %v6920_v32  ;;  %v4858_v18 = vrot.slane %v4844_v9, %v6920_v32 }
  0x38   : > { %5069 = vst.msk [vmem:[#allocation6 + $0x32] sm:$0x3] %vm700_vm2, %v4825_v1  ;;  %5070 = vst.msk [vmem:[#allocation6 + $0x34] sm:$0x3] %vm700_vm2, %v4824_v23  ;;  %v4859_v19 = vcombine.high %v4851_v10, %v4851_v10  ;;  %v4686_v20 = vadd.f32 %v4670_v4, %v4654_v63  ;;  %v4687_v24 = vadd.f32 %v4671_v5, %v4655_v0 }
  0x39   : > { %5073 = vst.msk [vmem:[#allocation6 + $0x3a] sm:$0x3] %vm700_vm2, %v4842_v3  ;;  %5074 = vst.msk [vmem:[#allocation6 + $0x3c] sm:$0x3] %vm700_vm2, %v4841_v2  ;;  %v7046_v25 = vrot.slane %v4861_v16, %v6920_v32  ;;  %v4876_v26 = vcombine.high %v4868_v17, %v4868_v17  ;;  %v4688_v28 = vadd.f32 %v4672_v12, %v4656_v6  ;;  %v5934_v12 = vld [vmem:[%s8879_s3 + $0x4] sm:$0x3] }
  0x3a   : > { %5063 = vst.msk [vmem:[#allocation6 + $0x26] sm:$0x3] %vm700_vm2, %v4792_v7  ;;  %5067 = vst.msk [vmem:[#allocation6 + $0x2e] sm:$0x3] %vm700_vm2, %v4809_v8  ;;  %v4689_v29 = vadd.f32 %v4673_v13, %v4657_v11  ;;  %v4860_v30 = vcombine.high %v4858_v18, %v4858_v18  ;;  %v4878_v34 = vcombine.high %v4686_v20, %v4686_v20  ;;  %v5951_v13 = vld [vmem:[%s8879_s3 + $0x6] sm:$0x3] }
  0x3b   : > { %5076 = vst.msk [vmem:[#allocation6 + $0x40] sm:$0x3] %vm700_vm2, %v4851_v10  ;;  %5071 = vst.msk [vmem:[#allocation6 + $0x36] sm:$0x3] %vm700_vm2, %v4826_v14  ;;  %v4885_v37 = vrot.slane %v4686_v20, %v6920_v32  ;;  %v4895_v38 = vcombine.high %v4687_v24, %v4687_v24  ;;  %v4902_v27 = vrot.slane %v4687_v24, %v6920_v32  ;;  %6270 = vmatmul.mubr.msk.bf16.gmra.mxu0 %vm452_vm1, %v6928_v35  ;;  %v6762_v35 = vmov 0.0  }
  0x3c   : > { %5075 = vst.msk [vmem:[#allocation6 + $0x3e] sm:$0x3] %vm700_vm2, %v4843_v15  ;;  %8897 = vst [vmem:[#allocation13_spill] sm:$0xff] %v7046_v25  ;;  %v4912_v41 = vcombine.high %v4688_v28, %v4688_v28  ;;  %v4919_v42 = vrot.slane %v4688_v28, %v6920_v32  ;;  %v4929_v43 = vcombine.high %v4689_v29, %v4689_v29  ;;  %6273 = vmatprep.mubr.msk.bf16.mxu0 %vm452_vm1, %v6931_v36  ;;  %v5901_v36 = vld [vmem:[%s8879_s3 + $0x2] sm:$0x3] }
  0x3d   : > { %5080 = vst.msk [vmem:[#allocation6 + $0x48] sm:$0x3] %vm700_vm2, %v4868_v17  ;;  %5077 = vst.msk [vmem:[#allocation6 + $0x42] sm:$0x3] %vm700_vm2, %v4859_v19  ;;  %v4892_v50 = vrot.slane %v4878_v34, %v6920_v32  ;;  %v4893_v52 = vcombine.high %v4885_v37, %v4885_v37  ;;  %v7064_v31 = vrot.slane %v4895_v38, %v6920_v32  ;;  %6612 = vmatprep.subr.msk.bf16.mxu1 %vm501_vm0, %v5901_v36  ;;  %v7172_v14 = vld [vmem:[%s8878_s2] ss:$0 sm:$0xff] }
  0x3e   : > { %5078 = vst.msk [vmem:[#allocation6 + $0x44] sm:$0x3] %vm700_vm2, %v4858_v18  ;;  %5081 = vst.msk [vmem:[#allocation6 + $0x4a] sm:$0x3] %vm700_vm2, %v4876_v26  ;;  %v4936_v53 = vrot.slane %v4689_v29, %v6920_v32  ;;  %v4910_v54 = vcombine.high %v4902_v27, %v4902_v27  ;;  %v4926_v55 = vrot.slane %v4912_v41, %v6920_v32 }
  0x3f   : > { %5082 = vst.msk [vmem:[#allocation6 + $0x4c] sm:$0x3] %vm700_vm2, %v7046_v25  ;;  %5079 = vst.msk [vmem:[#allocation6 + $0x46] sm:$0x3] %vm700_vm2, %v4860_v30  ;;  %v4927_v56 = vcombine.high %v4919_v42, %v4919_v42  ;;  %v4943_v57 = vrot.slane %v4929_v43, %v6920_v32  ;;  %v4894_v58 = vcombine.high %v4892_v50, %v4892_v50 }
  0x40   : > { %8898 = vst [vmem:[#allocation14_spill] sm:$0xff] %v7064_v31  ;;  %5084 = vst.msk [vmem:[#allocation6 + $0x50] sm:$0x3] %vm700_vm2, %v4885_v37  ;;  %v4944_v59 = vcombine.high %v4936_v53, %v4936_v53  ;;  %v4690_v60 = vadd.f32 %v4674_v48, %v4658_v39  ;;  %v4691_v22 = vadd.f32 %v4675_v49, %v4659_v47 }
  0x41   : > { %5088 = vst.msk [vmem:[#allocation6 + $0x58] sm:$0x3] %vm700_vm2, %v4902_v27  ;;  %5092 = vst.msk [vmem:[#allocation6 + $0x60] sm:$0x3] %vm700_vm2, %v4919_v42  ;;  %v4928_v61 = vcombine.high %v4926_v55, %v4926_v55  ;;  %v4945_v62 = vcombine.high %v4943_v57, %v4943_v57 }
  0x42   : > { %5085 = vst.msk [vmem:[#allocation6 + $0x52] sm:$0x3] %vm700_vm2, %v4893_v52  ;;  %5086 = vst.msk [vmem:[#allocation6 + $0x54] sm:$0x3] %vm700_vm2, %v4892_v50  ;;  %v4946_v63 = vcombine.high %v4690_v60, %v4690_v60  ;;  %v4953_v0 = vrot.slane %v4690_v60, %v6920_v32  ;;  %v4963_v23 = vcombine.high %v4691_v22, %v4691_v22 }
  0x43   : > { %5090 = vst.msk [vmem:[#allocation6 + $0x5c] sm:$0x3] %vm700_vm2, %v7064_v31  ;;  %5096 = vst.msk [vmem:[#allocation6 + $0x68] sm:$0x3] %vm700_vm2, %v4936_v53  ;;  %v4970_v1 = vrot.slane %v4691_v22, %v6920_v32  ;;  %6274 = vmatmul.mubr.msk.bf16.gmra.mxu0 %vm452_vm1, %v6940_v40  ;;  %v820_v40 = vld [vmem:[%s8879_s3] sm:$0x3] }
  0x44   : > { %5089 = vst.msk [vmem:[#allocation6 + $0x5a] sm:$0x3] %vm700_vm2, %v4910_v54  ;;  %5093 = vst.msk [vmem:[#allocation6 + $0x62] sm:$0x3] %vm700_vm2, %v4927_v56  ;;  %v4960_v2 = vrot.slane %v4946_v63, %v6920_v32  ;;  %v4961_v3 = vcombine.high %v4953_v0, %v4953_v0  ;;  %v4977_v4 = vrot.slane %v4963_v23, %v6920_v32  ;;  %6277 = vmatprep.mubr.msk.bf16.mxu0 %vm452_vm1, %v6948_v44 }
  0x45   : > { %5094 = vst.msk [vmem:[#allocation6 + $0x64] sm:$0x3] %vm700_vm2, %v4926_v55  ;;  %5098 = vst.msk [vmem:[#allocation6 + $0x6c] sm:$0x3] %vm700_vm2, %v4943_v57  ;;  %v4978_v5 = vcombine.high %v4970_v1, %v4970_v1  ;;  %v920_v44 = vsel %vm501_vm0, %v5901_v36, 0  ;;  %6613 = vmatprep.subr.msk.bf16.mxu0 %vm501_vm0, %v820_v40  ;;  %v1394_v22 = vsel %vm501_vm0, %v5934_v12, 0 }
  0x46   : > { %5087 = vst.msk [vmem:[#allocation6 + $0x56] sm:$0x3] %vm700_vm2, %v4894_v58  ;;  %5097 = vst.msk [vmem:[#allocation6 + $0x6a] sm:$0x3] %vm700_vm2, %v4944_v59  ;;  %v4962_v6 = vcombine.high %v4960_v2, %v4960_v2  ;;  %v4979_v7 = vcombine.high %v4977_v4, %v4977_v4  ;;  %6286 = vmatpush3.bf16.msra.mxu1 %v920_v44  ;;  %v7211_v36 = vld [vmem:[%s8879_s3 + $0x8] sm:$0x3] }
  0x47   : > { %5095 = vst.msk [vmem:[#allocation6 + $0x66] sm:$0x3] %vm700_vm2, %v4928_v61  ;;  %5099 = vst.msk [vmem:[#allocation6 + $0x6e] sm:$0x3] %vm700_vm2, %v4945_v62  ;;  %6614 = vmatprep.subr.msk.bf16.mxu1 %vm501_vm0, %v5934_v12 }
  0x48   : > { %5100 = vst.msk [vmem:[#allocation6 + $0x70] sm:$0x3] %vm700_vm2, %v4953_v0  ;;  %5104 = vst.msk [vmem:[#allocation6 + $0x78] sm:$0x3] %vm700_vm2, %v4970_v1 }
  0x49   : > { %5101 = vst.msk [vmem:[#allocation6 + $0x72] sm:$0x3] %vm700_vm2, %v4961_v3  ;;  %5102 = vst.msk [vmem:[#allocation6 + $0x74] sm:$0x3] %vm700_vm2, %v4960_v2 }
  0x4a   : > { %5105 = vst.msk [vmem:[#allocation6 + $0x7a] sm:$0x3] %vm700_vm2, %v4978_v5  ;;  %5106 = vst.msk [vmem:[#allocation6 + $0x7c] sm:$0x3] %vm700_vm2, %v4977_v4  ;;  %v1688_v5 = vsel %vm501_vm0, %v5951_v13, 0 }
  0x4b   : > { %5103 = vst.msk [vmem:[#allocation6 + $0x76] sm:$0x3] %vm700_vm2, %v4962_v6  ;;  %5107 = vst.msk [vmem:[#allocation6 + $0x7e] sm:$0x3] %vm700_vm2, %v4979_v7  ;;  %6278 = vmatmul.mubr.msk.bf16.gmra.mxu0 %vm452_vm1, %v6951_v45  ;;  %v1132_v45 = vsel %vm501_vm0, %v820_v40, 0 }
  0x4c   : > { %6281 = vmatprep.mubr.msk.bf16.mxu0 %vm452_vm1, %v6954_v46  ;;  %698 = vst.msk [vmem:[#allocation2] sm:$0xff] %vm452_vm1, %v6762_v35  ;;  %699 = vst.msk [vmem:[#allocation2 + $0x8] sm:$0xff] %vm452_vm1, %v6762_v35  ;;  %6320 = vmatpush3.bf16.msra.mxu0 %v1132_v45  ;;  %v7216_v40 = vld [vmem:[%s8879_s3 + $0xa] sm:$0x3] }
  0x4d   : > { %701 = vst.msk [vmem:[#allocation2 + $0x10] sm:$0x3] %vm700_vm2, %v6762_v35  ;;  %705 = vst.msk [vmem:[#allocation2 + $0x1a8] sm:$0x3] %vm700_vm2, %v6762_v35  ;;  %6615 = vmatprep.subr.msk.bf16.mxu0 %vm501_vm0, %v5951_v13 }
  0x4e   : > { %703 = vst.msk [vmem:[#allocation2 + $0x198] sm:$0xff] %vm452_vm1, %v6762_v35  ;;  %704 = vst.msk [vmem:[#allocation2 + $0x1a0] sm:$0xff] %vm452_vm1, %v6762_v35 }
  0x4f   : > { %708 = vst.msk [vmem:[#allocation2 + $0x18] sm:$0x1] %vm707_vm3, %v6762_v35  ;;  %709 = vst.msk [vmem:[#allocation2 + $0x30] sm:$0x1] %vm707_vm3, %v6762_v35 }
  0x50   : > { %710 = vst.msk [vmem:[#allocation2 + $0x48] sm:$0x1] %vm707_vm3, %v6762_v35  ;;  %711 = vst.msk [vmem:[#allocation2 + $0x60] sm:$0x1] %vm707_vm3, %v6762_v35 }
  0x51   : > { %712 = vst.msk [vmem:[#allocation2 + $0x78] sm:$0x1] %vm707_vm3, %v6762_v35  ;;  %713 = vst.msk [vmem:[#allocation2 + $0x90] sm:$0x1] %vm707_vm3, %v6762_v35 }
  0x52   : > { %714 = vst.msk [vmem:[#allocation2 + $0xa8] sm:$0x1] %vm707_vm3, %v6762_v35  ;;  %715 = vst.msk [vmem:[#allocation2 + $0xc0] sm:$0x1] %vm707_vm3, %v6762_v35 }
  0x53   : > { %6282 = vmatmul.mubr.msk.bf16.gmra.mxu0 %vm452_vm1, %v6962_v51  ;;  %716 = vst.msk [vmem:[#allocation2 + $0xd8] sm:$0x1] %vm707_vm3, %v6762_v35  ;;  %717 = vst.msk [vmem:[#allocation2 + $0xf0] sm:$0x1] %vm707_vm3, %v6762_v35  ;;  %v821_v46 = vld [vmem:[#allocation2 + $0x1] sm:$0xff] }
  0x54   : > { %718 = vst.msk [vmem:[#allocation2 + $0x108] sm:$0x1] %vm707_vm3, %v6762_v35  ;;  %719 = vst.msk [vmem:[#allocation2 + $0x120] sm:$0x1] %vm707_vm3, %v6762_v35  ;;  %v822_v51 = vld [vmem:[#allocation2 + $0x9] sm:$0xff]  ;;  %v772_v8 = vld [vmem:[#allocation2] sm:$0xff] }
  0x55   : > { %720 = vst.msk [vmem:[#allocation2 + $0x138] sm:$0x1] %vm707_vm3, %v6762_v35  ;;  %721 = vst.msk [vmem:[#allocation2 + $0x150] sm:$0x1] %vm707_vm3, %v6762_v35  ;;  %v853_v9 = vpack.c.bf16 %v822_v51, %v821_v46  ;;  %v773_v10 = vld [vmem:[#allocation2 + $0x8] sm:$0xff] }
  0x56   : > { %722 = vst.msk [vmem:[#allocation2 + $0x168] sm:$0x1] %vm707_vm3, %v6762_v35  ;;  %723 = vst.msk [vmem:[#allocation2 + $0x180] sm:$0x1] %vm707_vm3, %v6762_v35  ;;  %v804_v11 = vpack.c.bf16 %v773_v10, %v772_v8 }
  0x57   : > { %724 = vst.msk [vmem:[#allocation2 + $0x29] sm:$0x1] %vm707_vm3, %v6762_v35  ;;  %725 = vst.msk [vmem:[#allocation2 + $0x41] sm:$0x1] %vm707_vm3, %v6762_v35  ;;  %6287 = vmatprep.mubr.msk.bf16.mxu1 %vm452_vm1, %v853_v9 }
  0x58   : > { %726 = vst.msk [vmem:[#allocation2 + $0x59] sm:$0x1] %vm707_vm3, %v6762_v35  ;;  %727 = vst.msk [vmem:[#allocation2 + $0x71] sm:$0x1] %vm707_vm3, %v6762_v35  ;;  %6321 = vmatprep.mubr.msk.bf16.mxu0 %vm452_vm1, %v804_v11 }
  0x59   : > { %728 = vst.msk [vmem:[#allocation2 + $0x89] sm:$0x1] %vm707_vm3, %v6762_v35  ;;  %729 = vst.msk [vmem:[#allocation2 + $0xa1] sm:$0x1] %vm707_vm3, %v6762_v35 }
  0x5a   : > { %730 = vst.msk [vmem:[#allocation2 + $0xb9] sm:$0x1] %vm707_vm3, %v6762_v35  ;;  %731 = vst.msk [vmem:[#allocation2 + $0xd1] sm:$0x1] %vm707_vm3, %v6762_v35 }
  0x5b   : > { %732 = vst.msk [vmem:[#allocation2 + $0xe9] sm:$0x1] %vm707_vm3, %v6762_v35  ;;  %733 = vst.msk [vmem:[#allocation2 + $0x101] sm:$0x1] %vm707_vm3, %v6762_v35 }
  0x5c   : > { %734 = vst.msk [vmem:[#allocation2 + $0x119] sm:$0x1] %vm707_vm3, %v6762_v35  ;;  %735 = vst.msk [vmem:[#allocation2 + $0x131] sm:$0x1] %vm707_vm3, %v6762_v35 }
  0x5d   : > { %736 = vst.msk [vmem:[#allocation2 + $0x149] sm:$0x1] %vm707_vm3, %v6762_v35  ;;  %737 = vst.msk [vmem:[#allocation2 + $0x161] sm:$0x1] %vm707_vm3, %v6762_v35 }
  0x5e   : > { %738 = vst.msk [vmem:[#allocation2 + $0x179] sm:$0x1] %vm707_vm3, %v6762_v35  ;;  %739 = vst.msk [vmem:[#allocation2 + $0x191] sm:$0x1] %vm707_vm3, %v6762_v35 }
  0xdb   : > { %v6255_v15 = vpop.f32.mrf.mxu0 }
  0xdc   : > { %v548_v16 = vadd.f32 %v6255_v15, %v7172_v14 }
  0xdd   : > { %v539_v17 = vpop.f32.mrf.mxu0 }
  0xde   : > { %v668_v18 = vmax.f32 %v548_v16, 0.0  ;;  %v540_v19 = vadd.f32 %v7172_v14, %v539_v17 }
  0xdf   : > { %v6256_v20 = vpop.f32.mrf.mxu0 }
  0xe0   : > { %742 = vst.msk [vmem:[#allocation2 + $0x31] sm:$0xff] %vm452_vm1, %v668_v18  ;;  %v666_v24 = vmax.f32 %v540_v19, 0.0  ;;  %v551_v26 = vadd.f32 %v6256_v20, %v7172_v14 }
  0xe1   : > { %v542_v28 = vpop.f32.mrf.mxu0 }
  0xe2   : > { %740 = vst.msk [vmem:[#allocation2 + $0x19] sm:$0xff] %vm452_vm1, %v666_v24  ;;  %v669_v29 = vmax.f32 %v551_v26, 0.0  ;;  %v543_v30 = vadd.f32 %v7172_v14, %v542_v28 }
  0xe3   : > { %v6259_v34 = vpop.f32.mrf.mxu0 }
  0xe4   : > { %743 = vst.msk [vmem:[#allocation2 + $0x39] sm:$0xff] %vm452_vm1, %v669_v29  ;;  %v667_v37 = vmax.f32 %v543_v30, 0.0  ;;  %v564_v38 = vadd.f32 %v6259_v34, %v7172_v14 }
  0xe5   : > { %v555_v39 = vpop.f32.mrf.mxu0 }
  0xe6   : > { %741 = vst.msk [vmem:[#allocation2 + $0x21] sm:$0xff] %vm452_vm1, %v667_v37  ;;  %v672_v27 = vmax.f32 %v564_v38, 0.0  ;;  %v556_v41 = vadd.f32 %v7172_v14, %v555_v39 }
  0xe7   : > { %v6260_v42 = vpop.f32.mrf.mxu0  ;;  %v825_v1 = vld [vmem:[#allocation2 + $0x31] sm:$0xff] }
  0xe8   : > { %746 = vst.msk [vmem:[#allocation2 + $0x61] sm:$0xff] %vm452_vm1, %v672_v27  ;;  %v670_v43 = vmax.f32 %v556_v41, 0.0  ;;  %v567_v47 = vadd.f32 %v6260_v42, %v7172_v14  ;;  %v776_v4 = vld [vmem:[#allocation2 + $0x30] sm:$0xff] }
  0xe9   : > { %v558_v48 = vpop.f32.mrf.mxu0  ;;  %v823_v55 = vld [vmem:[#allocation2 + $0x19] sm:$0xff] }
  0xea   : > { %744 = vst.msk [vmem:[#allocation2 + $0x49] sm:$0xff] %vm452_vm1, %v670_v43  ;;  %v673_v49 = vmax.f32 %v567_v47, 0.0  ;;  %v559_v50 = vadd.f32 %v7172_v14, %v558_v48  ;;  %v774_v56 = vld [vmem:[#allocation2 + $0x18] sm:$0xff] }
  0xeb   : > { %v6263_v52 = vpop.f32.mrf.mxu0  ;;  %v826_v57 = vld [vmem:[#allocation2 + $0x39] sm:$0xff] }
  0xec   : > { %747 = vst.msk [vmem:[#allocation2 + $0x69] sm:$0xff] %vm452_vm1, %v673_v49  ;;  %v671_v53 = vmax.f32 %v559_v50, 0.0  ;;  %v580_v54 = vadd.f32 %v6263_v52, %v7172_v14  ;;  %v777_v61 = vld [vmem:[#allocation2 + $0x38] sm:$0xff]  ;;  %v7197_v3 = vpack.c.bf16 %v826_v57, %v825_v1 }
  0xed   : > { %v571_v58 = vpop.f32.mrf.mxu0  ;;  %v824_v59 = vld [vmem:[#allocation2 + $0x21] sm:$0xff]  ;;  %v7206_v35 = vpack.c.bf16 %v777_v61, %v776_v4 }
  0xee   : > { %v775_v60 = vld [vmem:[#allocation2 + $0x20] sm:$0xff]  ;;  %745 = vst.msk [vmem:[#allocation2 + $0x51] sm:$0xff] %vm452_vm1, %v671_v53  ;;  %v676_v62 = vmax.f32 %v580_v54, 0.0  ;;  %v572_v63 = vadd.f32 %v7172_v14, %v571_v58  ;;  %v7193_v0 = vpack.c.bf16 %v824_v59, %v823_v55 }
  0xef   : > { %v7195_v23 = vpack.c.bf16 %v775_v60, %v774_v56  ;;  %v6264_v2 = vpop.f32.mrf.mxu0  ;;  %v829_v26 = vld [vmem:[#allocation2 + $0x61] sm:$0xff] }
  0xf0   : > { %750 = vst.msk [vmem:[#allocation2 + $0x91] sm:$0xff] %vm452_vm1, %v676_v62  ;;  %v674_v6 = vmax.f32 %v572_v63, 0.0  ;;  %v583_v7 = vadd.f32 %v6264_v2, %v7172_v14  ;;  %6288 = vmatmul.mubr.msk.bf16.vlgmr.msra.gmra.mxu1 %vm452_vm1, %v7193_v0  ;;  %v780_v28 = vld [vmem:[#allocation2 + $0x60] sm:$0xff] }
  0xf1   : > { %6322 = vmatmul.mubr.msk.bf16.vlgmr.msra.gmra.mxu0 %vm452_vm1, %v7195_v23  ;;  %6354 = vmatpush3.bf16.msra.mxu1 %v1394_v22  ;;  %v574_v44 = vpop.f32.mrf.mxu0  ;;  %v827_v10 = vld [vmem:[#allocation2 + $0x49] sm:$0xff] }
  0xf2   : > { %6291 = vmatprep.mubr.msk.bf16.mxu1 %vm452_vm1, %v7197_v3  ;;  %748 = vst.msk [vmem:[#allocation2 + $0x79] sm:$0xff] %vm452_vm1, %v674_v6  ;;  %v677_v45 = vmax.f32 %v583_v7, 0.0  ;;  %v575_v46 = vadd.f32 %v7172_v14, %v574_v44  ;;  %6325 = vmatprep.mubr.msk.bf16.mxu0 %vm452_vm1, %v7206_v35  ;;  %v778_v16 = vld [vmem:[#allocation2 + $0x48] sm:$0xff] }
  0xf3   : > { %6388 = vmatpush3.bf16.msra.mxu0 %v1688_v5  ;;  %v6267_v51 = vpop.f32.mrf.mxu0  ;;  %6616 = vmatprep.subr.msk.bf16.mxu1 %vm501_vm0, %v7211_v36  ;;  %v830_v11 = vld [vmem:[#allocation2 + $0x69] sm:$0xff] }
  0xf4   : > { %6617 = vmatprep.subr.msk.bf16.mxu0 %vm501_vm0, %v7216_v40  ;;  %751 = vst.msk [vmem:[#allocation2 + $0x99] sm:$0xff] %vm452_vm1, %v677_v45  ;;  %v675_v8 = vmax.f32 %v575_v46, 0.0  ;;  %v596_v9 = vadd.f32 %v6267_v51, %v7172_v14  ;;  %v781_v12 = vld [vmem:[#allocation2 + $0x68] sm:$0xff]  ;;  %v7236_v30 = vpack.c.bf16 %v830_v11, %v829_v26 }
  0xf5   : > { %v587_v13 = vpop.f32.mrf.mxu0  ;;  %v828_v15 = vld [vmem:[#allocation2 + $0x51] sm:$0xff]  ;;  %v7238_v34 = vpack.c.bf16 %v781_v12, %v780_v28 }
  0xf6   : > { %v779_v17 = vld [vmem:[#allocation2 + $0x50] sm:$0xff]  ;;  %749 = vst.msk [vmem:[#allocation2 + $0x81] sm:$0xff] %vm452_vm1, %v675_v8  ;;  %v680_v18 = vmax.f32 %v596_v9, 0.0  ;;  %v588_v19 = vadd.f32 %v7172_v14, %v587_v13  ;;  %v7232_v20 = vpack.c.bf16 %v828_v15, %v827_v10 }
  0xf7   : > { %v7234_v24 = vpack.c.bf16 %v779_v17, %v778_v16  ;;  %v6268_v29 = vpop.f32.mrf.mxu0  ;;  %v833_v60 = vld [vmem:[#allocation2 + $0x91] sm:$0xff] }
  0xf8   : > { %754 = vst.msk [vmem:[#allocation2 + $0xc1] sm:$0xff] %vm452_vm1, %v680_v18  ;;  %v678_v37 = vmax.f32 %v588_v19, 0.0  ;;  %v599_v38 = vadd.f32 %v6268_v29, %v7172_v14  ;;  %6292 = vmatmul.mubr.msk.bf16.gmra.mxu1 %vm452_vm1, %v7232_v20  ;;  %v784_v22 = vld [vmem:[#allocation2 + $0x90] sm:$0xff] }
  0xf9   : > { %6326 = vmatmul.mubr.msk.bf16.gmra.mxu0 %vm452_vm1, %v7234_v24  ;;  %v590_v39 = vpop.f32.mrf.mxu0  ;;  %6295 = vmatprep.mubr.msk.bf16.mxu1 %vm452_vm1, %v7236_v30  ;;  %v831_v48 = vld [vmem:[#allocation2 + $0x79] sm:$0xff] }
  0xfa   : > { %6329 = vmatprep.mubr.msk.bf16.mxu0 %vm452_vm1, %v7238_v34  ;;  %752 = vst.msk [vmem:[#allocation2 + $0xa9] sm:$0xff] %vm452_vm1, %v678_v37  ;;  %v681_v27 = vmax.f32 %v599_v38, 0.0  ;;  %v591_v41 = vadd.f32 %v7172_v14, %v590_v39  ;;  %v782_v54 = vld [vmem:[#allocation2 + $0x78] sm:$0xff] }
  0xfb   : > { %v6271_v42 = vpop.f32.mrf.mxu0  ;;  %v834_v49 = vld [vmem:[#allocation2 + $0x99] sm:$0xff] }
  0xfc   : > { %755 = vst.msk [vmem:[#allocation2 + $0xc9] sm:$0xff] %vm452_vm1, %v681_v27  ;;  %v679_v43 = vmax.f32 %v591_v41, 0.0  ;;  %v612_v47 = vadd.f32 %v6271_v42, %v7172_v14  ;;  %v785_v50 = vld [vmem:[#allocation2 + $0x98] sm:$0xff]  ;;  %v7260_v62 = vpack.c.bf16 %v834_v49, %v833_v60 }
  0xfd   : > { %v603_v52 = vpop.f32.mrf.mxu0  ;;  %v832_v53 = vld [vmem:[#allocation2 + $0x81] sm:$0xff]  ;;  %v7262_v63 = vpack.c.bf16 %v785_v50, %v784_v22 }
  0xfe   : > { %v783_v55 = vld [vmem:[#allocation2 + $0x80] sm:$0xff]  ;;  %753 = vst.msk [vmem:[#allocation2 + $0xb1] sm:$0xff] %vm452_vm1, %v679_v43  ;;  %v684_v56 = vmax.f32 %v612_v47, 0.0  ;;  %v604_v57 = vadd.f32 %v7172_v14, %v603_v52  ;;  %v7256_v58 = vpack.c.bf16 %v832_v53, %v831_v48 }
  0xff   : > { %v7258_v59 = vpack.c.bf16 %v783_v55, %v782_v54  ;;  %v6272_v61 = vpop.f32.mrf.mxu0  ;;  %v837_v18 = vld [vmem:[#allocation2 + $0xc1] sm:$0xff] }
 0x100   : > { %758 = vst.msk [vmem:[#allocation2 + $0xf1] sm:$0xff] %vm452_vm1, %v684_v56  ;;  %v682_v1 = vmax.f32 %v604_v57, 0.0  ;;  %v615_v2 = vadd.f32 %v6272_v61, %v7172_v14  ;;  %6296 = vmatmul.mubr.msk.bf16.gmra.mxu1 %vm452_vm1, %v7256_v58  ;;  %v788_v19 = vld [vmem:[#allocation2 + $0xc0] sm:$0xff] }
 0x101   : > { %6330 = vmatmul.mubr.msk.bf16.gmra.mxu0 %vm452_vm1, %v7258_v59  ;;  %v606_v4 = vpop.f32.mrf.mxu0  ;;  %6299 = vmatprep.mubr.msk.bf16.mxu1 %vm452_vm1, %v7260_v62  ;;  %v835_v46 = vld [vmem:[#allocation2 + $0xa9] sm:$0xff] }
 0x102   : > { %6333 = vmatprep.mubr.msk.bf16.mxu0 %vm452_vm1, %v7262_v63  ;;  %756 = vst.msk [vmem:[#allocation2 + $0xd9] sm:$0xff] %vm452_vm1, %v682_v1  ;;  %v685_v5 = vmax.f32 %v615_v2, 0.0  ;;  %v607_v6 = vadd.f32 %v7172_v14, %v606_v4  ;;  %v786_v11 = vld [vmem:[#allocation2 + $0xa8] sm:$0xff] }
 0x103   : > { %v6275_v7 = vpop.f32.mrf.mxu0  ;;  %v838_v51 = vld [vmem:[#allocation2 + $0xc9] sm:$0xff] }
 0x104   : > { %759 = vst.msk [vmem:[#allocation2 + $0xf9] sm:$0xff] %vm452_vm1, %v685_v5  ;;  %v683_v44 = vmax.f32 %v607_v6, 0.0  ;;  %v628_v45 = vadd.f32 %v6275_v7, %v7172_v14  ;;  %v789_v8 = vld [vmem:[#allocation2 + $0xc8] sm:$0xff]  ;;  %v7284_v28 = vpack.c.bf16 %v838_v51, %v837_v18 }
 0x105   : > { %v619_v9 = vpop.f32.mrf.mxu0  ;;  %v836_v10 = vld [vmem:[#allocation2 + $0xb1] sm:$0xff]  ;;  %v7286_v29 = vpack.c.bf16 %v789_v8, %v788_v19 }
 0x106   : > { %v787_v12 = vld [vmem:[#allocation2 + $0xb0] sm:$0xff]  ;;  %757 = vst.msk [vmem:[#allocation2 + $0xe1] sm:$0xff] %vm452_vm1, %v683_v44  ;;  %v688_v13 = vmax.f32 %v628_v45, 0.0  ;;  %v620_v15 = vadd.f32 %v7172_v14, %v619_v9  ;;  %v7280_v16 = vpack.c.bf16 %v836_v10, %v835_v46 }
 0x107   : > { %v7282_v17 = vpack.c.bf16 %v787_v12, %v786_v11  ;;  %v6276_v26 = vpop.f32.mrf.mxu0  ;;  %v841_v61 = vld [vmem:[#allocation2 + $0xf1] sm:$0xff] }
 0x108   : > { %762 = vst.msk [vmem:[#allocation2 + $0x121] sm:$0xff] %vm452_vm1, %v688_v13  ;;  %v686_v37 = vmax.f32 %v620_v15, 0.0  ;;  %v631_v38 = vadd.f32 %v6276_v26, %v7172_v14  ;;  %6300 = vmatmul.mubr.msk.bf16.gmra.mxu1 %vm452_vm1, %v7280_v16  ;;  %v792_v1 = vld [vmem:[#allocation2 + $0xf0] sm:$0xff] }
 0x109   : > { %6334 = vmatmul.mubr.msk.bf16.gmra.mxu0 %vm452_vm1, %v7282_v17  ;;  %v622_v39 = vpop.f32.mrf.mxu0  ;;  %6303 = vmatprep.mubr.msk.bf16.mxu1 %vm452_vm1, %v7284_v28  ;;  %v839_v48 = vld [vmem:[#allocation2 + $0xd9] sm:$0xff] }
 0x10a   : > { %6337 = vmatprep.mubr.msk.bf16.mxu0 %vm452_vm1, %v7286_v29  ;;  %760 = vst.msk [vmem:[#allocation2 + $0x109] sm:$0xff] %vm452_vm1, %v686_v37  ;;  %v689_v27 = vmax.f32 %v631_v38, 0.0  ;;  %v623_v41 = vadd.f32 %v7172_v14, %v622_v39  ;;  %v790_v54 = vld [vmem:[#allocation2 + $0xd8] sm:$0xff] }
 0x10b   : > { %v6279_v42 = vpop.f32.mrf.mxu0  ;;  %v842_v49 = vld [vmem:[#allocation2 + $0xf9] sm:$0xff] }
 0x10c   : > { %763 = vst.msk [vmem:[#allocation2 + $0x129] sm:$0xff] %vm452_vm1, %v689_v27  ;;  %v687_v43 = vmax.f32 %v623_v41, 0.0  ;;  %v644_v47 = vadd.f32 %v6279_v42, %v7172_v14  ;;  %v793_v50 = vld [vmem:[#allocation2 + $0xf8] sm:$0xff]  ;;  %v7308_v4 = vpack.c.bf16 %v842_v49, %v841_v61 }
 0x10d   : > { %v635_v52 = vpop.f32.mrf.mxu0  ;;  %v840_v53 = vld [vmem:[#allocation2 + $0xe1] sm:$0xff]  ;;  %v7310_v5 = vpack.c.bf16 %v793_v50, %v792_v1 }
 0x10e   : > { %v791_v55 = vld [vmem:[#allocation2 + $0xe0] sm:$0xff]  ;;  %761 = vst.msk [vmem:[#allocation2 + $0x111] sm:$0xff] %vm452_vm1, %v687_v43  ;;  %v692_v56 = vmax.f32 %v644_v47, 0.0  ;;  %v636_v57 = vadd.f32 %v7172_v14, %v635_v52  ;;  %v7304_v60 = vpack.c.bf16 %v840_v53, %v839_v48 }
 0x10f   : > { %v7306_v22 = vpack.c.bf16 %v791_v55, %v790_v54  ;;  %v6280_v2 = vpop.f32.mrf.mxu0  ;;  %v845_v27 = vld [vmem:[#allocation2 + $0x121] sm:$0xff] }
 0x110   : > { %766 = vst.msk [vmem:[#allocation2 + $0x151] sm:$0xff] %vm452_vm1, %v692_v56  ;;  %v690_v6 = vmax.f32 %v636_v57, 0.0  ;;  %v647_v7 = vadd.f32 %v6280_v2, %v7172_v14  ;;  %6304 = vmatmul.mubr.msk.bf16.gmra.mxu1 %vm452_vm1, %v7304_v60  ;;  %v796_v41 = vld [vmem:[#allocation2 + $0x120] sm:$0xff] }
 0x111   : > { %6338 = vmatmul.mubr.msk.bf16.gmra.mxu0 %vm452_vm1, %v7306_v22  ;;  %v638_v44 = vpop.f32.mrf.mxu0  ;;  %6307 = vmatprep.mubr.msk.bf16.mxu1 %vm452_vm1, %v7308_v4  ;;  %v843_v10 = vld [vmem:[#allocation2 + $0x109] sm:$0xff] }
 0x112   : > { %6341 = vmatprep.mubr.msk.bf16.mxu0 %vm452_vm1, %v7310_v5  ;;  %764 = vst.msk [vmem:[#allocation2 + $0x139] sm:$0xff] %vm452_vm1, %v690_v6  ;;  %v693_v45 = vmax.f32 %v647_v7, 0.0  ;;  %v639_v46 = vadd.f32 %v7172_v14, %v638_v44  ;;  %v794_v18 = vld [vmem:[#allocation2 + $0x108] sm:$0xff] }
 0x113   : > { %v6283_v51 = vpop.f32.mrf.mxu0  ;;  %v846_v11 = vld [vmem:[#allocation2 + $0x129] sm:$0xff] }
 0x114   : > { %767 = vst.msk [vmem:[#allocation2 + $0x159] sm:$0xff] %vm452_vm1, %v693_v45  ;;  %v691_v8 = vmax.f32 %v639_v46, 0.0  ;;  %v660_v9 = vadd.f32 %v6283_v51, %v7172_v14  ;;  %v797_v12 = vld [vmem:[#allocation2 + $0x128] sm:$0xff]  ;;  %v7332_v43 = vpack.c.bf16 %v846_v11, %v845_v27  ;;  %v1300_v27 = vld [vmem:[#allocation2 + $0x3a] sm:$0xff] }
 0x115   : > { %v651_v13 = vpop.f32.mrf.mxu0  ;;  %v844_v15 = vld [vmem:[#allocation2 + $0x111] sm:$0xff]  ;;  %v7334_v47 = vpack.c.bf16 %v797_v12, %v796_v41  ;;  %v1295_v51 = vld [vmem:[#allocation2 + $0x2] sm:$0xff] }
 0x116   : > { %v795_v19 = vld [vmem:[#allocation2 + $0x110] sm:$0xff]  ;;  %765 = vst.msk [vmem:[#allocation2 + $0x141] sm:$0xff] %vm452_vm1, %v691_v8  ;;  %v696_v26 = vmax.f32 %v660_v9, 0.0  ;;  %v652_v37 = vadd.f32 %v7172_v14, %v651_v13  ;;  %v7328_v38 = vpack.c.bf16 %v844_v15, %v843_v10 }
 0x117   : > { %v7330_v39 = vpack.c.bf16 %v795_v19, %v794_v18  ;;  %v6284_v42 = vpop.f32.mrf.mxu0  ;;  %v849_v44 = vld [vmem:[#allocation2 + $0x151] sm:$0xff]  ;;  %v1297_v19 = vld [vmem:[#allocation2 + $0x1a] sm:$0xff] }
 0x118   : > { %770 = vst.msk [vmem:[#allocation2 + $0x181] sm:$0xff] %vm452_vm1, %v696_v26  ;;  %v694_v48 = vmax.f32 %v652_v37, 0.0  ;;  %v663_v49 = vadd.f32 %v6284_v42, %v7172_v14  ;;  %6308 = vmatmul.mubr.msk.bf16.gmra.mxu1 %vm452_vm1, %v7328_v38  ;;  %v800_v45 = vld [vmem:[#allocation2 + $0x150] sm:$0xff]  ;;  %v1298_v26 = vld [vmem:[#allocation2 + $0x22] sm:$0xff]  ;;  %v1982_v42 = vsel %vm501_vm0, %v7211_v36, 0 }
 0x119   : > { %6342 = vmatmul.mubr.msk.bf16.gmra.mxu0 %vm452_vm1, %v7330_v39  ;;  %v654_v50 = vpop.f32.mrf.mxu0  ;;  %6311 = vmatprep.mubr.msk.bf16.mxu1 %vm452_vm1, %v7332_v43  ;;  %v847_v55 = vld [vmem:[#allocation2 + $0x139] sm:$0xff]  ;;  %v1296_v8 = vld [vmem:[#allocation2 + $0xa] sm:$0xff]  ;;  %v7377_v41 = vpack.c.bf16 %v1298_v26, %v1297_v19 }
 0x11a   : > { %6345 = vmatprep.mubr.msk.bf16.mxu0 %vm452_vm1, %v7334_v47  ;;  %768 = vst.msk [vmem:[#allocation2 + $0x169] sm:$0xff] %vm452_vm1, %v694_v48  ;;  %v697_v52 = vmax.f32 %v663_v49, 0.0  ;;  %v655_v53 = vadd.f32 %v7172_v14, %v654_v50  ;;  %v798_v1 = vld [vmem:[#allocation2 + $0x138] sm:$0xff]  ;;  %v1327_v13 = vpack.c.bf16 %v1296_v8, %v1295_v51  ;;  %v2276_v49 = vsel %vm501_vm0, %v7216_v40, 0  ;;  %v7397_v36 = vld [vmem:[%s8879_s3 + $0xe] sm:$0x3] }
 0x11b   : > { %v850_v56 = vld [vmem:[#allocation2 + $0x159] sm:$0xff]  ;;  %v1301_v40 = vld [vmem:[#allocation2 + $0x4a] sm:$0xff]  ;;  %v1311_v8 = vld [vmem:[#allocation2 + $0xc2] sm:$0xff] }
 0x11c   : > { %771 = vst.msk [vmem:[#allocation2 + $0x189] sm:$0xff] %vm452_vm1, %v697_v52  ;;  %v695_v54 = vmax.f32 %v655_v53, 0.0  ;;  %v801_v57 = vld [vmem:[#allocation2 + $0x158] sm:$0xff]  ;;  %v7354_v46 = vpack.c.bf16 %v850_v56, %v849_v44  ;;  %v1303_v52 = vld [vmem:[#allocation2 + $0x62] sm:$0xff]  ;;  %v1304_v53 = vld [vmem:[#allocation2 + $0x6a] sm:$0xff] }
 0x11d   : > { %v848_v61 = vld [vmem:[#allocation2 + $0x141] sm:$0xff]  ;;  %v7356_v14 = vpack.c.bf16 %v801_v57, %v800_v45  ;;  %v1299_v37 = vld [vmem:[#allocation2 + $0x32] sm:$0xff]  ;;  %v1309_v45 = vld [vmem:[#allocation2 + $0xaa] sm:$0xff] }
 0x11e   : > { %v799_v2 = vld [vmem:[#allocation2 + $0x140] sm:$0xff]  ;;  %769 = vst.msk [vmem:[#allocation2 + $0x171] sm:$0xff] %vm452_vm1, %v695_v54  ;;  %v7350_v6 = vpack.c.bf16 %v848_v61, %v847_v55  ;;  %v7381_v48 = vpack.c.bf16 %v1300_v27, %v1299_v37  ;;  %v1302_v50 = vld [vmem:[#allocation2 + $0x52] sm:$0xff]  ;;  %v7409_v55 = vpack.c.bf16 %v1304_v53, %v1303_v52 }
 0x11f   : > { %v7352_v7 = vpack.c.bf16 %v799_v2, %v798_v1  ;;  %v7407_v54 = vpack.c.bf16 %v1302_v50, %v1301_v40  ;;  %v1305_v56 = vld [vmem:[#allocation2 + $0x7a] sm:$0xff]  ;;  %v1306_v57 = vld [vmem:[#allocation2 + $0x82] sm:$0xff]  ;;  %v1307_v61 = vld [vmem:[#allocation2 + $0x92] sm:$0xff] }
 0x120   : > { %6312 = vmatmul.mubr.msk.bf16.gmra.mxu1 %vm452_vm1, %v7350_v6  ;;  %v1308_v1 = vld [vmem:[#allocation2 + $0x9a] sm:$0xff]  ;;  %v7419_v2 = vpack.c.bf16 %v1306_v57, %v1305_v56  ;;  %v1310_v51 = vld [vmem:[#allocation2 + $0xb2] sm:$0xff]  ;;  %v1319_v40 = vld [vmem:[#allocation2 + $0x122] sm:$0xff] }
 0x121   : > { %6346 = vmatmul.mubr.msk.bf16.gmra.mxu0 %vm452_vm1, %v7352_v7  ;;  %6315 = vmatprep.mubr.msk.bf16.mxu1 %vm452_vm1, %v7354_v46  ;;  %v851_v9 = vld [vmem:[#allocation2 + $0x169] sm:$0xff]  ;;  %v7421_v44 = vpack.c.bf16 %v1308_v1, %v1307_v61  ;;  %v1315_v19 = vld [vmem:[#allocation2 + $0xf2] sm:$0xff]  ;;  %v1316_v26 = vld [vmem:[#allocation2 + $0xfa] sm:$0xff] }
 0x122   : > { %6349 = vmatprep.mubr.msk.bf16.mxu0 %vm452_vm1, %v7356_v14  ;;  %v802_v11 = vld [vmem:[#allocation2 + $0x168] sm:$0xff]  ;;  %v7445_v27 = vpack.c.bf16 %v1316_v26, %v1315_v19  ;;  %v1321_v56 = vld [vmem:[#allocation2 + $0x13a] sm:$0xff]  ;;  %v1323_v61 = vld [vmem:[#allocation2 + $0x152] sm:$0xff] }
 0x123   : > { %v1320_v50 = vld [vmem:[#allocation2 + $0x12a] sm:$0xff]  ;;  %v1322_v57 = vld [vmem:[#allocation2 + $0x142] sm:$0xff]  ;;  %v1324_v1 = vld [vmem:[#allocation2 + $0x15a] sm:$0xff] }
 0x124   : > { %v7457_v53 = vpack.c.bf16 %v1320_v50, %v1319_v40  ;;  %v6036_v40 = vld [vmem:[%s8879_s3 + $0x10] sm:$0x3] }
 0x125   : > { %v852_v10 = vld [vmem:[#allocation2 + $0x171] sm:$0xff] }
 0x126   : > { %v803_v12 = vld [vmem:[#allocation2 + $0x170] sm:$0xff]  ;;  %v7366_v15 = vpack.c.bf16 %v852_v10, %v851_v9  ;;  %v7431_v10 = vpack.c.bf16 %v1310_v51, %v1309_v45  ;;  %v1340_v45 = vpack.c.bf16 %v1322_v57, %v1321_v56  ;;  %v1341_v51 = vpack.c.bf16 %v1324_v1, %v1323_v61 }
 0x127   : > { %v7368_v18 = vpack.c.bf16 %v803_v12, %v802_v11  ;;  %v1312_v9 = vld [vmem:[#allocation2 + $0xca] sm:$0xff]  ;;  %v1313_v12 = vld [vmem:[#allocation2 + $0xda] sm:$0xff]  ;;  %v3159_v57 = vsel %vm501_vm0, %v6036_v40, 0 }
 0x128   : > { %6316 = vmatmul.mubr.msk.bf16.gmra.mxu1 %vm452_vm1, %v7366_v15  ;;  %v7433_v11 = vpack.c.bf16 %v1312_v9, %v1311_v8  ;;  %v1325_v8 = vld [vmem:[#allocation2 + $0x16a] sm:$0xff]  ;;  %v1326_v9 = vld [vmem:[#allocation2 + $0x172] sm:$0xff] }
 0x129   : > { %6350 = vmatmul.mubr.msk.bf16.gmra.mxu0 %vm452_vm1, %v7368_v18  ;;  %6355 = vmatprep.mubr.msk.bf16.mxu1 %vm452_vm1, %v1327_v13  ;;  %v1314_v13 = vld [vmem:[#allocation2 + $0xe2] sm:$0xff]  ;;  %v1342_v19 = vpack.c.bf16 %v1326_v9, %v1325_v8 }
 0x12a   : > { %6389 = vmatprep.mubr.msk.bf16.mxu0 %vm452_vm1, %v7195_v23  ;;  %v7392_v23 = vld [vmem:[%s8879_s3 + $0xc] sm:$0x3]  ;;  %v7443_v37 = vpack.c.bf16 %v1314_v13, %v1313_v12  ;;  %v1619_v13 = vld [vmem:[#allocation2 + $0x180] sm:$0xff] }
 0x12b   : > { %v1620_v12 = vld [vmem:[#allocation2 + $0x188] sm:$0xff] }
 0x12c   : > { %v7473_v26 = vpack.c.bf16 %v1620_v12, %v1619_v13 }
 0x130   : > { %6356 = vmatmul.mubr.msk.bf16.vlgmr.msra.gmra.mxu1 %vm452_vm1, %v7377_v41 }
 0x131   : > { %6390 = vmatmul.mubr.msk.bf16.vlgmr.msra.gmra.mxu0 %vm452_vm1, %v7206_v35  ;;  %6422 = vmatpush3.bf16.msra.mxu1 %v1982_v42  ;;  %v1317_v42 = vld [vmem:[#allocation2 + $0x10a] sm:$0xff] }
 0x132   : > { %6359 = vmatprep.mubr.msk.bf16.mxu1 %vm452_vm1, %v7381_v48  ;;  %6393 = vmatprep.mubr.msk.bf16.mxu0 %vm452_vm1, %v7234_v24 }
 0x133   : > { %6456 = vmatpush3.bf16.msra.mxu0 %v2276_v49  ;;  %6618 = vmatprep.subr.msk.bf16.mxu1 %vm501_vm0, %v7392_v23  ;;  %v1318_v49 = vld [vmem:[#allocation2 + $0x112] sm:$0xff] }
 0x134   : > { %6619 = vmatprep.subr.msk.bf16.mxu0 %vm501_vm0, %v7397_v36  ;;  %v7455_v52 = vpack.c.bf16 %v1318_v49, %v1317_v42  ;;  %v2571_v42 = vsel %vm501_vm0, %v7392_v23, 0  ;;  %v2865_v49 = vsel %vm501_vm0, %v7397_v36, 0  ;;  %v2208_v23 = vld [vmem:[#allocation2 + $0x18a] sm:$0xff]  ;;  %v1913_v36 = vld [vmem:[#allocation2 + $0x181] sm:$0xff] }
 0x138   : > { %6360 = vmatmul.mubr.msk.bf16.gmra.mxu1 %vm452_vm1, %v7407_v54 }
 0x139   : > { %6394 = vmatmul.mubr.msk.bf16.gmra.mxu0 %vm452_vm1, %v7238_v34  ;;  %6363 = vmatprep.mubr.msk.bf16.mxu1 %vm452_vm1, %v7409_v55 }
 0x13a   : > { %6397 = vmatprep.mubr.msk.bf16.mxu0 %vm452_vm1, %v7258_v59 }
 0x140   : > { %6364 = vmatmul.mubr.msk.bf16.gmra.mxu1 %vm452_vm1, %v7419_v2 }
 0x141   : > { %6398 = vmatmul.mubr.msk.bf16.gmra.mxu0 %vm452_vm1, %v7262_v63  ;;  %6367 = vmatprep.mubr.msk.bf16.mxu1 %vm452_vm1, %v7421_v44 }
 0x142   : > { %6401 = vmatprep.mubr.msk.bf16.mxu0 %vm452_vm1, %v7282_v17 }
 0x148   : > { %6368 = vmatmul.mubr.msk.bf16.gmra.mxu1 %vm452_vm1, %v7431_v10 }
 0x149   : > { %6402 = vmatmul.mubr.msk.bf16.gmra.mxu0 %vm452_vm1, %v7286_v29  ;;  %6371 = vmatprep.mubr.msk.bf16.mxu1 %vm452_vm1, %v7433_v11 }
 0x14a   : > { %6405 = vmatprep.mubr.msk.bf16.mxu0 %vm452_vm1, %v7306_v22 }
 0x150   : > { %6372 = vmatmul.mubr.msk.bf16.gmra.mxu1 %vm452_vm1, %v7443_v37 }
 0x151   : > { %6406 = vmatmul.mubr.msk.bf16.gmra.mxu0 %vm452_vm1, %v7310_v5  ;;  %6375 = vmatprep.mubr.msk.bf16.mxu1 %vm452_vm1, %v7445_v27 }
 0x152   : > { %6409 = vmatprep.mubr.msk.bf16.mxu0 %vm452_vm1, %v7330_v39 }
 0x158   : > { %6376 = vmatmul.mubr.msk.bf16.gmra.mxu1 %vm452_vm1, %v7455_v52 }
 0x159   : > { %6410 = vmatmul.mubr.msk.bf16.gmra.mxu0 %vm452_vm1, %v7334_v47  ;;  %6379 = vmatprep.mubr.msk.bf16.mxu1 %vm452_vm1, %v7457_v53 }
 0x15a   : > { %6413 = vmatprep.mubr.msk.bf16.mxu0 %vm452_vm1, %v7352_v7 }
 0x160   : > { %6380 = vmatmul.mubr.msk.bf16.gmra.mxu1 %vm452_vm1, %v1340_v45 }
 0x161   : > { %6414 = vmatmul.mubr.msk.bf16.gmra.mxu0 %vm452_vm1, %v7356_v14  ;;  %6383 = vmatprep.mubr.msk.bf16.mxu1 %vm452_vm1, %v1341_v51 }
 0x162   : > { %6417 = vmatprep.mubr.msk.bf16.mxu0 %vm452_vm1, %v7368_v18 }
 0x168   : > { %6384 = vmatmul.mubr.msk.bf16.gmra.mxu1 %vm452_vm1, %v1342_v19 }
 0x169   : > { %6418 = vmatmul.mubr.msk.bf16.gmra.mxu0 %vm452_vm1, %v7473_v26  ;;  %6423 = vmatprep.mubr.msk.bf16.mxu1 %vm452_vm1, %v7193_v0  ;;  %v1914_v0 = vld [vmem:[#allocation2 + $0x189] sm:$0xff] }
 0x16a   : > { %6457 = vmatprep.mubr.msk.bf16.mxu0 %vm452_vm1, %v7377_v41  ;;  %v2207_v41 = vld [vmem:[#allocation2 + $0x182] sm:$0xff]  ;;  %v7543_v50 = vpack.c.bf16 %v1914_v0, %v1913_v36 }
 0x16b   : > { %v7545_v56 = vpack.c.bf16 %v2208_v23, %v2207_v41 }
 0x170   : > { %6424 = vmatmul.mubr.msk.bf16.vlgmr.msra.gmra.mxu1 %vm452_vm1, %v7197_v3 }
 0x171   : > { %6458 = vmatmul.mubr.msk.bf16.vlgmr.msra.gmra.mxu0 %vm452_vm1, %v7381_v48  ;;  %6490 = vmatpush3.bf16.msra.mxu1 %v2571_v42 }
 0x172   : > { %6427 = vmatprep.mubr.msk.bf16.mxu1 %vm452_vm1, %v7232_v20  ;;  %6461 = vmatprep.mubr.msk.bf16.mxu0 %vm452_vm1, %v7407_v54 }
 0x173   : > { %6524 = vmatpush3.bf16.msra.mxu0 %v2865_v49  ;;  %6620 = vmatprep.subr.msk.bf16.mxu1 %vm501_vm0, %v6036_v40 }
 0x178   : > { %6428 = vmatmul.mubr.msk.bf16.gmra.mxu1 %vm452_vm1, %v7236_v30 }
 0x179   : > { %6462 = vmatmul.mubr.msk.bf16.gmra.mxu0 %vm452_vm1, %v7409_v55  ;;  %6431 = vmatprep.mubr.msk.bf16.mxu1 %vm452_vm1, %v7256_v58 }
 0x17a   : > { %6465 = vmatprep.mubr.msk.bf16.mxu0 %vm452_vm1, %v7419_v2 }
 0x180   : > { %6432 = vmatmul.mubr.msk.bf16.gmra.mxu1 %vm452_vm1, %v7260_v62 }
 0x181   : > { %6466 = vmatmul.mubr.msk.bf16.gmra.mxu0 %vm452_vm1, %v7421_v44  ;;  %6435 = vmatprep.mubr.msk.bf16.mxu1 %vm452_vm1, %v7280_v16 }
 0x182   : > { %6469 = vmatprep.mubr.msk.bf16.mxu0 %vm452_vm1, %v7431_v10 }
 0x188   : > { %6436 = vmatmul.mubr.msk.bf16.gmra.mxu1 %vm452_vm1, %v7284_v28 }
 0x189   : > { %6470 = vmatmul.mubr.msk.bf16.gmra.mxu0 %vm452_vm1, %v7433_v11  ;;  %6439 = vmatprep.mubr.msk.bf16.mxu1 %vm452_vm1, %v7304_v60 }
 0x18a   : > { %6473 = vmatprep.mubr.msk.bf16.mxu0 %vm452_vm1, %v7443_v37 }
 0x190   : > { %6440 = vmatmul.mubr.msk.bf16.gmra.mxu1 %vm452_vm1, %v7308_v4 }
 0x191   : > { %6474 = vmatmul.mubr.msk.bf16.gmra.mxu0 %vm452_vm1, %v7445_v27  ;;  %6443 = vmatprep.mubr.msk.bf16.mxu1 %vm452_vm1, %v7328_v38 }
 0x192   : > { %6477 = vmatprep.mubr.msk.bf16.mxu0 %vm452_vm1, %v7455_v52 }
 0x198   : > { %6444 = vmatmul.mubr.msk.bf16.gmra.mxu1 %vm452_vm1, %v7332_v43 }
 0x199   : > { %6478 = vmatmul.mubr.msk.bf16.gmra.mxu0 %vm452_vm1, %v7457_v53  ;;  %6447 = vmatprep.mubr.msk.bf16.mxu1 %vm452_vm1, %v7350_v6 }
 0x19a   : > { %6481 = vmatprep.mubr.msk.bf16.mxu0 %vm452_vm1, %v1340_v45 }
 0x1a0   : > { %6448 = vmatmul.mubr.msk.bf16.gmra.mxu1 %vm452_vm1, %v7354_v46 }
 0x1a1   : > { %6482 = vmatmul.mubr.msk.bf16.gmra.mxu0 %vm452_vm1, %v1341_v51  ;;  %6451 = vmatprep.mubr.msk.bf16.mxu1 %vm452_vm1, %v7366_v15 }
 0x1a2   : > { %6485 = vmatprep.mubr.msk.bf16.mxu0 %vm452_vm1, %v1342_v19 }
 0x1a8   : > { %6452 = vmatmul.mubr.msk.bf16.gmra.mxu1 %vm452_vm1, %v7543_v50 }
 0x1a9   : > { %6486 = vmatmul.mubr.msk.bf16.gmra.mxu0 %vm452_vm1, %v7545_v56  ;;  %6491 = vmatprep.mubr.msk.bf16.mxu1 %vm452_vm1, %v7206_v35 }
 0x1aa   : > { %6525 = vmatprep.mubr.msk.bf16.mxu0 %vm452_vm1, %v7197_v3 }
 0x1b0   : > { %v6289_v61 = vpop.f32.mrf.mxu1  ;;  %6492 = vmatmul.mubr.msk.bf16.vlgmr.msra.gmra.mxu1 %vm452_vm1, %v7234_v24 }
 0x1b1   : > { %v6323_v1 = vpop.f32.mrf.mxu0  ;;  %6526 = vmatmul.mubr.msk.bf16.vlgmr.msra.gmra.mxu0 %vm452_vm1, %v7232_v20  ;;  %6558 = vmatpush3.bf16.msra.mxu1 %v3159_v57 }
 0x1b2   : > { %v7560_v45 = vadd.f32 %v6323_v1, %v6289_v61  ;;  %6495 = vmatprep.mubr.msk.bf16.mxu1 %vm452_vm1, %v7238_v34  ;;  %6529 = vmatprep.mubr.msk.bf16.mxu0 %vm452_vm1, %v7236_v30  ;;  %v956_v3 = vpop.f32.mrf.mxu1 }
 0x1b3   : > { %v1168_v35 = vpop.f32.mrf.mxu0 }
 0x1b4   : > { %v7566_v51 = vadd.f32 %v1168_v35, %v956_v3  ;;  %v6290_v8 = vpop.f32.mrf.mxu1 }
 0x1b5   : > { %v6324_v9 = vpop.f32.mrf.mxu0 }
 0x1b6   : > { %v7568_v12 = vadd.f32 %v6324_v9, %v6290_v8  ;;  %v959_v24 = vpop.f32.mrf.mxu1 }
 0x1b7   : > { %v1171_v13 = vpop.f32.mrf.mxu0 }
 0x1b8   : > { %v7570_v20 = vadd.f32 %v1171_v13, %v959_v24  ;;  %v6293_v19 = vpop.f32.mrf.mxu1  ;;  %6496 = vmatmul.mubr.msk.bf16.gmra.mxu1 %vm452_vm1, %v7258_v59 }
 0x1b9   : > { %v6327_v42 = vpop.f32.mrf.mxu0  ;;  %6530 = vmatmul.mubr.msk.bf16.gmra.mxu0 %vm452_vm1, %v7256_v58  ;;  %6499 = vmatprep.mubr.msk.bf16.mxu1 %vm452_vm1, %v7262_v63 }
 0x1ba   : > { %v7576_v30 = vadd.f32 %v6327_v42, %v6293_v19  ;;  %6533 = vmatprep.mubr.msk.bf16.mxu0 %vm452_vm1, %v7260_v62  ;;  %v972_v34 = vpop.f32.mrf.mxu1 }
 0x1bb   : > { %v1184_v49 = vpop.f32.mrf.mxu0 }
 0x1bc   : > { %v7582_v40 = vadd.f32 %v1184_v49, %v972_v34  ;;  %v6294_v0 = vpop.f32.mrf.mxu1 }
 0x1bd   : > { %v6328_v41 = vpop.f32.mrf.mxu0 }
 0x1be   : > { %v7584_v23 = vadd.f32 %v6328_v41, %v6294_v0  ;;  %v975_v59 = vpop.f32.mrf.mxu1 }
 0x1bf   : > { %v1187_v36 = vpop.f32.mrf.mxu0 }
 0x1c0   : > { %v7586_v57 = vadd.f32 %v1187_v36, %v975_v59  ;;  %v6297_v58 = vpop.f32.mrf.mxu1  ;;  %6500 = vmatmul.mubr.msk.bf16.gmra.mxu1 %vm452_vm1, %v7282_v17 }
 0x1c1   : > { %v6331_v61 = vpop.f32.mrf.mxu0  ;;  %6534 = vmatmul.mubr.msk.bf16.gmra.mxu0 %vm452_vm1, %v7280_v16  ;;  %6503 = vmatprep.mubr.msk.bf16.mxu1 %vm452_vm1, %v7286_v29 }
 0x1c2   : > { %v7592_v62 = vadd.f32 %v6331_v61, %v6297_v58  ;;  %6537 = vmatprep.mubr.msk.bf16.mxu0 %vm452_vm1, %v7284_v28  ;;  %v988_v63 = vpop.f32.mrf.mxu1 }
 0x1c3   : > { %v1200_v1 = vpop.f32.mrf.mxu0 }
 0x1c4   : > { %v7598_v3 = vadd.f32 %v1200_v1, %v988_v63  ;;  %v6298_v35 = vpop.f32.mrf.mxu1 }
 0x1c5   : > { %v6332_v8 = vpop.f32.mrf.mxu0 }
 0x1c6   : > { %v7600_v9 = vadd.f32 %v6332_v8, %v6298_v35  ;;  %v991_v17 = vpop.f32.mrf.mxu1 }
 0x1c7   : > { %v1203_v24 = vpop.f32.mrf.mxu0 }
 0x1c8   : > { %v7602_v13 = vadd.f32 %v1203_v24, %v991_v17  ;;  %v6301_v16 = vpop.f32.mrf.mxu1  ;;  %6504 = vmatmul.mubr.msk.bf16.gmra.mxu1 %vm452_vm1, %v7306_v22 }
 0x1c9   : > { %v6335_v19 = vpop.f32.mrf.mxu0  ;;  %6538 = vmatmul.mubr.msk.bf16.gmra.mxu0 %vm452_vm1, %v7304_v60  ;;  %6507 = vmatprep.mubr.msk.bf16.mxu1 %vm452_vm1, %v7310_v5 }
 0x1ca   : > { %v7608_v28 = vadd.f32 %v6335_v19, %v6301_v16  ;;  %6541 = vmatprep.mubr.msk.bf16.mxu0 %vm452_vm1, %v7308_v4  ;;  %v1004_v29 = vpop.f32.mrf.mxu1 }
 0x1cb   : > { %v1216_v42 = vpop.f32.mrf.mxu0 }
 0x1cc   : > { %v7614_v34 = vadd.f32 %v1216_v42, %v1004_v29  ;;  %v6302_v49 = vpop.f32.mrf.mxu1 }
 0x1cd   : > { %v6336_v0 = vpop.f32.mrf.mxu0 }
 0x1ce   : > { %v7616_v41 = vadd.f32 %v6336_v0, %v6302_v49  ;;  %v1007_v22 = vpop.f32.mrf.mxu1 }
 0x1cf   : > { %v1219_v59 = vpop.f32.mrf.mxu0 }
 0x1d0   : > { %v7618_v36 = vadd.f32 %v1219_v59, %v1007_v22  ;;  %v6305_v60 = vpop.f32.mrf.mxu1  ;;  %6508 = vmatmul.mubr.msk.bf16.gmra.mxu1 %vm452_vm1, %v7330_v39  ;;  %v2503_v59 = vld [vmem:[#allocation2 + $0x1a0] sm:$0xff] }
 0x1d1   : > { %v6339_v58 = vpop.f32.mrf.mxu0  ;;  %6542 = vmatmul.mubr.msk.bf16.gmra.mxu0 %vm452_vm1, %v7328_v38  ;;  %6511 = vmatprep.mubr.msk.bf16.mxu1 %vm452_vm1, %v7334_v47 }
 0x1d2   : > { %v7624_v4 = vadd.f32 %v6339_v58, %v6305_v60  ;;  %6545 = vmatprep.mubr.msk.bf16.mxu0 %vm452_vm1, %v7332_v43  ;;  %v1020_v5 = vpop.f32.mrf.mxu1  ;;  %v2796_v60 = vld [vmem:[#allocation2 + $0x199] sm:$0xff]  ;;  %v2797_v58 = vld [vmem:[#allocation2 + $0x1a1] sm:$0xff] }
 0x1d3   : > { %v1232_v61 = vpop.f32.mrf.mxu0 }
 0x1d4   : > { %v7630_v63 = vadd.f32 %v1232_v61, %v1020_v5  ;;  %v6306_v1 = vpop.f32.mrf.mxu1 }
 0x1d5   : > { %v6340_v35 = vpop.f32.mrf.mxu0 }
 0x1d6   : > { %v7632_v8 = vadd.f32 %v6340_v35, %v6306_v1  ;;  %v7634_v39 = vpop.f32.mrf.mxu1 }
 0x1d7   : > { %v7636_v17 = vpop.f32.mrf.mxu0 }
 0x1d8   : > { %v6309_v38 = vpop.f32.mrf.mxu1  ;;  %6512 = vmatmul.mubr.msk.bf16.gmra.mxu1 %vm452_vm1, %v7352_v7 }
 0x1d9   : > { %v6343_v24 = vpop.f32.mrf.mxu0  ;;  %6546 = vmatmul.mubr.msk.bf16.gmra.mxu0 %vm452_vm1, %v7350_v6  ;;  %6515 = vmatprep.mubr.msk.bf16.mxu1 %vm452_vm1, %v7356_v14 }
 0x1da   : > { %v7642_v43 = vadd.f32 %v6343_v24, %v6309_v38  ;;  %6549 = vmatprep.mubr.msk.bf16.mxu0 %vm452_vm1, %v7354_v46  ;;  %v1036_v47 = vpop.f32.mrf.mxu1  ;;  %v2502_v46 = vld [vmem:[#allocation2 + $0x198] sm:$0xff] }
 0x1db   : > { %v1248_v16 = vpop.f32.mrf.mxu0  ;;  %v2519_v38 = vpack.c.bf16 %v2503_v59, %v2502_v46 }
 0x1dc   : > { %v7648_v19 = vadd.f32 %v1248_v16, %v1036_v47  ;;  %v6310_v29 = vpop.f32.mrf.mxu1 }
 0x1dd   : > { %v6344_v42 = vpop.f32.mrf.mxu0 }
 0x1de   : > { %v7650_v49 = vadd.f32 %v6344_v42, %v6310_v29  ;;  %v7652_v7 = vpop.f32.mrf.mxu1 }
 0x1df   : > { %v7654_v0 = vpop.f32.mrf.mxu0 }
 0x1e0   : > { %v6313_v6 = vpop.f32.mrf.mxu1  ;;  %6516 = vmatmul.mubr.msk.bf16.gmra.mxu1 %vm452_vm1, %v7368_v18 }
 0x1e1   : > { %v6347_v22 = vpop.f32.mrf.mxu0  ;;  %6550 = vmatmul.mubr.msk.bf16.gmra.mxu0 %vm452_vm1, %v7366_v15  ;;  %6519 = vmatprep.mubr.msk.bf16.mxu1 %vm452_vm1, %v7473_v26  ;;  %v2813_v15 = vpack.c.bf16 %v2797_v58, %v2796_v60 }
 0x1e2   : > { %v7660_v14 = vadd.f32 %v6347_v22, %v6313_v6  ;;  %6553 = vmatprep.mubr.msk.bf16.mxu0 %vm452_vm1, %v7543_v50  ;;  %v1052_v5 = vpop.f32.mrf.mxu1 }
 0x1e3   : > { %v1264_v61 = vpop.f32.mrf.mxu0 }
 0x1e4   : > { %v7666_v1 = vadd.f32 %v1264_v61, %v1052_v5  ;;  %v6314_v18 = vpop.f32.mrf.mxu1 }
 0x1e5   : > { %v6348_v35 = vpop.f32.mrf.mxu0 }
 0x1e6   : > { %v7668_v24 = vadd.f32 %v6348_v35, %v6314_v18  ;;  %v1055_v47 = vpop.f32.mrf.mxu1 }
 0x1e7   : > { %v1267_v16 = vpop.f32.mrf.mxu0 }
 0x1e8   : > { %v7670_v29 = vadd.f32 %v1267_v16, %v1055_v47  ;;  %v6317_v26 = vpop.f32.mrf.mxu1  ;;  %6520 = vmatmul.mubr.msk.bf16.gmra.mxu1 %vm452_vm1, %v2519_v38 }
 0x1e9   : > { %v6351_v42 = vpop.f32.mrf.mxu0  ;;  %6554 = vmatmul.mubr.msk.bf16.gmra.mxu0 %vm452_vm1, %v2813_v15  ;;  %6559 = vmatprep.mubr.msk.bf16.mxu1 %vm452_vm1, %v7381_v48 }
 0x1ea   : > { %v7674_v50 = vadd.f32 %v6351_v42, %v6317_v26  ;;  %v1068_v6 = vpop.f32.mrf.mxu1 }
 0x1eb   : > { %v1280_v22 = vpop.f32.mrf.mxu0 }
 0x1ec   : > { %v7678_v46 = vadd.f32 %v1280_v22, %v1068_v6  ;;  %v6318_v59 = vpop.f32.mrf.mxu1 }
 0x1ed   : > { %v6352_v60 = vpop.f32.mrf.mxu0 }
 0x1ee   : > { %v7680_v58 = vadd.f32 %v6352_v60, %v6318_v59  ;;  %v1071_v5 = vpop.f32.mrf.mxu1 }
 0x1ef   : > { %v1283_v61 = vpop.f32.mrf.mxu0 }
 0x1f0   : > { %v7682_v18 = vadd.f32 %v1283_v61, %v1071_v5  ;;  %v6357_v35 = vpop.f32.mrf.mxu1  ;;  %6560 = vmatmul.mubr.msk.bf16.vlgmr.msra.gmra.mxu1 %vm452_vm1, %v7407_v54 }
 0x1f1   : > { %v6391_v38 = vpop.f32.mrf.mxu0  ;;  %v1559_v15 = vadd.f32 %v6357_v35, %v7560_v45  ;;  %6563 = vmatprep.mubr.msk.bf16.mxu1 %vm452_vm1, %v7409_v55 }
 0x1f2   : > { %v1430_v48 = vpop.f32.mrf.mxu1 }
 0x1f3   : > { %v1724_v47 = vpop.f32.mrf.mxu0  ;;  %v7689_v16 = vadd.f32 %v6391_v38, %v1559_v15  ;;  %v1557_v26 = vadd.f32 %v1430_v48, %v7566_v51 }
 0x1f4   : > { %v6358_v42 = vpop.f32.mrf.mxu1 }
 0x1f5   : > { %v6392_v6 = vpop.f32.mrf.mxu0  ;;  %v7692_v22 = vadd.f32 %v1724_v47, %v1557_v26  ;;  %v1560_v59 = vadd.f32 %v6358_v42, %v7568_v12 }
 0x1f6   : > { %v1433_v60 = vpop.f32.mrf.mxu1 }
 0x1f7   : > { %v1727_v5 = vpop.f32.mrf.mxu0  ;;  %v7695_v54 = vadd.f32 %v6392_v6, %v1560_v59  ;;  %v1558_v45 = vadd.f32 %v1433_v60, %v7570_v20 }
 0x1f8   : > { %v6361_v61 = vpop.f32.mrf.mxu1  ;;  %6564 = vmatmul.mubr.msk.bf16.gmra.mxu1 %vm452_vm1, %v7419_v2 }
 0x1f9   : > { %v6395_v55 = vpop.f32.mrf.mxu0  ;;  %v7700_v35 = vadd.f32 %v1727_v5, %v1558_v45  ;;  %v1563_v51 = vadd.f32 %v6361_v61, %v7576_v30  ;;  %6567 = vmatprep.mubr.msk.bf16.mxu1 %vm452_vm1, %v7421_v44 }
 0x1fa   : > { %v1446_v38 = vpop.f32.mrf.mxu1 }
 0x1fb   : > { %v1740_v12 = vpop.f32.mrf.mxu0  ;;  %v7705_v15 = vadd.f32 %v6395_v55, %v1563_v51  ;;  %v1561_v48 = vadd.f32 %v1446_v38, %v7582_v40 }
 0x1fc   : > { %v6362_v47 = vpop.f32.mrf.mxu1 }
 0x1fd   : > { %v6396_v20 = vpop.f32.mrf.mxu0  ;;  %v7708_v26 = vadd.f32 %v1740_v12, %v1561_v48  ;;  %v1564_v42 = vadd.f32 %v6362_v47, %v7584_v23 }
 0x1fe   : > { %v1449_v2 = vpop.f32.mrf.mxu1 }
 0x1ff   : > { %v1743_v6 = vpop.f32.mrf.mxu0  ;;  %v7711_v59 = vadd.f32 %v6396_v20, %v1564_v42  ;;  %v1562_v30 = vadd.f32 %v1449_v2, %v7586_v57 }
 0x200   : > { %v6365_v60 = vpop.f32.mrf.mxu1  ;;  %6568 = vmatmul.mubr.msk.bf16.gmra.mxu1 %vm452_vm1, %v7431_v10 }
 0x201   : > { %v6399_v44 = vpop.f32.mrf.mxu0  ;;  %v7716_v5 = vadd.f32 %v1743_v6, %v1562_v30  ;;  %v1567_v40 = vadd.f32 %v6365_v60, %v7592_v62  ;;  %6571 = vmatprep.mubr.msk.bf16.mxu1 %vm452_vm1, %v7433_v11 }
 0x202   : > { %v1462_v45 = vpop.f32.mrf.mxu1 }
 0x203   : > { %v1756_v23 = vpop.f32.mrf.mxu0  ;;  %v7721_v61 = vadd.f32 %v6399_v44, %v1567_v40  ;;  %v1565_v55 = vadd.f32 %v1462_v45, %v7598_v3 }
 0x204   : > { %v6366_v51 = vpop.f32.mrf.mxu1 }
 0x205   : > { %v6400_v57 = vpop.f32.mrf.mxu0  ;;  %v7724_v38 = vadd.f32 %v1756_v23, %v1565_v55  ;;  %v1568_v12 = vadd.f32 %v6366_v51, %v7600_v9 }
 0x206   : > { %v1465_v10 = vpop.f32.mrf.mxu1 }
 0x207   : > { %v1759_v48 = vpop.f32.mrf.mxu0  ;;  %v7727_v47 = vadd.f32 %v6400_v57, %v1568_v12  ;;  %v1566_v62 = vadd.f32 %v1465_v10, %v7602_v13 }
 0x208   : > { %v6369_v20 = vpop.f32.mrf.mxu1  ;;  %6572 = vmatmul.mubr.msk.bf16.gmra.mxu1 %vm452_vm1, %v7443_v37 }
 0x209   : > { %v6403_v11 = vpop.f32.mrf.mxu0  ;;  %v7732_v42 = vadd.f32 %v1759_v48, %v1566_v62  ;;  %v1571_v3 = vadd.f32 %v6369_v20, %v7608_v28  ;;  %6575 = vmatprep.mubr.msk.bf16.mxu1 %vm452_vm1, %v7445_v27  ;;  %v3082_v48 = vld [vmem:[#allocation2 + $0x13a] sm:$0xff] }
 0x20a   : > { %v1478_v2 = vpop.f32.mrf.mxu1 }
 0x20b   : > { %v1772_v9 = vpop.f32.mrf.mxu0  ;;  %v7737_v6 = vadd.f32 %v6403_v11, %v1571_v3  ;;  %v1569_v30 = vadd.f32 %v1478_v2, %v7614_v34  ;;  %v3084_v11 = vld [vmem:[#allocation2 + $0x152] sm:$0xff]  ;;  %v3085_v3 = vld [vmem:[#allocation2 + $0x15a] sm:$0xff] }
 0x20c   : > { %v6370_v60 = vpop.f32.mrf.mxu1 }
 0x20d   : > { %v6404_v13 = vpop.f32.mrf.mxu0  ;;  %v7740_v44 = vadd.f32 %v1772_v9, %v1569_v30  ;;  %v1572_v40 = vadd.f32 %v6370_v60, %v7616_v41 }
 0x20e   : > { %v1481_v37 = vpop.f32.mrf.mxu1 }
 0x20f   : > { %v1775_v45 = vpop.f32.mrf.mxu0  ;;  %v7743_v23 = vadd.f32 %v6404_v13, %v1572_v40  ;;  %v1570_v28 = vadd.f32 %v1481_v37, %v7618_v36  ;;  %v3083_v36 = vld [vmem:[#allocation2 + $0x142] sm:$0xff] }
 0x210   : > { %v6373_v55 = vpop.f32.mrf.mxu1  ;;  %6576 = vmatmul.mubr.msk.bf16.gmra.mxu1 %vm452_vm1, %v7455_v52  ;;  %v1236_v52 = vadd.f32 %v7636_v17, %v7634_v39  ;;  %v3103_v30 = vpack.c.bf16 %v3083_v36, %v3082_v48 }
 0x211   : > { %v6407_v27 = vpop.f32.mrf.mxu0  ;;  %v7748_v51 = vadd.f32 %v1775_v45, %v1570_v28  ;;  %v1575_v34 = vadd.f32 %v6373_v55, %v7624_v4  ;;  %6579 = vmatprep.mubr.msk.bf16.mxu1 %vm452_vm1, %v7457_v53 }
 0x212   : > { %v1494_v57 = vpop.f32.mrf.mxu1 }
 0x213   : > { %v1788_v41 = vpop.f32.mrf.mxu0  ;;  %v7753_v12 = vadd.f32 %v6407_v27, %v1575_v34  ;;  %v1573_v10 = vadd.f32 %v1494_v57, %v7630_v63  ;;  %v3104_v63 = vpack.c.bf16 %v3085_v3, %v3084_v11  ;;  %v3086_v27 = vld [vmem:[#allocation2 + $0x16a] sm:$0xff]  ;;  %v3087_v34 = vld [vmem:[#allocation2 + $0x172] sm:$0xff] }
 0x214   : > { %v6374_v62 = vpop.f32.mrf.mxu1 }
 0x215   : > { %v6408_v20 = vpop.f32.mrf.mxu0  ;;  %v7758_v2 = vadd.f32 %v1788_v41, %v1573_v10  ;;  %v1576_v4 = vadd.f32 %v6374_v62, %v7632_v8  ;;  %v1252_v10 = vadd.f32 %v7654_v0, %v7652_v7  ;;  %v3090_v7 = vld [vmem:[#allocation2 + $0x19a] sm:$0xff]  ;;  %v3091_v0 = vld [vmem:[#allocation2 + $0x1a2] sm:$0xff] }
 0x216   : > { %v1497_v53 = vpop.f32.mrf.mxu1 }
 0x217   : > { %v1791_v9 = vpop.f32.mrf.mxu0  ;;  %v7761_v60 = vadd.f32 %v6408_v20, %v1576_v4  ;;  %v1574_v13 = vadd.f32 %v1497_v53, %v1236_v52  ;;  %v3105_v20 = vpack.c.bf16 %v3087_v34, %v3086_v27 }
 0x218   : > { %v6377_v40 = vpop.f32.mrf.mxu1  ;;  %6580 = vmatmul.mubr.msk.bf16.gmra.mxu1 %vm452_vm1, %v3103_v30 }
 0x219   : > { %v6411_v37 = vpop.f32.mrf.mxu0  ;;  %v7764_v45 = vadd.f32 %v1791_v9, %v1574_v13  ;;  %v1579_v28 = vadd.f32 %v6377_v40, %v7642_v43  ;;  %6583 = vmatprep.mubr.msk.bf16.mxu1 %vm452_vm1, %v3104_v63 }
 0x21a   : > { %v1510_v39 = vpop.f32.mrf.mxu1 }
 0x21b   : > { %v1804_v17 = vpop.f32.mrf.mxu0  ;;  %v7768_v8 = vadd.f32 %v6411_v37, %v1579_v28  ;;  %v1577_v55 = vadd.f32 %v1510_v39, %v7648_v19  ;;  %v3107_v37 = vpack.c.bf16 %v3091_v0, %v3090_v7 }
 0x21c   : > { %v6378_v57 = vpop.f32.mrf.mxu1 }
 0x21d   : > { %v6412_v41 = vpop.f32.mrf.mxu0  ;;  %v7773_v48 = vadd.f32 %v1804_v17, %v1577_v55  ;;  %v1580_v36 = vadd.f32 %v6378_v57, %v7650_v49 }
 0x21e   : > { %v1513_v43 = vpop.f32.mrf.mxu1 }
 0x21f   : > { %v1807_v62 = vpop.f32.mrf.mxu0  ;;  %v7776_v11 = vadd.f32 %v6412_v41, %v1580_v36  ;;  %v1578_v3 = vadd.f32 %v1513_v43, %v1252_v10 }
 0x220   : > { %v6381_v52 = vpop.f32.mrf.mxu1  ;;  %6584 = vmatmul.mubr.msk.bf16.gmra.mxu1 %vm452_vm1, %v3105_v20 }
 0x221   : > { %v6415_v4 = vpop.f32.mrf.mxu0  ;;  %v7779_v19 = vadd.f32 %v1807_v62, %v1578_v3  ;;  %v1583_v53 = vadd.f32 %v6381_v52, %v7660_v14  ;;  %6587 = vmatprep.mubr.msk.bf16.mxu1 %vm452_vm1, %v7545_v56 }
 0x222   : > { %v1526_v49 = vpop.f32.mrf.mxu1 }
 0x223   : > { %v1820_v9 = vpop.f32.mrf.mxu0  ;;  %v7784_v30 = vadd.f32 %v6415_v4, %v1583_v53  ;;  %v1581_v13 = vadd.f32 %v1526_v49, %v7666_v1 }
 0x224   : > { %v6382_v63 = vpop.f32.mrf.mxu1 }
 0x225   : > { %v6416_v40 = vpop.f32.mrf.mxu0  ;;  %v7787_v28 = vadd.f32 %v1820_v9, %v1581_v13  ;;  %v1584_v39 = vadd.f32 %v6382_v63, %v7668_v24 }
 0x226   : > { %v1529_v17 = vpop.f32.mrf.mxu1 }
 0x227   : > { %v1823_v14 = vpop.f32.mrf.mxu0  ;;  %v7790_v55 = vadd.f32 %v6416_v40, %v1584_v39  ;;  %v1582_v56 = vadd.f32 %v1529_v17, %v7670_v29 }
 0x228   : > { %v6385_v27 = vpop.f32.mrf.mxu1  ;;  %6588 = vmatmul.mubr.msk.bf16.gmra.mxu1 %vm452_vm1, %v3107_v37 }
 0x229   : > { %v6419_v34 = vpop.f32.mrf.mxu0  ;;  %v7794_v57 = vadd.f32 %v1823_v14, %v1582_v56  ;;  %v1587_v1 = vadd.f32 %v6385_v27, %v7674_v50 }
 0x22a   : > { %v1542_v41 = vpop.f32.mrf.mxu1 }
 0x22b   : > { %v1836_v10 = vpop.f32.mrf.mxu0  ;;  %v7797_v36 = vadd.f32 %v6419_v34, %v1587_v1  ;;  %v1585_v24 = vadd.f32 %v1542_v41, %v7678_v46 }
 0x22c   : > { %v6386_v43 = vpop.f32.mrf.mxu1 }
 0x22d   : > { %v6420_v62 = vpop.f32.mrf.mxu0  ;;  %v7800_v20 = vadd.f32 %v1836_v10, %v1585_v24  ;;  %v1588_v29 = vadd.f32 %v6386_v43, %v7680_v58 }
 0x22e   : > { %v1545_v3 = vpop.f32.mrf.mxu1 }
 0x22f   : > { %v1839_v52 = vpop.f32.mrf.mxu0  ;;  %v7803_v4 = vadd.f32 %v6420_v62, %v1588_v29  ;;  %v1586_v53 = vadd.f32 %v1545_v3, %v7682_v18 }
 0x230   : > { %v6425_v7 = vpop.f32.mrf.mxu1 }
 0x231   : > { %v7806_v50 = vpop.f32.mrf.mxu0  ;;  %v7808_v0 = vadd.f32 %v1839_v52, %v1586_v53  ;;  %v7811_v49 = vadd.f32 %v6425_v7, %v7689_v16 }
 0x232   : > { %v2018_v46 = vpop.f32.mrf.mxu1 }
 0x233   : > { %v7813_v9 = vpop.f32.mrf.mxu0  ;;  %v7816_v13 = vadd.f32 %v2018_v46, %v7692_v22 }
 0x234   : > { %v6426_v58 = vpop.f32.mrf.mxu1 }
 0x235   : > { %v7818_v63 = vpop.f32.mrf.mxu0  ;;  %v7821_v40 = vadd.f32 %v6426_v58, %v7695_v54 }
 0x236   : > { %v2021_v18 = vpop.f32.mrf.mxu1 }
 0x237   : > { %v7823_v37 = vpop.f32.mrf.mxu0  ;;  %v7826_v39 = vadd.f32 %v2021_v18, %v7700_v35 }
 0x238   : > { %v6429_v16 = vpop.f32.mrf.mxu1 }
 0x239   : > { %v7828_v17 = vpop.f32.mrf.mxu0  ;;  %v7831_v14 = vadd.f32 %v6429_v16, %v7705_v15 }
 0x23a   : > { %v2034_v22 = vpop.f32.mrf.mxu1 }
 0x23b   : > { %v7833_v56 = vpop.f32.mrf.mxu0  ;;  %v7836_v27 = vadd.f32 %v2034_v22, %v7708_v26 }
 0x23c   : > { %v6430_v54 = vpop.f32.mrf.mxu1 }
 0x23d   : > { %v7838_v34 = vpop.f32.mrf.mxu0  ;;  %v7841_v1 = vadd.f32 %v6430_v54, %v7711_v59 }
 0x23e   : > { %v2037_v35 = vpop.f32.mrf.mxu1 }
 0x23f   : > { %v7843_v41 = vpop.f32.mrf.mxu0  ;;  %v7846_v10 = vadd.f32 %v2037_v35, %v7716_v5 }
 0x240   : > { %v6433_v15 = vpop.f32.mrf.mxu1 }
 0x241   : > { %v7848_v24 = vpop.f32.mrf.mxu0  ;;  %v7851_v43 = vadd.f32 %v6433_v15, %v7721_v61 }
 0x242   : > { %v2050_v26 = vpop.f32.mrf.mxu1 }
 0x243   : > { %v7853_v62 = vpop.f32.mrf.mxu0  ;;  %v7856_v29 = vadd.f32 %v2050_v26, %v7724_v38 }
 0x244   : > { %v6434_v59 = vpop.f32.mrf.mxu1 }
 0x245   : > { %v7858_v3 = vpop.f32.mrf.mxu0  ;;  %v7861_v52 = vadd.f32 %v6434_v59, %v7727_v47 }
 0x246   : > { %v2053_v5 = vpop.f32.mrf.mxu1 }
 0x247   : > { %v7863_v53 = vpop.f32.mrf.mxu0  ;;  %v7866_v7 = vadd.f32 %v2053_v5, %v7732_v42 }
 0x248   : > { %v6437_v61 = vpop.f32.mrf.mxu1 }
 0x249   : > { %v7868_v46 = vpop.f32.mrf.mxu0  ;;  %v7871_v58 = vadd.f32 %v6437_v61, %v7737_v6 }
 0x24a   : > { %v2066_v38 = vpop.f32.mrf.mxu1 }
 0x24b   : > { %v7873_v18 = vpop.f32.mrf.mxu0  ;;  %v7876_v16 = vadd.f32 %v2066_v38, %v7740_v44 }
 0x24c   : > { %v6438_v47 = vpop.f32.mrf.mxu1 }
 0x24d   : > { %v7878_v22 = vpop.f32.mrf.mxu0  ;;  %v7881_v54 = vadd.f32 %v6438_v47, %v7743_v23 }
 0x24e   : > { %v2069_v42 = vpop.f32.mrf.mxu1 }
 0x24f   : > { %v7883_v35 = vpop.f32.mrf.mxu0  ;;  %v7886_v15 = vadd.f32 %v2069_v42, %v7748_v51 }
 0x250   : > { %v6441_v6 = vpop.f32.mrf.mxu1 }
 0x251   : > { %v7888_v26 = vpop.f32.mrf.mxu0  ;;  %v7891_v59 = vadd.f32 %v6441_v6, %v7753_v12 }
 0x252   : > { %v2082_v44 = vpop.f32.mrf.mxu1 }
 0x253   : > { %v7893_v5 = vpop.f32.mrf.mxu0  ;;  %v7896_v61 = vadd.f32 %v2082_v44, %v7758_v2 }
 0x254   : > { %v6442_v23 = vpop.f32.mrf.mxu1 }
 0x255   : > { %v7898_v38 = vpop.f32.mrf.mxu0  ;;  %v7901_v47 = vadd.f32 %v6442_v23, %v7761_v60 }
 0x256   : > { %v2085_v51 = vpop.f32.mrf.mxu1 }
 0x257   : > { %v7903_v42 = vpop.f32.mrf.mxu0  ;;  %v7906_v31 = vadd.f32 %v2085_v51, %v7764_v45 }
 0x258   : > { %v6445_v12 = vpop.f32.mrf.mxu1 }
 0x259   : > { %v7908_v6 = vpop.f32.mrf.mxu0  ;;  %v7911_v25 = vadd.f32 %v6445_v12, %v7768_v8 }
 0x25a   : > { %v2098_v2 = vpop.f32.mrf.mxu1 }
 0x25b   : > { %v7913_v44 = vpop.f32.mrf.mxu0  ;;  %v7916_v32 = vadd.f32 %v2098_v2, %v7773_v48 }
 0x25c   : > { %8899 = vst [vmem:[#allocation15_spill] sm:$0xff] %v7913_v44  ;;  %v6446_v60 = vpop.f32.mrf.mxu1 }
 0x25d   : > { %v7918_v23 = vpop.f32.mrf.mxu0  ;;  %v7921_v33 = vadd.f32 %v6446_v60, %v7776_v11 }
 0x25e   : > { %8900 = vst [vmem:[#allocation16_spill] sm:$0xff] %v7918_v23  ;;  %v2101_v45 = vpop.f32.mrf.mxu1 }
 0x25f   : > { %v7923_v51 = vpop.f32.mrf.mxu0  ;;  %v7926_v21 = vadd.f32 %v2101_v45, %v7779_v19 }
 0x260   : > { %8901 = vst [vmem:[#allocation17_spill] sm:$0xff] %v7923_v51  ;;  %v6449_v8 = vpop.f32.mrf.mxu1 }
 0x261   : > { %v7928_v12 = vpop.f32.mrf.mxu0  ;;  %v7931_v44 = vadd.f32 %v6449_v8, %v7784_v30  ;;  %v4241_v30 = vld [vmem:[%s8881_s5] sm:$0x3] }
 0x262   : > { %8902 = vst [vmem:[#allocation18_spill] sm:$0xff] %v7928_v12  ;;  %v2114_v48 = vpop.f32.mrf.mxu1  ;;  %v5428_v8 = vld [vmem:[%s8883_s7] sm:$0x3]  ;;  %6621 = vmatprep.subr.msk.bf16.mxu0 %vm501_vm0, %v4241_v30 }
 0x263   : > { %v7933_v2 = vpop.f32.mrf.mxu0  ;;  %v7936_v23 = vadd.f32 %v2114_v48, %v7787_v28  ;;  %6622 = vmatprep.subr.msk.bf16.mxu1 %vm501_vm0, %v5428_v8 }
 0x264   : > { %8903 = vst [vmem:[#allocation19_spill] sm:$0xff] %v7933_v2  ;;  %v6450_v11 = vpop.f32.mrf.mxu1 }
 0x265   : > { %8904 = vst [vmem:[#allocation20_spill] sm:$0xff] %v7936_v23  ;;  %v7938_v60 = vpop.f32.mrf.mxu0  ;;  %v7941_v51 = vadd.f32 %v6450_v11, %v7790_v55 }
 0x266   : > { %8905 = vst [vmem:[#allocation21_spill] sm:$0xff] %v7938_v60  ;;  %v2117_v19 = vpop.f32.mrf.mxu1  ;;  %v5693_v60 = vsel %vm501_vm0, %v5428_v8, 0 }
 0x267   : > { %8906 = vst [vmem:[#allocation22_spill] sm:$0xff] %v7941_v51  ;;  %v7943_v45 = vpop.f32.mrf.mxu0  ;;  %v7952_v28 = vadd.f32 %v2117_v19, %v7794_v57  ;;  %6602 = vmatpush3.bf16.msra.mxu1 %v5693_v60 }
 0x268   : > { %8907 = vst [vmem:[#allocation23_spill] sm:$0xff] %v7943_v45  ;;  %v6453_v55 = vpop.f32.mrf.mxu1  ;;  %v4513_v45 = vsel %vm501_vm0, %v4241_v30, 0 }
 0x269   : > { %8908 = vst [vmem:[#allocation24_spill] sm:$0xff] %v7952_v28  ;;  %v7956_v48 = vpop.f32.mrf.mxu0  ;;  %v7959_v11 = vadd.f32 %v6453_v55, %v7797_v36  ;;  %6592 = vmatpush3.bf16.msra.mxu0 %v4513_v45 }
 0x26a   : > { %8909 = vst [vmem:[#allocation25_spill] sm:$0xff] %v7956_v48  ;;  %v2130_v51 = vpop.f32.mrf.mxu1 }
 0x26b   : > { %8910 = vst [vmem:[#allocation26_spill] sm:$0xff] %v7959_v11  ;;  %v7963_v2 = vpop.f32.mrf.mxu0  ;;  %v7966_v57 = vadd.f32 %v2130_v51, %v7800_v20 }
 0x26c   : > { %8911 = vst [vmem:[#allocation27_spill] sm:$0xff] %v7963_v2  ;;  %v6454_v19 = vpop.f32.mrf.mxu1 }
 0x26d   : > { %8912 = vst [vmem:[#allocation28_spill] sm:$0xff] %v7966_v57  ;;  %v6488_v28 = vpop.f32.mrf.mxu0  ;;  %v2176_v23 = vadd.f32 %v6454_v19, %v7803_v4 }
 0x26e   : > { %v2133_v48 = vpop.f32.mrf.mxu1 }
 0x26f   : > { %v2427_v12 = vpop.f32.mrf.mxu0  ;;  %v7969_v36 = vadd.f32 %v6488_v28, %v2176_v23  ;;  %v2174_v30 = vadd.f32 %v2133_v48, %v7808_v0 }
 0x270   : > { %v6493_v55 = vpop.f32.mrf.mxu1 }
 0x271   : > { %8913 = vst [vmem:[#allocation29_spill] sm:$0xff] %v7969_v36  ;;  %v7972_v8 = vpop.f32.mrf.mxu0  ;;  %v7974_v11 = vadd.f32 %v2427_v12, %v2174_v30  ;;  %v2439_v36 = vadd.f32 %v7813_v9, %v7816_v13  ;;  %v2449_v9 = vadd.f32 %v7848_v24, %v7851_v43  ;;  %v2447_v13 = vadd.f32 %v7853_v62, %v7856_v29  ;;  %v8921_v29 = vld [vmem:[#allocation15_spill] sm:$0xff] }
 0x272   : > { %v2607_v45 = vpop.f32.mrf.mxu1  ;;  %v8046_v62 = vadd.f32 %v7908_v6, %v7911_v25 }
 0x273   : > { %8914 = vst [vmem:[#allocation30_spill] sm:$0xff] %v7974_v11  ;;  %v7976_v60 = vpop.f32.mrf.mxu0  ;;  %v2441_v11 = vadd.f32 %v7806_v50, %v7811_v49  ;;  %v2446_v50 = vadd.f32 %v7838_v34, %v7841_v1  ;;  %v2444_v49 = vadd.f32 %v7843_v41, %v7846_v10  ;;  %v8030_v34 = vadd.f32 %v7888_v26, %v7891_v59  ;;  %v8929_v26 = vld [vmem:[#allocation22_spill] sm:$0xff]  ;;  %v8930_v59 = vld [vmem:[#allocation21_spill] sm:$0xff] }
 0x274   : > { %v6494_v20 = vpop.f32.mrf.mxu1  ;;  %v8034_v1 = vadd.f32 %v7893_v5, %v7896_v61  ;;  %v8038_v41 = vadd.f32 %v7898_v38, %v7901_v47  ;;  %v8042_v10 = vadd.f32 %v7903_v42, %v7906_v31  ;;  %v8924_v31 = vld [vmem:[#allocation18_spill] sm:$0xff]  ;;  %v8931_v5 = vld [vmem:[#allocation24_spill] sm:$0xff]  ;;  %v8932_v61 = vld [vmem:[#allocation23_spill] sm:$0xff]  ;;  %v2734_v42 = vadd.f32 %v2607_v45, %v2439_v36 }
 0x275   : > { %v7978_v51 = vpop.f32.mrf.mxu0  ;;  %v8078_v38 = vadd.f32 %v8932_v61, %v8931_v5  ;;  %v2736_v47 = vadd.f32 %v6493_v55, %v2441_v11  ;;  %v8935_v5 = vld [vmem:[#allocation28_spill] sm:$0xff]  ;;  %v8936_v11 = vld [vmem:[#allocation27_spill] sm:$0xff] }
 0x276   : > { %8915 = vst [vmem:[#allocation31_spill] sm:$0xff] %v7978_v51  ;;  %v2610_v2 = vpop.f32.mrf.mxu1  ;;  %v8088_v36 = vadd.f32 %v8936_v11, %v8935_v5 }
 0x277   : > { %v7980_v57 = vpop.f32.mrf.mxu0 }
 0x278   : > { %8916 = vst [vmem:[#allocation32_spill] sm:$0xff] %v7980_v57  ;;  %v6497_v4 = vpop.f32.mrf.mxu1  ;;  %v2442_v57 = vadd.f32 %v7818_v63, %v7821_v40  ;;  %v2450_v63 = vadd.f32 %v7858_v3, %v7861_v52  ;;  %v2448_v40 = vadd.f32 %v7863_v53, %v7866_v7  ;;  %v8050_v3 = vadd.f32 %v8921_v29, %v7916_v32  ;;  %v8922_v52 = vld [vmem:[#allocation16_spill] sm:$0xff]  ;;  %v8923_v7 = vld [vmem:[#allocation17_spill] sm:$0xff]  ;;  %v8927_v32 = vld [vmem:[#allocation11_spill] sm:$0xff] }
 0x279   : > { %v7982_v19 = vpop.f32.mrf.mxu0  ;;  %v8054_v53 = vadd.f32 %v8922_v52, %v7921_v33 }
 0x27a   : > { %8917 = vst [vmem:[#allocation33_spill] sm:$0xff] %v7982_v19  ;;  %v2623_v23 = vpop.f32.mrf.mxu1  ;;  %v2440_v19 = vadd.f32 %v7823_v37, %v7826_v39  ;;  %v2737_v6 = vadd.f32 %v6494_v20, %v2442_v57 }
 0x27b   : > { %v7984_v28 = vpop.f32.mrf.mxu0 }
 0x27c   : > { %8918 = vst [vmem:[#allocation34_spill] sm:$0xff] %v7984_v28  ;;  %v6498_v0 = vpop.f32.mrf.mxu1 }
 0x27d   : > { %v7986_v48 = vpop.f32.mrf.mxu0 }
 0x27e   : > { %8919 = vst [vmem:[#allocation35_spill] sm:$0xff] %v7986_v48  ;;  %v2626_v12 = vpop.f32.mrf.mxu1  ;;  %v2445_v48 = vadd.f32 %v7828_v17, %v7831_v14  ;;  %v2453_v17 = vadd.f32 %v7868_v46, %v7871_v58  ;;  %v2451_v14 = vadd.f32 %v7873_v18, %v7876_v16  ;;  %v8058_v46 = vadd.f32 %v8923_v7, %v7926_v21  ;;  %v8925_v18 = vld [vmem:[#allocation20_spill] sm:$0xff]  ;;  %v8926_v16 = vld [vmem:[#allocation19_spill] sm:$0xff] }
 0x27f   : > { %v7988_v30 = vpop.f32.mrf.mxu0  ;;  %v8062_v58 = vadd.f32 %v8924_v31, %v7931_v44  ;;  %v8066_v25 = vadd.f32 %v8926_v16, %v8925_v18  ;;  %v8074_v21 = vadd.f32 %v8930_v59, %v8929_v26  ;;  %v2735_v44 = vadd.f32 %v2610_v2, %v2440_v19  ;;  %v8933_v18 = vld [vmem:[#allocation26_spill] sm:$0xff]  ;;  %v8934_v16 = vld [vmem:[#allocation25_spill] sm:$0xff] }
 0x280   : > { %8920 = vst [vmem:[#allocation36_spill] sm:$0xff] %v7988_v30  ;;  %v6501_v51 = vpop.f32.mrf.mxu1  ;;  %v2443_v30 = vadd.f32 %v7833_v56, %v7836_v27  ;;  %v2454_v56 = vadd.f32 %v7878_v22, %v7881_v54  ;;  %v8026_v27 = vadd.f32 %v7883_v35, %v7886_v15  ;;  %v4741_v35 = vcombine.high %v8927_v32, %v8927_v32  ;;  %v8928_v15 = vld [vmem:[#allocation12_spill] sm:$0xff] }
 0x281   : > { %v7998_v28 = vpop.f32.mrf.mxu0  ;;  %v4775_v33 = vcombine.high %v8928_v15, %v8928_v15  ;;  %v2740_v29 = vadd.f32 %v6497_v4, %v2445_v48  ;;  %v8084_v32 = vadd.f32 %v8934_v16, %v8933_v18  ;;  %v2741_v15 = vadd.f32 %v6498_v0, %v2446_v50  ;;  %v5109_v0 = vld [vmem:[#allocation6 + $0x2] sm:$0x1] }
 0x282   : > { %v2639_v37 = vpop.f32.mrf.mxu1  ;;  %v2738_v52 = vadd.f32 %v2623_v23, %v2443_v30  ;;  %5051 = vst.msk [vmem:[#allocation6 + $0xe] sm:$0x3] %vm700_vm2, %v4741_v35  ;;  %v2739_v26 = vadd.f32 %v2626_v12, %v2444_v49  ;;  %v2744_v59 = vadd.f32 %v6501_v51, %v2449_v9  ;;  %v8091_v4 = vadd.f32 %v7972_v8, %v2736_v47  ;;  %v5110_v12 = vld [vmem:[#allocation6 + $0x4] sm:$0x1]  ;;  %v5173_v51 = vld [vmem:[#allocation6 + $0x3] sm:$0x1] }
 0x283   : > { %v8016_v39 = vpop.f32.mrf.mxu0  ;;  %5059 = vst.msk [vmem:[#allocation6 + $0x1e] sm:$0x3] %vm700_vm2, %v4775_v33  ;;  %v2742_v2 = vadd.f32 %v2639_v37, %v2447_v13  ;;  %v8094_v19 = vadd.f32 %v7976_v60, %v2734_v42  ;;  %v8937_v30 = vld [vmem:[#allocation31_spill] sm:$0xff]  ;;  %v8938_v49 = vld [vmem:[#allocation32_spill] sm:$0xff]  ;;  %v8939_v13 = vld [vmem:[#allocation33_spill] sm:$0xff] }
 0x284   : > { %v6502_v24 = vpop.f32.mrf.mxu1  ;;  %v8097_v50 = vadd.f32 %v8937_v30, %v2737_v6  ;;  %v8100_v9 = vadd.f32 %v8938_v49, %v2735_v44  ;;  %v8115_v47 = vadd.f32 %v7998_v28, %v2744_v59  ;;  %v5112_v6 = vld [vmem:[#allocation6 + $0x8] sm:$0x1]  ;;  %v5116_v44 = vld [vmem:[#allocation6 + $0x10] sm:$0x1]  ;;  %v5119_v30 = vld [vmem:[#allocation6 + $0x16] sm:$0x1] }
 0x285   : > { %v6536_v43 = vpop.f32.mrf.mxu0  ;;  %v2745_v57 = vadd.f32 %v6502_v24, %v2450_v63  ;;  %v8103_v63 = vadd.f32 %v8939_v13, %v2740_v29  ;;  %v5108_v24 = vld [vmem:[#allocation6] sm:$0x1]  ;;  %v5117_v29 = vld [vmem:[#allocation6 + $0x12] sm:$0x1]  ;;  %v8118_v18 = vadd.f32 %v8016_v39, %v2742_v2  ;;  %v5120_v28 = vld [vmem:[#allocation6 + $0x18] sm:$0x1] }
 0x286   : > { %v2642_v22 = vpop.f32.mrf.mxu1  ;;  %8945 = vst [vmem:[#allocation17_spill] sm:$0xff] %v8115_v47  ;;  %v5175_v59 = vld [vmem:[#allocation6 + $0x7] sm:$0x1]  ;;  %v5121_v2 = vld [vmem:[#allocation6 + $0x1a] sm:$0x1] }
 0x287   : > { %v2936_v54 = vpop.f32.mrf.mxu0  ;;  %v2743_v55 = vadd.f32 %v2642_v22, %v2448_v40  ;;  %v8940_v40 = vld [vmem:[#allocation34_spill] sm:$0xff]  ;;  %v8941_v22 = vld [vmem:[#allocation35_spill] sm:$0xff]  ;;  %v8943_v33 = vld [vmem:[#allocation36_spill] sm:$0xff]  ;;  %8946 = vst [vmem:[#allocation18_spill] sm:$0xff] %v8118_v18  ;;  %v8120_v16 = vadd.f32 %v6536_v43, %v2745_v57 }
 0x288   : > { %v6505_v7 = vpop.f32.mrf.mxu1  ;;  %v8106_v8 = vadd.f32 %v8940_v40, %v2738_v52  ;;  %v8109_v35 = vadd.f32 %v8941_v22, %v2741_v15  ;;  %v8112_v61 = vadd.f32 %v8943_v33, %v2739_v26  ;;  %v5118_v52 = vld [vmem:[#allocation6 + $0x14] sm:$0x1]  ;;  %v5113_v26 = vld [vmem:[#allocation6 + $0xa] sm:$0x1]  ;;  %v5122_v43 = vld [vmem:[#allocation6 + $0x1c] sm:$0x1] }
 0x289   : > { %v6539_v31 = vpop.f32.mrf.mxu0  ;;  %v2748_v23 = vadd.f32 %v6505_v7, %v2453_v17  ;;  %v5111_v17 = vld [vmem:[#allocation6 + $0x6] sm:$0x1]  ;;  %v5172_v7 = vld [vmem:[#allocation6 + $0x1] sm:$0x1]  ;;  %8947 = vst [vmem:[#allocation20_spill] sm:$0xff] %v8120_v16  ;;  %v8122_v5 = vadd.f32 %v2936_v54, %v2743_v55 }
 0x28a   : > { %v2655_v45 = vpop.f32.mrf.mxu1  ;;  %8942 = vst [vmem:[#allocation15_spill] sm:$0xff] %v8109_v35  ;;  %8944 = vst [vmem:[#allocation16_spill] sm:$0xff] %v8112_v61  ;;  %v5115_v39 = vld [vmem:[#allocation6 + $0xe] sm:$0x1]  ;;  %v5123_v57 = vld [vmem:[#allocation6 + $0x1e] sm:$0x1] }
 0x28b   : > { %v2949_v20 = vpop.f32.mrf.mxu0  ;;  %v2746_v48 = vadd.f32 %v2655_v45, %v2451_v14  ;;  %v5174_v14 = vld [vmem:[#allocation6 + $0x5] sm:$0x1]  ;;  %8948 = vst [vmem:[#allocation19_spill] sm:$0xff] %v8122_v5  ;;  %v5114_v45 = vld [vmem:[#allocation6 + $0xc] sm:$0x1]  ;;  %v8124_v49 = vadd.f32 %v6539_v31, %v2748_v23  ;;  %v5239_v31 = vadd.f32 %v5175_v59, %v5111_v17 }
 0x28c   : > { %v6506_v37 = vpop.f32.mrf.mxu1  ;;  %v5176_v54 = vld [vmem:[#allocation6 + $0x9] sm:$0x1]  ;;  %v5238_v55 = vadd.f32 %v5174_v14, %v5110_v12  ;;  %v5177_v5 = vld [vmem:[#allocation6 + $0xb] sm:$0x1]  ;;  %v5178_v16 = vld [vmem:[#allocation6 + $0xd] sm:$0x1] }
 0x28d   : > { %v6540_v60 = vpop.f32.mrf.mxu0  ;;  %v2749_v42 = vadd.f32 %v6506_v37, %v2454_v56  ;;  %v5237_v56 = vadd.f32 %v5173_v51, %v5109_v0  ;;  %8949 = vst [vmem:[#allocation11_spill] sm:$0xff] %v8124_v49  ;;  %v8126_v13 = vadd.f32 %v2949_v20, %v2746_v48  ;;  %v5179_v18 = vld [vmem:[#allocation6 + $0xf] sm:$0x1]  ;;  %v5236_v0 = vadd.f32 %v5172_v7, %v5108_v24  ;;  %v5180_v48 = vld [vmem:[#allocation6 + $0x11] sm:$0x1] }
 0x28e   : > { %v2658_v15 = vpop.f32.mrf.mxu1  ;;  %v5240_v23 = vadd.f32 %v5176_v54, %v5112_v6  ;;  %v5181_v51 = vld [vmem:[#allocation6 + $0x13] sm:$0x1]  ;;  %v5242_v49 = vadd.f32 %v5178_v16, %v5114_v45  ;;  %v5183_v14 = vld [vmem:[#allocation6 + $0x17] sm:$0x1]  ;;  %v5243_v47 = vadd.f32 %v5179_v18, %v5115_v39  ;;  %v5244_v61 = vadd.f32 %v5180_v48, %v5116_v44  ;;  %v5186_v7 = vld [vmem:[#allocation6 + $0x1d] sm:$0x1] }
 0x28f   : > { %v2952_v11 = vpop.f32.mrf.mxu0  ;;  %8950 = vst [vmem:[#allocation12_spill] sm:$0xff] %v8126_v13  ;;  %v2747_v40 = vadd.f32 %v2658_v15, %v8026_v27  ;;  %v8129_v37 = vadd.f32 %v6540_v60, %v2749_v42  ;;  %v5182_v15 = vld [vmem:[#allocation6 + $0x15] sm:$0x1]  ;;  %v5241_v13 = vadd.f32 %v5177_v5, %v5113_v26  ;;  %v5184_v42 = vld [vmem:[#allocation6 + $0x19] sm:$0x1]  ;;  %v5245_v35 = vadd.f32 %v5181_v51, %v5117_v29 }
 0x290   : > { %v6509_v22 = vpop.f32.mrf.mxu1  ;;  %v5246_v24 = vadd.f32 %v5182_v15, %v5118_v52  ;;  %v5248_v59 = vadd.f32 %v5184_v42, %v5120_v28  ;;  %v5250_v26 = vadd.f32 %v5186_v7, %v5122_v43  ;;  %v5300_v54 = vmul.f32 0.25, %v5236_v0 }
 0x291   : > { %8951 = vst [vmem:[#allocation22_spill] sm:$0xff] %v8129_v37  ;;  %v6543_v33 = vpop.f32.mrf.mxu0  ;;  %v8131_v20 = vadd.f32 %v2952_v11, %v2747_v40  ;;  %v2752_v27 = vadd.f32 %v6509_v22, %v8030_v34  ;;  %v5185_v37 = vld [vmem:[#allocation6 + $0x1b] sm:$0x1]  ;;  %v5187_v34 = vld [vmem:[#allocation6 + $0x1f] sm:$0x1]  ;;  %v5247_v11 = vadd.f32 %v5183_v14, %v5119_v30  ;;  %v5301_v29 = vmul.f32 0.25, %v5237_v56 }
 0x292   : > { %v2671_v12 = vpop.f32.mrf.mxu1  ;;  %v5249_v16 = vadd.f32 %v5185_v37, %v5121_v2  ;;  %v5251_v45 = vadd.f32 %v5187_v34, %v5123_v57  ;;  %v5302_v52 = vmul.f32 0.25, %v5238_v55  ;;  %v5306_v48 = vmul.f32 0.25, %v5242_v49 }
 0x293   : > { %v2965_v60 = vpop.f32.mrf.mxu0  ;;  %v8134_v17 = vadd.f32 %v6543_v33, %v2752_v27  ;;  %v2750_v6 = vadd.f32 %v2671_v12, %v8034_v1  ;;  %v5303_v33 = vmul.f32 0.25, %v5239_v31  ;;  %v5304_v1 = vmul.f32 0.25, %v5240_v23 }
 0x294   : > { %v6510_v40 = vpop.f32.mrf.mxu1  ;;  %v5305_v27 = vmul.f32 0.25, %v5241_v13  ;;  %v5307_v2 = vmul.f32 0.25, %v5243_v47  ;;  %v5308_v43 = vmul.f32 0.25, %v5244_v61  ;;  %v5309_v0 = vmul.f32 0.25, %v5245_v35 }
 0x295   : > { %v6544_v5 = vpop.f32.mrf.mxu0  ;;  %v8137_v22 = vadd.f32 %v2965_v60, %v2750_v6  ;;  %v2753_v44 = vadd.f32 %v6510_v40, %v8038_v41  ;;  %v5310_v51 = vmul.f32 0.25, %v5246_v24  ;;  %v5311_v15 = vmul.f32 0.25, %v5247_v11 }
 0x296   : > { %v2674_v18 = vpop.f32.mrf.mxu1  ;;  %v5312_v41 = vmul.f32 0.25, %v5248_v59  ;;  %v5313_v31 = vmul.f32 0.25, %v5249_v16  ;;  %v5314_v23 = vmul.f32 0.25, %v5250_v26  ;;  %v5315_v12 = vmul.f32 0.25, %v5251_v45 }
 0x297   : > { %v2968_v39 = vpop.f32.mrf.mxu0  ;;  %v8140_v30 = vadd.f32 %v6544_v5, %v2753_v44  ;;  %v2751_v28 = vadd.f32 %v2674_v18, %v8042_v10  ;;  %v5364_v60 = vpack.c.bf16 %v5300_v54, %v5300_v54  ;;  %v5365_v14 = vpack.c.bf16 %v5301_v29, %v5301_v29 }
 0x298   : > { %v6513_v57 = vpop.f32.mrf.mxu1  ;;  %v5366_v10 = vpack.c.bf16 %v5302_v52, %v5302_v52  ;;  %v5367_v35 = vpack.c.bf16 %v5303_v33, %v5303_v33  ;;  %v5368_v42 = vpack.c.bf16 %v5304_v1, %v5304_v1  ;;  %v5369_v7 = vpack.c.bf16 %v5305_v27, %v5305_v27 }
 0x299   : > { %v6547_v37 = vpop.f32.mrf.mxu0  ;;  %v8143_v56 = vadd.f32 %v2968_v39, %v2751_v28  ;;  %v2756_v55 = vadd.f32 %v6513_v57, %v8046_v62  ;;  %v5370_v34 = vpack.c.bf16 %v5306_v48, %v5306_v48  ;;  %v5371_v11 = vpack.c.bf16 %v5307_v2, %v5307_v2 }
 0x29a   : > { %v2687_v13 = vpop.f32.mrf.mxu1  ;;  %v5372_v62 = vpack.c.bf16 %v5308_v43, %v5308_v43  ;;  %v5373_v5 = vpack.c.bf16 %v5309_v0, %v5309_v0  ;;  %v5374_v16 = vpack.c.bf16 %v5310_v51, %v5310_v51  ;;  %v5375_v54 = vpack.c.bf16 %v5311_v15, %v5311_v15 }
 0x29b   : > { %v2981_v49 = vpop.f32.mrf.mxu0  ;;  %v8146_v47 = vadd.f32 %v6547_v37, %v2756_v55  ;;  %v2754_v61 = vadd.f32 %v2687_v13, %v8050_v3  ;;  %v5376_v3 = vpack.c.bf16 %v5312_v41, %v5312_v41  ;;  %v5377_v44 = vpack.c.bf16 %v5313_v31, %v5313_v31 }
 0x29c   : > { %v6514_v24 = vpop.f32.mrf.mxu1  ;;  %v5378_v29 = vpack.c.bf16 %v5314_v23, %v5314_v23  ;;  %v5379_v39 = vpack.c.bf16 %v5315_v12, %v5315_v12  ;;  %v5500_v33 = vunpack.c.l.b16 %v5364_v60  ;;  %v5502_v48 = vunpack.c.l.b16 %v5366_v10 }
 0x29d   : > { %v6548_v6 = vpop.f32.mrf.mxu0  ;;  %v8149_v59 = vadd.f32 %v2981_v49, %v2754_v61  ;;  %v2757_v40 = vadd.f32 %v6514_v24, %v8054_v53  ;;  %v5501_v53 = vunpack.c.l.b16 %v5365_v14  ;;  %v5503_v28 = vunpack.c.l.b16 %v5367_v35 }
 0x29e   : > { %v2690_v26 = vpop.f32.mrf.mxu1  ;;  %v5504_v2 = vunpack.c.l.b16 %v5368_v42  ;;  %v5505_v37 = vunpack.c.l.b16 %v5369_v7  ;;  %v5506_v0 = vunpack.c.l.b16 %v5370_v34  ;;  %v5508_v41 = vunpack.c.l.b16 %v5372_v62 }
 0x29f   : > { %v2984_v45 = vpop.f32.mrf.mxu0  ;;  %v8152_v52 = vadd.f32 %v6548_v6, %v2757_v40  ;;  %v2755_v18 = vadd.f32 %v2690_v26, %v8058_v46  ;;  %v8158_v46 = vunpack.c.l.b16 %v5371_v11  ;;  %v5509_v55 = vunpack.c.l.b16 %v5373_v5 }
 0x2a0   : > { %v6517_v1 = vpop.f32.mrf.mxu1  ;;  %v5510_v31 = vunpack.c.l.b16 %v5374_v16  ;;  %v5511_v49 = vunpack.c.l.b16 %v5375_v54  ;;  %v8163_v12 = vunpack.c.l.b16 %v5376_v3  ;;  %v8165_v14 = vunpack.c.l.b16 %v5377_v44 }
 0x2a1   : > { %v6551_v27 = vpop.f32.mrf.mxu0  ;;  %v8155_v43 = vadd.f32 %v2984_v45, %v2755_v18  ;;  %v2760_v57 = vadd.f32 %v6517_v1, %v8062_v58  ;;  %v8167_v10 = vunpack.c.l.b16 %v5378_v29  ;;  %v8169_v61 = vunpack.c.l.b16 %v5379_v39  ;;  %v5124_v1 = vld [vmem:[#allocation6 + $0x20] sm:$0x1] }
 0x2a2   : > { %v2703_v51 = vpop.f32.mrf.mxu1  ;;  %v5564_v35 = vrot.slane %v5501_v53, 7  ;;  %v5566_v6 = vrot.slane %v5502_v48, 6  ;;  %v5568_v7 = vrot.slane %v5503_v28, 5  ;;  %v5570_v62 = vrot.slane %v5504_v2, 4  ;;  %v5126_v28 = vld [vmem:[#allocation6 + $0x24] sm:$0x1] }
 0x2a3   : > { %8952 = vst [vmem:[#allocation21_spill] sm:$0xff] %v8155_v43  ;;  %v2997_v15 = vpop.f32.mrf.mxu0  ;;  %v8160_v23 = vadd.f32 %v6551_v27, %v2760_v57  ;;  %v2758_v13 = vadd.f32 %v2703_v51, %v8066_v25  ;;  %v5572_v40 = vrot.slane %v5505_v37, 3  ;;  %v5574_v5 = vrot.slane %v5506_v0, 2  ;;  %v5127_v2 = vld [vmem:[#allocation6 + $0x26] sm:$0x1] }
 0x2a4   : > { %v6518_v58 = vpop.f32.mrf.mxu1  ;;  %v5565_v11 = vsel %vm4378_vm4, %v5564_v35, %v5500_v33  ;;  %v5576_v54 = vrot.slane %v8158_v46, 1  ;;  %v5578_v29 = vrot.slane %v5509_v55, 7  ;;  %v5580_v18 = vrot.slane %v5510_v31, 6  ;;  %v5125_v33 = vld [vmem:[#allocation6 + $0x22] sm:$0x1] }
 0x2a5   : > { %8953 = vst [vmem:[#allocation24_spill] sm:$0xff] %v8160_v23  ;;  %v6552_v60 = vpop.f32.mrf.mxu0  ;;  %v8171_v42 = vadd.f32 %v2997_v15, %v2758_v13  ;;  %v2761_v24 = vadd.f32 %v6518_v58, %v8074_v21  ;;  %v5567_v45 = vsel %vm4381_vm5, %v5566_v6, %v5565_v11  ;;  %v5582_v39 = vrot.slane %v5511_v49, 5  ;;  %v5128_v57 = vld [vmem:[#allocation6 + $0x28] sm:$0x1]  ;;  %v5188_v37 = vld [vmem:[#allocation6 + $0x21] sm:$0x1] }
 0x2a6   : > { %v2706_v25 = vpop.f32.mrf.mxu1  ;;  %v5569_v21 = vsel %vm4384_vm6, %v5568_v7, %v5567_v45  ;;  %v5579_v46 = vsel %vm4378_vm4, %v5578_v29, %v5508_v41  ;;  %v5586_v55 = vrot.slane %v8165_v14, 3  ;;  %v5588_v31 = vrot.slane %v8167_v10, 2  ;;  %v5129_v13 = vld [vmem:[#allocation6 + $0x2a] sm:$0x1]  ;;  %v5130_v35 = vld [vmem:[#allocation6 + $0x2c] sm:$0x1] }
 0x2a7   : > { %8954 = vst [vmem:[#allocation23_spill] sm:$0xff] %v8171_v42  ;;  %v3000_v34 = vpop.f32.mrf.mxu0  ;;  %v8175_v16 = vadd.f32 %v6552_v60, %v2761_v24  ;;  %v2759_v26 = vadd.f32 %v2706_v25, %v8078_v38  ;;  %v5571_v48 = vsel %vm4387_vm7, %v5570_v62, %v5569_v21  ;;  %v5584_v38 = vrot.slane %v8163_v12, 4  ;;  %v5132_v24 = vld [vmem:[#allocation6 + $0x30] sm:$0x1]  ;;  %v5190_v6 = vld [vmem:[#allocation6 + $0x25] sm:$0x1] }
 0x2a8   : > { %v6521_v3 = vpop.f32.mrf.mxu1  ;;  %v5573_v15 = vsel %vm4390_vm8, %v5572_v40, %v5571_v48  ;;  %v5581_v60 = vsel %vm4381_vm5, %v5580_v18, %v5579_v46  ;;  %v5191_v7 = vld [vmem:[#allocation6 + $0x27] sm:$0x1]  ;;  %v5192_v25 = vld [vmem:[#allocation6 + $0x29] sm:$0x1]  ;;  %v5590_v11 = vrot.slane %v8169_v61, 1 }
 0x2a9   : > { %8955 = vst [vmem:[#allocation26_spill] sm:$0xff] %v8175_v16  ;;  %v6555_v44 = vpop.f32.mrf.mxu0  ;;  %v8181_v27 = vadd.f32 %v3000_v34, %v2759_v26  ;;  %v2764_v53 = vadd.f32 %v6521_v3, %v8084_v32  ;;  %v5189_v32 = vld [vmem:[#allocation6 + $0x23] sm:$0x1]  ;;  %v5575_v12 = vsel %vm4393_vm9, %v5574_v5, %v5573_v15  ;;  %v5583_v10 = vsel %vm4384_vm6, %v5582_v39, %v5581_v60  ;;  %v5133_v62 = vld [vmem:[#allocation6 + $0x32] sm:$0x1]  ;;  %v8958_v5 = vld [vmem:[#allocation29_spill] sm:$0xff] }
 0x2aa   : > { %v2719_v0 = vpop.f32.mrf.mxu1  ;;  %v5577_v14 = vsel %vm4396_vm10, %v5576_v54, %v5575_v12  ;;  %v5193_v40 = vld [vmem:[#allocation6 + $0x2b] sm:$0x1]  ;;  %v5252_v26 = vadd.f32 %v5188_v37, %v5124_v1  ;;  %v5134_v21 = vld [vmem:[#allocation6 + $0x34] sm:$0x1]  ;;  %v5135_v29 = vld [vmem:[#allocation6 + $0x36] sm:$0x1]  ;;  %v5253_v39 = vadd.f32 %v5189_v32, %v5125_v33  ;;  %v5255_v12 = vadd.f32 %v5191_v7, %v5127_v2 }
 0x2ab   : > { %8956 = vst [vmem:[#allocation25_spill] sm:$0xff] %v8181_v27  ;;  %v3013_v51 = vpop.f32.mrf.mxu0  ;;  %v2762_v49 = vadd.f32 %v2719_v0, %v8088_v36  ;;  %v8191_v58 = vadd.f32 %v6555_v44, %v2764_v53  ;;  %v5131_v36 = vld [vmem:[#allocation6 + $0x2e] sm:$0x1]  ;;  %v5585_v44 = vsel %vm4387_vm7, %v5584_v38, %v5583_v10  ;;  %v5136_v18 = vld [vmem:[#allocation6 + $0x38] sm:$0x1]  ;;  %v5256_v60 = vadd.f32 %v5192_v25, %v5128_v57 }
 0x2ac   : > { %v6522_v41 = vpop.f32.mrf.mxu1  ;;  %v5137_v53 = vld [vmem:[#allocation6 + $0x3a] sm:$0x1]  ;;  %v5194_v48 = vld [vmem:[#allocation6 + $0x2d] sm:$0x1]  ;;  %v5195_v54 = vld [vmem:[#allocation6 + $0x2f] sm:$0x1]  ;;  %v5587_v37 = vsel %vm4390_vm8, %v5586_v55, %v5585_v44  ;;  %v5257_v27 = vadd.f32 %v5193_v40, %v5129_v13 }
 0x2ad   : > { %8957 = vst [vmem:[#allocation28_spill] sm:$0xff] %v8191_v58  ;;  %v6556_v34 = vpop.f32.mrf.mxu0  ;;  %v2765_v45 = vadd.f32 %v6522_v41, %v8958_v5  ;;  %v8199_v3 = vadd.f32 %v3013_v51, %v2762_v49  ;;  %v5196_v0 = vld [vmem:[#allocation6 + $0x31] sm:$0x1]  ;;  %v8205_v1 = vld [vmem:[%s8880_s4] ss:$0 sm:$0xff]  ;;  %v5254_v49 = vadd.f32 %v5190_v6, %v5126_v28  ;;  %v8960_v41 = vld [vmem:[#allocation30_spill] sm:$0xff]  ;;  %v5589_v33 = vsel %vm4393_vm9, %v5588_v31, %v5587_v37 }
 0x2ae   : > { %v2722_v15 = vpop.f32.mrf.mxu1  ;;  %v5138_v51 = vld [vmem:[#allocation6 + $0x3c] sm:$0x1]  ;;  %v5197_v46 = vld [vmem:[#allocation6 + $0x33] sm:$0x1]  ;;  %v5198_v38 = vld [vmem:[#allocation6 + $0x35] sm:$0x1]  ;;  %v5591_v42 = vsel %vm4396_vm10, %v5590_v11, %v5589_v33  ;;  %v5258_v43 = vadd.f32 %v5194_v48, %v5130_v35  ;;  %v5259_v28 = vadd.f32 %v5195_v54, %v5131_v36  ;;  %v5260_v2 = vadd.f32 %v5196_v0, %v5132_v24 }
 0x2af   : > { %8959 = vst [vmem:[#allocation27_spill] sm:$0xff] %v8199_v3  ;;  %v3016_v61 = vpop.f32.mrf.mxu0  ;;  %v2763_v10 = vadd.f32 %v2722_v15, %v8960_v41  ;;  %v8209_v5 = vadd.f32 %v6556_v34, %v2765_v45  ;;  %v5199_v32 = vld [vmem:[#allocation6 + $0x37] sm:$0x1]  ;;  %v5200_v3 = vld [vmem:[#allocation6 + $0x39] sm:$0x1]  ;;  %v5676_v7 = vpack.c.b16 %v5591_v42, %v5577_v14  ;;  %v5261_v25 = vadd.f32 %v5197_v46, %v5133_v62 }
 0x2b0   : > { %v5201_v58 = vld [vmem:[#allocation6 + $0x3b] sm:$0x1]  ;;  %v6561_v16 = vpop.f32.mrf.mxu1  ;;  %v5139_v55 = vld [vmem:[#allocation6 + $0x3e] sm:$0x1]  ;;  %v5202_v44 = vld [vmem:[#allocation6 + $0x3d] sm:$0x1]  ;;  %v5262_v34 = vadd.f32 %v5198_v38, %v5134_v21  ;;  %v5263_v45 = vadd.f32 %v5199_v32, %v5135_v29  ;;  %v5264_v15 = vadd.f32 %v5200_v3, %v5136_v18 }
 0x2b1   : > { %v5203_v23 = vld [vmem:[#allocation6 + $0x3f] sm:$0x1]  ;;  %v8213_v57 = vadd.f32 %v3016_v61, %v2763_v10  ;;  %v3324_v6 = vadd.f32 %v6561_v16, %v8091_v4  ;;  %v5265_v13 = vadd.f32 %v5201_v58, %v5137_v53  ;;  %6603 = vmatprep.mubr.msk.bf16.mxu1 %vm452_vm1, %v5676_v7  ;;  %v5266_v35 = vadd.f32 %v5202_v44, %v5138_v51 }
 0x2b2   : > { %v3195_v31 = vpop.f32.mrf.mxu1  ;;  %v5267_v36 = vadd.f32 %v5203_v23, %v5139_v55  ;;  %v8219_v48 = vmul.f32 0.25, %v5252_v26  ;;  %v8221_v54 = vmul.f32 0.25, %v5253_v39  ;;  %v8223_v4 = vmul.f32 0.25, %v5254_v49 }
 0x2b3   : > { %v3363_v40 = vadd.f32 %v8205_v1, %v3324_v6  ;;  %v3322_v11 = vadd.f32 %v3195_v31, %v8094_v19  ;;  %v8225_v42 = vmul.f32 0.25, %v5255_v12  ;;  %v8229_v62 = vmul.f32 0.25, %v5256_v60 }
 0x2b4   : > { %v6562_v24 = vpop.f32.mrf.mxu1  ;;  %v8231_v3 = vmul.f32 0.25, %v5257_v27  ;;  %v8233_v23 = vmul.f32 0.25, %v5258_v43  ;;  %v8235_v26 = vmul.f32 0.25, %v5259_v28  ;;  %v8237_v21 = vmul.f32 0.25, %v5260_v2 }
 0x2b5   : > { %v3395_v16 = vmax.f32 %v3363_v40, 0.0  ;;  %v3361_v58 = vadd.f32 %v8205_v1, %v3322_v11  ;;  %v3325_v14 = vadd.f32 %v6562_v24, %v8097_v50  ;;  %v8242_v0 = vmul.f32 0.25, %v5261_v25  ;;  %v8961_v25 = vld [vmem:[#allocation15_spill] sm:$0xff]  ;;  %v8962_v24 = vld [vmem:[#allocation16_spill] sm:$0xff] }
 0x2b6   : > { %v3198_v19 = vpop.f32.mrf.mxu1  ;;  %v8244_v39 = vmul.f32 0.25, %v5262_v34  ;;  %v8246_v27 = vmul.f32 0.25, %v5263_v45  ;;  %v8248_v43 = vmul.f32 0.25, %v5264_v15  ;;  %v8250_v61 = vmul.f32 0.25, %v5265_v13 }
 0x2b7   : > { %3427 = vst.msk [vmem:[#allocation3 + $0x10] sm:$0xff] %vm452_vm1, %v3395_v16  ;;  %v3393_v29 = vmax.f32 %v3361_v58, 0.0  ;;  %v3364_v18 = vadd.f32 %v8205_v1, %v3325_v14  ;;  %v3323_v53 = vadd.f32 %v3198_v19, %v8100_v9  ;;  %v8255_v38 = vmul.f32 0.25, %v5266_v35 }
 0x2b8   : > { %v6565_v50 = vpop.f32.mrf.mxu1  ;;  %v8257_v49 = vmul.f32 0.25, %v5267_v36  ;;  %v5380_v12 = vpack.c.bf16 %v8219_v48, %v8219_v48  ;;  %v5381_v60 = vpack.c.bf16 %v8221_v54, %v8221_v54  ;;  %v5382_v41 = vpack.c.bf16 %v8223_v4, %v8223_v4 }
 0x2b9   : > { %3425 = vst.msk [vmem:[#allocation3] sm:$0xff] %vm452_vm1, %v3393_v29  ;;  %v3396_v37 = vmax.f32 %v3364_v18, 0.0  ;;  %v3362_v51 = vadd.f32 %v8205_v1, %v3323_v53  ;;  %v3328_v46 = vadd.f32 %v6565_v50, %v8103_v63  ;;  %v5383_v32 = vpack.c.bf16 %v8225_v42, %v8225_v42 }
 0x2ba   : > { %v3211_v9 = vpop.f32.mrf.mxu1  ;;  %v5384_v44 = vpack.c.bf16 %v8229_v62, %v8229_v62  ;;  %v5385_v28 = vpack.c.bf16 %v8231_v3, %v8231_v3  ;;  %v5386_v2 = vpack.c.bf16 %v8233_v23, %v8233_v23  ;;  %v5387_v6 = vpack.c.bf16 %v8235_v26, %v8235_v26 }
 0x2bb   : > { %3428 = vst.msk [vmem:[#allocation3 + $0x18] sm:$0xff] %vm452_vm1, %v3396_v37  ;;  %v3394_v10 = vmax.f32 %v3362_v51, 0.0  ;;  %v3367_v33 = vadd.f32 %v8205_v1, %v3328_v46  ;;  %v3326_v63 = vadd.f32 %v3211_v9, %v8106_v8  ;;  %v5388_v34 = vpack.c.bf16 %v8237_v21, %v8237_v21  ;;  %v8963_v21 = vld [vmem:[#allocation17_spill] sm:$0xff] }
 0x2bc   : > { %v6566_v55 = vpop.f32.mrf.mxu1  ;;  %v5389_v15 = vpack.c.bf16 %v8242_v0, %v8242_v0  ;;  %v5390_v13 = vpack.c.bf16 %v8244_v39, %v8244_v39  ;;  %v5391_v40 = vpack.c.bf16 %v8246_v27, %v8246_v27  ;;  %v5392_v11 = vpack.c.bf16 %v8248_v43, %v8248_v43  ;;  %v8964_v43 = vld [vmem:[#allocation10_spill] sm:$0xff] }
 0x2bd   : > { %3426 = vst.msk [vmem:[#allocation3 + $0x8] sm:$0xff] %vm452_vm1, %v3394_v10  ;;  %v3399_v7 = vmax.f32 %v3367_v33, 0.0  ;;  %v3365_v8 = vadd.f32 %v8205_v1, %v3326_v63  ;;  %v3329_v31 = vadd.f32 %v6566_v55, %v8961_v25  ;;  %v5393_v54 = vpack.c.bf16 %v8250_v61, %v8250_v61  ;;  %v8969_v61 = vld [vmem:[#allocation12_spill] sm:$0xff] }
 0x2be   : > { %v3214_v45 = vpop.f32.mrf.mxu1  ;;  %v3473_v4 = vld [vmem:[#allocation3 + $0x10] sm:$0xff]  ;;  %v5394_v58 = vpack.c.bf16 %v8255_v38, %v8255_v38  ;;  %v5395_v14 = vpack.c.bf16 %v8257_v49, %v8257_v49  ;;  %v8300_v62 = vunpack.c.l.b16 %v5380_v12  ;;  %v8302_v19 = vunpack.c.l.b16 %v5381_v60  ;;  %v8965_v12 = vld [vmem:[#allocation18_spill] sm:$0xff] }
 0x2bf   : > { %3431 = vst.msk [vmem:[#allocation3 + $0x30] sm:$0xff] %vm452_vm1, %v3399_v7  ;;  %v3397_v35 = vmax.f32 %v3365_v8, 0.0  ;;  %v3368_v36 = vadd.f32 %v8205_v1, %v3329_v31  ;;  %v3327_v48 = vadd.f32 %v3214_v45, %v8962_v24  ;;  %v8307_v53 = vunpack.c.l.b16 %v5382_v41  ;;  %v8966_v8 = vld [vmem:[#allocation20_spill] sm:$0xff] }
 0x2c0   : > { %v3457_v42 = vld [vmem:[#allocation3] sm:$0xff]  ;;  %v6569_v16 = vpop.f32.mrf.mxu1  ;;  %v8309_v0 = vunpack.c.l.b16 %v5383_v32  ;;  %v8311_v50 = vunpack.c.l.b16 %v5384_v44  ;;  %v8313_v39 = vunpack.c.l.b16 %v5385_v28  ;;  %v8319_v10 = vunpack.c.l.b16 %v5386_v2 }
 0x2c1   : > { %v3489_v3 = vadd.f32 %v3473_v4, %v3457_v42  ;;  %3429 = vst.msk [vmem:[#allocation3 + $0x20] sm:$0xff] %vm452_vm1, %v3397_v35  ;;  %v3400_v23 = vmax.f32 %v3368_v36, 0.0  ;;  %v3366_v26 = vadd.f32 %v8205_v1, %v3327_v48  ;;  %v3332_v29 = vadd.f32 %v6569_v16, %v8963_v21  ;;  %v8967_v36 = vld [vmem:[#allocation19_spill] sm:$0xff] }
 0x2c2   : > { %v3227_v18 = vpop.f32.mrf.mxu1  ;;  %v3474_v38 = vld [vmem:[#allocation3 + $0x18] sm:$0xff]  ;;  %v8321_v33 = vunpack.c.l.b16 %v5387_v6  ;;  %v8323_v63 = vunpack.c.l.b16 %v5388_v34  ;;  %v8330_v2 = vunpack.c.l.b16 %v5389_v15  ;;  %v8332_v6 = vunpack.c.l.b16 %v5390_v13 }
 0x2c3   : > { %v3521_v27 = vcombine.high %v3489_v3, %v3489_v3  ;;  %v3528_v37 = vrot.slane %v3489_v3, %v8964_v43  ;;  %3432 = vst.msk [vmem:[#allocation3 + $0x38] sm:$0xff] %vm452_vm1, %v3400_v23  ;;  %v3398_v51 = vmax.f32 %v3366_v26, 0.0  ;;  %v3371_v46 = vadd.f32 %v8205_v1, %v3332_v29 }
 0x2c4   : > { %v3458_v9 = vld [vmem:[#allocation3 + $0x8] sm:$0xff]  ;;  %v3330_v60 = vadd.f32 %v3227_v18, %v8965_v12  ;;  %v6570_v41 = vpop.f32.mrf.mxu1  ;;  %v8340_v13 = vunpack.c.l.b16 %v5391_v40  ;;  %v8342_v3 = vunpack.c.l.b16 %v5392_v11  ;;  %v8353_v40 = vunpack.c.l.b16 %v5393_v54 }
 0x2c5   : > { %v3535_v32 = vrot.slane %v3521_v27, %v8964_v43  ;;  %v3536_v55 = vcombine.high %v3528_v37, %v3528_v37  ;;  %3857 = vst.msk [vmem:[#allocation4] sm:$0x3] %vm700_vm2, %v3528_v37  ;;  %v3490_v44 = vadd.f32 %v3474_v38, %v3458_v9  ;;  %v3403_v28 = vmax.f32 %v3371_v46, 0.0  ;;  %v8968_v27 = vld [vmem:[#allocation11_spill] sm:$0xff] }
 0x2c6   : > { %3430 = vst.msk [vmem:[#allocation3 + $0x28] sm:$0xff] %vm452_vm1, %v3398_v51  ;;  %v3369_v7 = vadd.f32 %v8205_v1, %v3330_v60  ;;  %v3333_v25 = vadd.f32 %v6570_v41, %v8966_v8  ;;  %v3230_v31 = vpop.f32.mrf.mxu1  ;;  %v3475_v48 = vld [vmem:[#allocation3 + $0x30] sm:$0xff]  ;;  %v8355_v11 = vunpack.c.l.b16 %v5394_v58 }
 0x2c7   : > { %v3537_v34 = vcombine.high %v3535_v32, %v3535_v32  ;;  %3858 = vst.msk [vmem:[#allocation4 + $0x2] sm:$0x3] %vm700_vm2, %v3536_v55  ;;  %3859 = vst.msk [vmem:[#allocation4 + $0x4] sm:$0x3] %vm700_vm2, %v3535_v32  ;;  %v3538_v45 = vcombine.high %v3490_v44, %v3490_v44  ;;  %v3545_v35 = vrot.slane %v3490_v44, %v8964_v43 }
 0x2c8   : > { %3435 = vst.msk [vmem:[#allocation3 + $0x50] sm:$0xff] %vm452_vm1, %v3403_v28  ;;  %v3331_v24 = vadd.f32 %v3230_v31, %v8967_v36  ;;  %v3459_v4 = vld [vmem:[#allocation3 + $0x20] sm:$0xff]  ;;  %v3401_v42 = vmax.f32 %v3369_v7, 0.0  ;;  %v3372_v15 = vadd.f32 %v8205_v1, %v3333_v25  ;;  %v6573_v16 = vpop.f32.mrf.mxu1  ;;  %v8366_v28 = vunpack.c.l.b16 %v5395_v14 }
 0x2c9   : > { %3860 = vst.msk [vmem:[#allocation4 + $0x6] sm:$0x3] %vm700_vm2, %v3537_v34  ;;  %v3552_v23 = vrot.slane %v3538_v45, %v8964_v43  ;;  %v3553_v26 = vcombine.high %v3545_v35, %v3545_v35  ;;  %3861 = vst.msk [vmem:[#allocation4 + $0x8] sm:$0x3] %vm700_vm2, %v3545_v35  ;;  %v3491_v21 = vadd.f32 %v3475_v48, %v3459_v4  ;;  %v5592_v7 = vrot.slane %v8302_v19, 7  ;;  %v8971_v34 = vld [vmem:[#allocation22_spill] sm:$0xff] }
 0x2ca   : > { %v3370_v29 = vadd.f32 %v8205_v1, %v3331_v24  ;;  %3433 = vst.msk [vmem:[#allocation3 + $0x40] sm:$0xff] %vm452_vm1, %v3401_v42  ;;  %v3404_v18 = vmax.f32 %v3372_v15, 0.0  ;;  %v3336_v37 = vadd.f32 %v6573_v16, %v8968_v27  ;;  %v3243_v51 = vpop.f32.mrf.mxu1  ;;  %v3476_v12 = vld [vmem:[#allocation3 + $0x38] sm:$0xff]  ;;  %8970 = vst [vmem:[#allocation31_spill] sm:$0xff] %v8366_v28 }
 0x2cb   : > { %v3554_v46 = vcombine.high %v3552_v23, %v3552_v23  ;;  %3862 = vst.msk [vmem:[#allocation4 + $0xa] sm:$0x3] %vm700_vm2, %v3553_v26  ;;  %3863 = vst.msk [vmem:[#allocation4 + $0xc] sm:$0x3] %vm700_vm2, %v3552_v23  ;;  %v3555_v38 = vcombine.high %v3491_v21, %v3491_v21  ;;  %v3562_v9 = vrot.slane %v3491_v21, %v8964_v43 }
 0x2cc   : > { %v3402_v60 = vmax.f32 %v3370_v29, 0.0  ;;  %3436 = vst.msk [vmem:[#allocation3 + $0x58] sm:$0xff] %vm452_vm1, %v3404_v18  ;;  %v3375_v32 = vadd.f32 %v8205_v1, %v3336_v37  ;;  %v3334_v54 = vadd.f32 %v3243_v51, %v8969_v61  ;;  %v6574_v55 = vpop.f32.mrf.mxu1  ;;  %v3921_v58 = vld [vmem:[#allocation4] sm:$0x1]  ;;  %v3985_v44 = vld [vmem:[#allocation4 + $0x1] sm:$0x1]  ;;  %v8379_v19 = vsel %vm4378_vm4, %v5592_v7, %v8300_v62 }
 0x2cd   : > { %v3460_v41 = vld [vmem:[#allocation3 + $0x28] sm:$0xff]  ;;  %3864 = vst.msk [vmem:[#allocation4 + $0xe] sm:$0x3] %vm700_vm2, %v3554_v46  ;;  %v3569_v8 = vrot.slane %v3555_v38, %v8964_v43  ;;  %v3570_v25 = vcombine.high %v3562_v9, %v3562_v9  ;;  %3865 = vst.msk [vmem:[#allocation4 + $0x10] sm:$0x3] %vm700_vm2, %v3562_v9  ;;  %v3337_v45 = vadd.f32 %v6574_v55, %v8971_v34 }
 0x2ce   : > { %v3492_v31 = vadd.f32 %v3476_v12, %v3460_v41  ;;  %3434 = vst.msk [vmem:[#allocation3 + $0x48] sm:$0xff] %vm452_vm1, %v3402_v60  ;;  %v3407_v35 = vmax.f32 %v3375_v32, 0.0  ;;  %v3373_v36 = vadd.f32 %v8205_v1, %v3334_v54  ;;  %v3246_v49 = vpop.f32.mrf.mxu1  ;;  %v3922_v14 = vld [vmem:[#allocation4 + $0x2] sm:$0x1]  ;;  %v3923_v24 = vld [vmem:[#allocation4 + $0x4] sm:$0x1]  ;;  %v8375_v48 = vadd.f32 %v3985_v44, %v3921_v58 }
 0x2cf   : > { %v3571_v4 = vcombine.high %v3569_v8, %v3569_v8  ;;  %3866 = vst.msk [vmem:[#allocation4 + $0x12] sm:$0x3] %vm700_vm2, %v3570_v25  ;;  %3867 = vst.msk [vmem:[#allocation4 + $0x14] sm:$0x3] %vm700_vm2, %v3569_v8  ;;  %v3376_v16 = vadd.f32 %v8205_v1, %v3337_v45  ;;  %v3986_v23 = vld [vmem:[#allocation4 + $0x3] sm:$0x1]  ;;  %v3335_v18 = vadd.f32 %v3246_v49, %v8131_v20 }
 0x2d0   : > { %v3572_v42 = vcombine.high %v3492_v31, %v3492_v31  ;;  %v3579_v15 = vrot.slane %v3492_v31, %v8964_v43  ;;  %v3987_v26 = vld [vmem:[#allocation4 + $0x5] sm:$0x1]  ;;  %v3477_v21 = vld [vmem:[#allocation3 + $0x50] sm:$0xff]  ;;  %3439 = vst.msk [vmem:[#allocation3 + $0x70] sm:$0xff] %vm452_vm1, %v3407_v35  ;;  %v3405_v29 = vmax.f32 %v3373_v36, 0.0  ;;  %v6577_v62 = vpop.f32.mrf.mxu1  ;;  %v8387_v51 = vadd.f32 %v3986_v23, %v3922_v14 }
 0x2d1   : > { %v3924_v27 = vld [vmem:[#allocation4 + $0x6] sm:$0x1]  ;;  %v3925_v37 = vld [vmem:[#allocation4 + $0x8] sm:$0x1]  ;;  %v8389_v46 = vadd.f32 %v3987_v26, %v3923_v24  ;;  %3868 = vst.msk [vmem:[#allocation4 + $0x16] sm:$0x3] %vm700_vm2, %v3571_v4  ;;  %v3340_v41 = vadd.f32 %v6577_v62, %v8134_v17  ;;  %v3374_v54 = vadd.f32 %v8205_v1, %v3335_v18 }
 0x2d2   : > { %v3586_v38 = vrot.slane %v3572_v42, %v8964_v43  ;;  %v3587_v9 = vcombine.high %v3579_v15, %v3579_v15  ;;  %3869 = vst.msk [vmem:[#allocation4 + $0x18] sm:$0x3] %vm700_vm2, %v3579_v15  ;;  %v3461_v12 = vld [vmem:[#allocation3 + $0x40] sm:$0xff]  ;;  %v3408_v60 = vmax.f32 %v3376_v16, 0.0  ;;  %v3989_v20 = vld [vmem:[#allocation4 + $0x9] sm:$0x1]  ;;  %v3259_v55 = vpop.f32.mrf.mxu1 }
 0x2d3   : > { %v3988_v32 = vld [vmem:[#allocation4 + $0x7] sm:$0x1]  ;;  %v3493_v61 = vadd.f32 %v3477_v21, %v3461_v12  ;;  %3437 = vst.msk [vmem:[#allocation3 + $0x60] sm:$0xff] %vm452_vm1, %v3405_v29  ;;  %v3926_v58 = vld [vmem:[#allocation4 + $0xa] sm:$0x1]  ;;  %v8399_v25 = vadd.f32 %v3989_v20, %v3925_v37  ;;  %v3478_v17 = vld [vmem:[#allocation3 + $0x58] sm:$0xff]  ;;  %v3379_v34 = vadd.f32 %v8205_v1, %v3340_v41  ;;  %v3338_v45 = vadd.f32 %v3259_v55, %v8137_v22 }
 0x2d4   : > { %v3927_v44 = vld [vmem:[#allocation4 + $0xc] sm:$0x1]  ;;  %v3990_v7 = vld [vmem:[#allocation4 + $0xb] sm:$0x1]  ;;  %v8397_v8 = vadd.f32 %v3988_v32, %v3924_v27  ;;  %v3588_v31 = vcombine.high %v3586_v38, %v3586_v38  ;;  %3870 = vst.msk [vmem:[#allocation4 + $0x1a] sm:$0x3] %vm700_vm2, %v3587_v9  ;;  %v6578_v42 = vpop.f32.mrf.mxu1 }
 0x2d5   : > { %3871 = vst.msk [vmem:[#allocation4 + $0x1c] sm:$0x3] %vm700_vm2, %v3586_v38  ;;  %v3991_v35 = vld [vmem:[#allocation4 + $0xd] sm:$0x1]  ;;  %v8406_v36 = vadd.f32 %v3990_v7, %v3926_v58  ;;  %v3589_v49 = vcombine.high %v3493_v61, %v3493_v61  ;;  %v3596_v14 = vrot.slane %v3493_v61, %v8964_v43  ;;  %v3406_v4 = vmax.f32 %v3374_v54, 0.0 }
 0x2d6   : > { %3440 = vst.msk [vmem:[#allocation3 + $0x78] sm:$0xff] %vm452_vm1, %v3408_v60  ;;  %v3462_v24 = vld [vmem:[#allocation3 + $0x48] sm:$0xff]  ;;  %v3929_v16 = vld [vmem:[#allocation4 + $0x10] sm:$0x1]  ;;  %v8409_v23 = vadd.f32 %v3991_v35, %v3927_v44  ;;  %v3411_v21 = vmax.f32 %v3379_v34, 0.0  ;;  %v3377_v29 = vadd.f32 %v8205_v1, %v3338_v45  ;;  %v3341_v22 = vadd.f32 %v6578_v42, %v8140_v30  ;;  %v3262_v38 = vpop.f32.mrf.mxu1 }
 0x2d7   : > { %v3928_v15 = vld [vmem:[#allocation4 + $0xe] sm:$0x1]  ;;  %3872 = vst.msk [vmem:[#allocation4 + $0x1e] sm:$0x3] %vm700_vm2, %v3588_v31  ;;  %v3494_v26 = vadd.f32 %v3478_v17, %v3462_v24  ;;  %v3992_v18 = vld [vmem:[#allocation4 + $0xf] sm:$0x1]  ;;  %v3603_v27 = vrot.slane %v3589_v49, %v8964_v43  ;;  %v3604_v37 = vcombine.high %v3596_v14, %v3596_v14  ;;  %v3339_v44 = vadd.f32 %v3262_v38, %v8143_v56 }
 0x2d8   : > { %v3993_v62 = vld [vmem:[#allocation4 + $0x11] sm:$0x1]  ;;  %3873 = vst.msk [vmem:[#allocation4 + $0x20] sm:$0x3] %vm700_vm2, %v3596_v14  ;;  %v3930_v9 = vld [vmem:[#allocation4 + $0x12] sm:$0x1]  ;;  %v8417_v41 = vadd.f32 %v3992_v18, %v3928_v15  ;;  %v3380_v54 = vadd.f32 %v8205_v1, %v3341_v22  ;;  %v6581_v7 = vpop.f32.mrf.mxu1 }
 0x2d9   : > { %3438 = vst.msk [vmem:[#allocation3 + $0x68] sm:$0xff] %vm452_vm1, %v3406_v4  ;;  %v3931_v12 = vld [vmem:[#allocation4 + $0x14] sm:$0x1]  ;;  %v3994_v60 = vld [vmem:[#allocation4 + $0x13] sm:$0x1]  ;;  %v8419_v32 = vadd.f32 %v3993_v62, %v3929_v16  ;;  %v3606_v20 = vcombine.high %v3494_v26, %v3494_v26  ;;  %v3613_v30 = vrot.slane %v3494_v26, %v8964_v43  ;;  %3443 = vst.msk [vmem:[#allocation3 + $0x90] sm:$0xff] %vm452_vm1, %v3411_v21 }
 0x2da   : > { %v3409_v61 = vmax.f32 %v3377_v29, 0.0  ;;  %v3995_v55 = vld [vmem:[#allocation4 + $0x15] sm:$0x1]  ;;  %v3605_v58 = vcombine.high %v3603_v27, %v3603_v27  ;;  %3874 = vst.msk [vmem:[#allocation4 + $0x22] sm:$0x3] %vm700_vm2, %v3604_v37  ;;  %v8427_v45 = vadd.f32 %v3994_v60, %v3930_v9  ;;  %v3463_v4 = vld [vmem:[#allocation3 + $0x60] sm:$0xff]  ;;  %v3344_v56 = vadd.f32 %v6581_v7, %v8146_v47  ;;  %v3275_v21 = vpop.f32.mrf.mxu1 }
 0x2db   : > { %3875 = vst.msk [vmem:[#allocation4 + $0x24] sm:$0x3] %vm700_vm2, %v3603_v27  ;;  %v3932_v31 = vld [vmem:[#allocation4 + $0x16] sm:$0x1]  ;;  %v3933_v17 = vld [vmem:[#allocation4 + $0x18] sm:$0x1]  ;;  %v8429_v35 = vadd.f32 %v3995_v55, %v3931_v12  ;;  %v3620_v49 = vrot.slane %v3606_v20, %v8964_v43  ;;  %v3621_v14 = vcombine.high %v3613_v30, %v3613_v30  ;;  %v3378_v26 = vadd.f32 %v8205_v1, %v3339_v44 }
 0x2dc   : > { %v3996_v34 = vld [vmem:[#allocation4 + $0x17] sm:$0x1]  ;;  %3877 = vst.msk [vmem:[#allocation4 + $0x28] sm:$0x3] %vm700_vm2, %v3613_v30  ;;  %v3412_v42 = vmax.f32 %v3380_v54, 0.0  ;;  %v3383_v47 = vadd.f32 %v8205_v1, %v3344_v56  ;;  %v3342_v37 = vadd.f32 %v3275_v21, %v8149_v59  ;;  %v8447_v12 = vmul.f32 0.25, %v8375_v48 }
 0x2dd   : > { %v3479_v24 = vld [vmem:[#allocation3 + $0x70] sm:$0xff]  ;;  %3441 = vst.msk [vmem:[#allocation3 + $0x80] sm:$0xff] %vm452_vm1, %v3409_v61  ;;  %v3997_v15 = vld [vmem:[#allocation4 + $0x19] sm:$0x1]  ;;  %v3934_v29 = vld [vmem:[#allocation4 + $0x1a] sm:$0x1]  ;;  %v8437_v18 = vadd.f32 %v3996_v34, %v3932_v31  ;;  %v3622_v27 = vcombine.high %v3620_v49, %v3620_v49  ;;  %v6582_v61 = vpop.f32.mrf.mxu1 }
 0x2de   : > { %3876 = vst.msk [vmem:[#allocation4 + $0x26] sm:$0x3] %vm700_vm2, %v3605_v58  ;;  %v3495_v16 = vadd.f32 %v3479_v24, %v3463_v4  ;;  %v3935_v22 = vld [vmem:[#allocation4 + $0x1c] sm:$0x1]  ;;  %v8439_v62 = vadd.f32 %v3997_v15, %v3933_v17  ;;  %3878 = vst.msk [vmem:[#allocation4 + $0x2a] sm:$0x3] %vm700_vm2, %v3621_v14  ;;  %v3381_v59 = vadd.f32 %v8205_v1, %v3342_v37 }
 0x2df   : > { %3879 = vst.msk [vmem:[#allocation4 + $0x2c] sm:$0x3] %vm700_vm2, %v3620_v49  ;;  %v3998_v38 = vld [vmem:[#allocation4 + $0x1b] sm:$0x1]  ;;  %v3999_v9 = vld [vmem:[#allocation4 + $0x1d] sm:$0x1]  ;;  %v3345_v17 = vadd.f32 %v6582_v61, %v8152_v52  ;;  %v3278_v24 = vpop.f32.mrf.mxu1 }
 0x2e0   : > { %3444 = vst.msk [vmem:[#allocation3 + $0x98] sm:$0xff] %vm452_vm1, %v3412_v42  ;;  %v3623_v60 = vcombine.high %v3495_v16, %v3495_v16  ;;  %v3630_v20 = vrot.slane %v3495_v16, %v8964_v43  ;;  %v3410_v30 = vmax.f32 %v3378_v26, 0.0  ;;  %v3936_v54 = vld [vmem:[#allocation4 + $0x1e] sm:$0x1]  ;;  %v4000_v55 = vld [vmem:[#allocation4 + $0x1f] sm:$0x1]  ;;  %v8450_v58 = vadd.f32 %v3998_v38, %v3934_v29 }
 0x2e1   : > { %3880 = vst.msk [vmem:[#allocation4 + $0x2e] sm:$0x3] %vm700_vm2, %v3622_v27  ;;  %v3480_v44 = vld [vmem:[#allocation3 + $0x78] sm:$0xff]  ;;  %v3464_v7 = vld [vmem:[#allocation3 + $0x68] sm:$0xff]  ;;  %v3415_v31 = vmax.f32 %v3383_v47, 0.0  ;;  %v8455_v48 = vadd.f32 %v3999_v9, %v3935_v22  ;;  %v8460_v4 = vadd.f32 %v4000_v55, %v3936_v54  ;;  %v3413_v42 = vmax.f32 %v3381_v59, 0.0  ;;  %v6585_v47 = vpop.f32.mrf.mxu1 }
 0x2e2   : > { %v3637_v34 = vrot.slane %v3623_v60, %v8964_v43  ;;  %v3638_v49 = vcombine.high %v3630_v20, %v3630_v20  ;;  %3881 = vst.msk [vmem:[#allocation4 + $0x30] sm:$0x3] %vm700_vm2, %v3630_v20  ;;  %v3496_v14 = vadd.f32 %v3480_v44, %v3464_v7  ;;  %v3384_v56 = vadd.f32 %v8205_v1, %v3345_v17  ;;  %v8972_v15 = vld [vmem:[#allocation21_spill] sm:$0xff]  ;;  %v3481_v22 = vld [vmem:[#allocation3 + $0x90] sm:$0xff] }
 0x2e3   : > { %3442 = vst.msk [vmem:[#allocation3 + $0x88] sm:$0xff] %vm452_vm1, %v3410_v30  ;;  %3447 = vst.msk [vmem:[#allocation3 + $0xb0] sm:$0xff] %vm452_vm1, %v3415_v31  ;;  %v3343_v52 = vadd.f32 %v3278_v24, %v8972_v15  ;;  %v8466_v16 = vmul.f32 0.25, %v8387_v51  ;;  %v8472_v37 = vmul.f32 0.25, %v8389_v46  ;;  %v8973_v60 = vld [vmem:[#allocation24_spill] sm:$0xff]  ;;  %v3291_v54 = vpop.f32.mrf.mxu1  ;;  %v8481_v55 = vmul.f32 0.25, %v8397_v8 }
 0x2e4   : > { %v3639_v26 = vcombine.high %v3637_v34, %v3637_v34  ;;  %3882 = vst.msk [vmem:[#allocation4 + $0x32] sm:$0x3] %vm700_vm2, %v3638_v49  ;;  %3883 = vst.msk [vmem:[#allocation4 + $0x34] sm:$0x3] %vm700_vm2, %v3637_v34  ;;  %v3640_v21 = vcombine.high %v3496_v14, %v3496_v14  ;;  %v3647_v29 = vrot.slane %v3496_v14, %v8964_v43  ;;  %v3465_v27 = vld [vmem:[#allocation3 + $0x80] sm:$0xff]  ;;  %v3416_v9 = vmax.f32 %v3384_v56, 0.0 }
 0x2e5   : > { %v3497_v38 = vadd.f32 %v3481_v22, %v3465_v27  ;;  %3445 = vst.msk [vmem:[#allocation3 + $0xa0] sm:$0xff] %vm452_vm1, %v3413_v42  ;;  %v3382_v51 = vadd.f32 %v8205_v1, %v3343_v52  ;;  %v3348_v20 = vadd.f32 %v6585_v47, %v8973_v60  ;;  %v8484_v46 = vmul.f32 0.25, %v8399_v25  ;;  %v8974_v34 = vld [vmem:[#allocation23_spill] sm:$0xff]  ;;  %v6586_v8 = vpop.f32.mrf.mxu1 }
 0x2e6   : > { %3884 = vst.msk [vmem:[#allocation4 + $0x36] sm:$0x3] %vm700_vm2, %v3639_v26  ;;  %v3654_v30 = vrot.slane %v3640_v21, %v8964_v43  ;;  %v3655_v61 = vcombine.high %v3647_v29, %v3647_v29  ;;  %3885 = vst.msk [vmem:[#allocation4 + $0x38] sm:$0x3] %vm700_vm2, %v3647_v29  ;;  %v3346_v49 = vadd.f32 %v3291_v54, %v8974_v34  ;;  %v8493_v14 = vmul.f32 0.25, %v8406_v36  ;;  %v8975_v26 = vld [vmem:[#allocation26_spill] sm:$0xff] }
 0x2e7   : > { %v3657_v44 = vcombine.high %v3497_v38, %v3497_v38  ;;  %v3664_v7 = vrot.slane %v3497_v38, %v8964_v43  ;;  %3448 = vst.msk [vmem:[#allocation3 + $0xb8] sm:$0xff] %vm452_vm1, %v3416_v9  ;;  %v3414_v31 = vmax.f32 %v3382_v51, 0.0  ;;  %v3387_v59 = vadd.f32 %v8205_v1, %v3348_v20  ;;  %v3482_v56 = vld [vmem:[#allocation3 + $0x98] sm:$0xff]  ;;  %v3294_v22 = vpop.f32.mrf.mxu1 }
 0x2e8   : > { %v3656_v17 = vcombine.high %v3654_v30, %v3654_v30  ;;  %3886 = vst.msk [vmem:[#allocation4 + $0x3a] sm:$0x3] %vm700_vm2, %v3655_v61  ;;  %3887 = vst.msk [vmem:[#allocation4 + $0x3c] sm:$0x3] %vm700_vm2, %v3654_v30  ;;  %v8496_v25 = vmul.f32 0.25, %v8409_v23  ;;  %v3349_v21 = vadd.f32 %v6586_v8, %v8975_v26  ;;  %v3385_v36 = vadd.f32 %v8205_v1, %v3346_v49  ;;  %v8976_v9 = vld [vmem:[#allocation25_spill] sm:$0xff] }
 0x2e9   : > { %v3671_v24 = vrot.slane %v3657_v44, %v8964_v43  ;;  %v3672_v42 = vcombine.high %v3664_v7, %v3664_v7  ;;  %3889 = vst.msk [vmem:[#allocation4 + $0x40] sm:$0x3] %vm700_vm2, %v3664_v7  ;;  %v3419_v52 = vmax.f32 %v3387_v59, 0.0  ;;  %v8505_v23 = vmul.f32 0.25, %v8417_v41  ;;  %v6589_v54 = vpop.f32.mrf.mxu1 }
 0x2ea   : > { %v3466_v15 = vld [vmem:[#allocation3 + $0x88] sm:$0xff]  ;;  %3446 = vst.msk [vmem:[#allocation3 + $0xa8] sm:$0xff] %vm452_vm1, %v3414_v31  ;;  %v8508_v27 = vmul.f32 0.25, %v8419_v32  ;;  %v3388_v38 = vadd.f32 %v8205_v1, %v3349_v21  ;;  %v3347_v51 = vadd.f32 %v3294_v22, %v8976_v9  ;;  %v8516_v60 = vmul.f32 0.25, %v8427_v45  ;;  %v3483_v30 = vld [vmem:[#allocation3 + $0xb0] sm:$0xff] }
 0x2eb   : > { %3888 = vst.msk [vmem:[#allocation4 + $0x3e] sm:$0x3] %vm700_vm2, %v3656_v17  ;;  %v3498_v29 = vadd.f32 %v3482_v56, %v3466_v15  ;;  %v3673_v47 = vcombine.high %v3671_v24, %v3671_v24  ;;  %3890 = vst.msk [vmem:[#allocation4 + $0x42] sm:$0x3] %vm700_vm2, %v3672_v42  ;;  %v3417_v61 = vmax.f32 %v3385_v36, 0.0  ;;  %v8520_v44 = vmul.f32 0.25, %v8429_v35  ;;  %v3307_v8 = vpop.f32.mrf.mxu1 }
 0x2ec   : > { %3891 = vst.msk [vmem:[#allocation4 + $0x44] sm:$0x3] %vm700_vm2, %v3671_v24  ;;  %v3467_v32 = vld [vmem:[#allocation3 + $0xa0] sm:$0xff]  ;;  %v3420_v31 = vmax.f32 %v3388_v38, 0.0  ;;  %v3386_v59 = vadd.f32 %v8205_v1, %v3347_v51  ;;  %v8977_v17 = vld [vmem:[#allocation28_spill] sm:$0xff]  ;;  %v8529_v24 = vmul.f32 0.25, %v8437_v18 }
 0x2ed   : > { %3451 = vst.msk [vmem:[#allocation3 + $0xd0] sm:$0xff] %vm452_vm1, %v3419_v52  ;;  %v3674_v20 = vcombine.high %v3498_v29, %v3498_v29  ;;  %v3681_v41 = vrot.slane %v3498_v29, %v8964_v43  ;;  %v3499_v7 = vadd.f32 %v3483_v30, %v3467_v32  ;;  %v3352_v34 = vadd.f32 %v6589_v54, %v8977_v17  ;;  %v8978_v18 = vld [vmem:[#allocation27_spill] sm:$0xff] }
 0x2ee   : > { %3892 = vst.msk [vmem:[#allocation4 + $0x46] sm:$0x3] %vm700_vm2, %v3673_v47  ;;  %v8532_v35 = vmul.f32 0.25, %v8439_v62  ;;  %v3418_v15 = vmax.f32 %v3386_v59, 0.0  ;;  %v3484_v21 = vld [vmem:[#allocation3 + $0xb8] sm:$0xff]  ;;  %v3350_v36 = vadd.f32 %v3307_v8, %v8978_v18  ;;  %v8541_v62 = vmul.f32 0.25, %v8450_v58 }
 0x2ef   : > { %v3688_v45 = vrot.slane %v3674_v20, %v8964_v43  ;;  %v3689_v49 = vcombine.high %v3681_v41, %v3681_v41  ;;  %3893 = vst.msk [vmem:[#allocation4 + $0x48] sm:$0x3] %vm700_vm2, %v3681_v41  ;;  %v3691_v42 = vcombine.high %v3499_v7, %v3499_v7  ;;  %v3698_v56 = vrot.slane %v3499_v7, %v8964_v43 }
 0x2f0   : > { %3449 = vst.msk [vmem:[#allocation3 + $0xc0] sm:$0xff] %vm452_vm1, %v3417_v61  ;;  %3452 = vst.msk [vmem:[#allocation3 + $0xd8] sm:$0xff] %vm452_vm1, %v3420_v31  ;;  %v3391_v52 = vadd.f32 %v8205_v1, %v3352_v34  ;;  %v8544_v22 = vmul.f32 0.25, %v8455_v48  ;;  %v3389_v20 = vadd.f32 %v8205_v1, %v3350_v36  ;;  %v8552_v41 = vmul.f32 0.25, %v8460_v4 }
 0x2f1   : > { %v3690_v26 = vcombine.high %v3688_v45, %v3688_v45  ;;  %3894 = vst.msk [vmem:[#allocation4 + $0x4a] sm:$0x3] %vm700_vm2, %v3689_v49  ;;  %3895 = vst.msk [vmem:[#allocation4 + $0x4c] sm:$0x3] %vm700_vm2, %v3688_v45  ;;  %v3468_v29 = vld [vmem:[#allocation3 + $0xa8] sm:$0xff]  ;;  %v3705_v47 = vrot.slane %v3691_v42, %v8964_v43  ;;  %v3706_v38 = vcombine.high %v3698_v56, %v3698_v56 }
 0x2f2   : > { %3897 = vst.msk [vmem:[#allocation4 + $0x50] sm:$0x3] %vm700_vm2, %v3698_v56  ;;  %v3500_v9 = vadd.f32 %v3484_v21, %v3468_v29  ;;  %v3423_v51 = vmax.f32 %v3391_v52, 0.0  ;;  %v4177_v58 = vpack.c.bf16 %v8447_v12, %v8447_v12  ;;  %v4178_v48 = vpack.c.bf16 %v8466_v16, %v8466_v16 }
 0x2f3   : > { %3450 = vst.msk [vmem:[#allocation3 + $0xc8] sm:$0xff] %vm452_vm1, %v3418_v15  ;;  %v3707_v30 = vcombine.high %v3705_v47, %v3705_v47  ;;  %v4179_v1 = vpack.c.bf16 %v8472_v37, %v8472_v37  ;;  %v3421_v4 = vmax.f32 %v3389_v20, 0.0  ;;  %v4180_v12 = vpack.c.bf16 %v8481_v55, %v8481_v55 }
 0x2f4   : > { %3896 = vst.msk [vmem:[#allocation4 + $0x4e] sm:$0x3] %vm700_vm2, %v3690_v26  ;;  %3898 = vst.msk [vmem:[#allocation4 + $0x52] sm:$0x3] %vm700_vm2, %v3706_v38  ;;  %v3708_v32 = vcombine.high %v3500_v9, %v3500_v9  ;;  %v3715_v61 = vrot.slane %v3500_v9, %v8964_v43  ;;  %v4181_v16 = vpack.c.bf16 %v8484_v46, %v8484_v46  ;;  %v3485_v59 = vld [vmem:[#allocation3 + $0xd0] sm:$0xff]  ;;  %v4313_v52 = vunpack.c.l.b16 %v4177_v58 }
 0x2f5   : > { %3899 = vst.msk [vmem:[#allocation4 + $0x54] sm:$0x3] %vm700_vm2, %v3705_v47  ;;  %v4182_v54 = vpack.c.bf16 %v8493_v14, %v8493_v14  ;;  %3900 = vst.msk [vmem:[#allocation4 + $0x56] sm:$0x3] %vm700_vm2, %v3707_v30  ;;  %v4183_v37 = vpack.c.bf16 %v8496_v25, %v8496_v25  ;;  %v4184_v55 = vpack.c.bf16 %v8505_v23, %v8505_v23  ;;  %v4314_v26 = vunpack.c.l.b16 %v4178_v48 }
 0x2f6   : > { %3455 = vst.msk [vmem:[#allocation3 + $0xf0] sm:$0xff] %vm452_vm1, %v3423_v51  ;;  %v3722_v7 = vrot.slane %v3708_v32, %v8964_v43  ;;  %v3723_v31 = vcombine.high %v3715_v61, %v3715_v61  ;;  %3453 = vst.msk [vmem:[#allocation3 + $0xe0] sm:$0xff] %vm452_vm1, %v3421_v4  ;;  %v4185_v46 = vpack.c.bf16 %v8508_v27, %v8508_v27  ;;  %v4316_v18 = vunpack.c.l.b16 %v4180_v12 }
 0x2f7   : > { %3901 = vst.msk [vmem:[#allocation4 + $0x58] sm:$0x3] %vm700_vm2, %v3715_v61  ;;  %v3469_v17 = vld [vmem:[#allocation3 + $0xc0] sm:$0xff]  ;;  %v4186_v14 = vpack.c.bf16 %v8516_v60, %v8516_v60  ;;  %v4187_v45 = vpack.c.bf16 %v8520_v44, %v8520_v44  ;;  %v4188_v25 = vpack.c.bf16 %v8529_v24, %v8529_v24  ;;  %v4189_v23 = vpack.c.bf16 %v8532_v35, %v8532_v35  ;;  %v3486_v42 = vld [vmem:[#allocation3 + $0xd8] sm:$0xff] }
 0x2f8   : > { %v3501_v34 = vadd.f32 %v3485_v59, %v3469_v17  ;;  %v3724_v49 = vcombine.high %v3722_v7, %v3722_v7  ;;  %3902 = vst.msk [vmem:[#allocation4 + $0x5a] sm:$0x3] %vm700_vm2, %v3723_v31  ;;  %3903 = vst.msk [vmem:[#allocation4 + $0x5c] sm:$0x3] %vm700_vm2, %v3722_v7  ;;  %v4190_v27 = vpack.c.bf16 %v8541_v62, %v8541_v62  ;;  %v4315_v35 = vunpack.c.l.b16 %v4179_v1 }
 0x2f9   : > { %v4191_v44 = vpack.c.bf16 %v8544_v22, %v8544_v22  ;;  %v4192_v15 = vpack.c.bf16 %v8552_v41, %v8552_v41  ;;  %v4317_v36 = vunpack.c.l.b16 %v4181_v16  ;;  %v8601_v22 = vunpack.c.l.b16 %v4182_v54 }
 0x2fa   : > { %v3725_v8 = vcombine.high %v3501_v34, %v3501_v34  ;;  %v3732_v60 = vrot.slane %v3501_v34, %v8964_v43  ;;  %v3470_v56 = vld [vmem:[#allocation3 + $0xc8] sm:$0xff]  ;;  %3904 = vst.msk [vmem:[#allocation4 + $0x5e] sm:$0x3] %vm700_vm2, %v3724_v49  ;;  %v8603_v38 = vunpack.c.l.b16 %v4183_v37  ;;  %v8607_v51 = vunpack.c.l.b16 %v4184_v55  ;;  %v6590_v37 = vpop.f32.mrf.mxu1 }
 0x2fb   : > { %v3502_v24 = vadd.f32 %v3486_v42, %v3470_v56  ;;  %v4321_v20 = vunpack.c.l.b16 %v4185_v46  ;;  %v4322_v41 = vunpack.c.l.b16 %v4186_v14  ;;  %v4323_v61 = vunpack.c.l.b16 %v4187_v45  ;;  %v3937_v56 = vld [vmem:[#allocation4 + $0x20] sm:$0x1] }
 0x2fc   : > { %v3739_v21 = vrot.slane %v3725_v8, %v8964_v43  ;;  %v3740_v29 = vcombine.high %v3732_v60, %v3732_v60  ;;  %3905 = vst.msk [vmem:[#allocation4 + $0x60] sm:$0x3] %vm700_vm2, %v3732_v60  ;;  %v4324_v1 = vunpack.c.l.b16 %v4188_v25  ;;  %v8612_v12 = vunpack.c.l.b16 %v4189_v23 }
 0x2fd   : > { %v3742_v62 = vcombine.high %v3502_v24, %v3502_v24  ;;  %v3749_v47 = vrot.slane %v3502_v24, %v8964_v43  ;;  %v3487_v30 = vld [vmem:[#allocation3 + $0xf0] sm:$0xff]  ;;  %v3471_v32 = vld [vmem:[#allocation3 + $0xe0] sm:$0xff]  ;;  %v8614_v16 = vunpack.c.l.b16 %v4190_v27  ;;  %v8616_v54 = vunpack.c.l.b16 %v4191_v44 }
 0x2fe   : > { %v3741_v9 = vcombine.high %v3739_v21, %v3739_v21  ;;  %3906 = vst.msk [vmem:[#allocation4 + $0x62] sm:$0x3] %vm700_vm2, %v3740_v29  ;;  %3907 = vst.msk [vmem:[#allocation4 + $0x64] sm:$0x3] %vm700_vm2, %v3739_v21  ;;  %v3503_v4 = vadd.f32 %v3487_v30, %v3471_v32  ;;  %v8620_v31 = vunpack.c.l.b16 %v4192_v15  ;;  %v4377_v59 = vrot.slane %v4314_v26, 7  ;;  %v3310_v29 = vpop.f32.mrf.mxu1 }
 0x2ff   : > { %v3756_v58 = vrot.slane %v3742_v62, %v8964_v43  ;;  %v3757_v48 = vcombine.high %v3749_v47, %v3749_v47  ;;  %3909 = vst.msk [vmem:[#allocation4 + $0x68] sm:$0x3] %vm700_vm2, %v3749_v47  ;;  %v4380_v17 = vrot.slane %v4315_v35, 6  ;;  %v4383_v46 = vrot.slane %v4316_v18, 5  ;;  %v3938_v44 = vld [vmem:[#allocation4 + $0x22] sm:$0x1] }
 0x300   : > { %3908 = vst.msk [vmem:[#allocation4 + $0x66] sm:$0x3] %vm700_vm2, %v3741_v9  ;;  %v3759_v55 = vcombine.high %v3503_v4, %v3503_v4  ;;  %v3766_v34 = vrot.slane %v3503_v4, %v8964_v43  ;;  %v4386_v14 = vrot.slane %v4317_v36, 4  ;;  %v4379_v45 = vsel %vm4378_vm4, %v4377_v59, %v4313_v52  ;;  %v4001_v15 = vld [vmem:[#allocation4 + $0x21] sm:$0x1] }
 0x301   : > { %v3758_v7 = vcombine.high %v3756_v58, %v3756_v58  ;;  %3910 = vst.msk [vmem:[#allocation4 + $0x6a] sm:$0x3] %vm700_vm2, %v3757_v48  ;;  %3911 = vst.msk [vmem:[#allocation4 + $0x6c] sm:$0x3] %vm700_vm2, %v3756_v58  ;;  %v4389_v49 = vrot.slane %v8601_v22, 3  ;;  %v4392_v25 = vrot.slane %v8603_v38, 2  ;;  %v4382_v60 = vsel %vm4381_vm5, %v4380_v17, %v4379_v45 }
 0x302   : > { %v4395_v23 = vrot.slane %v8607_v51, 1  ;;  %v3773_v27 = vrot.slane %v3759_v55, %v8964_v43  ;;  %v3774_v8 = vcombine.high %v3766_v34, %v3766_v34  ;;  %3913 = vst.msk [vmem:[#allocation4 + $0x70] sm:$0x3] %vm700_vm2, %v3766_v34  ;;  %v4398_v42 = vrot.slane %v4322_v41, 7  ;;  %v4002_v24 = vld [vmem:[#allocation4 + $0x23] sm:$0x1] }
 0x303   : > { %3912 = vst.msk [vmem:[#allocation4 + $0x6e] sm:$0x3] %vm700_vm2, %v3758_v7  ;;  %v4385_v52 = vsel %vm4384_vm6, %v4383_v46, %v4382_v60  ;;  %v4400_v26 = vrot.slane %v4323_v61, 6  ;;  %v4402_v35 = vrot.slane %v4324_v1, 5  ;;  %v4404_v21 = vrot.slane %v8612_v12, 4 }
 0x304   : > { %v3939_v18 = vld [vmem:[#allocation4 + $0x24] sm:$0x1]  ;;  %v4003_v36 = vld [vmem:[#allocation4 + $0x25] sm:$0x1]  ;;  %v3775_v62 = vcombine.high %v3773_v27, %v3773_v27  ;;  %3914 = vst.msk [vmem:[#allocation4 + $0x72] sm:$0x3] %vm700_vm2, %v3774_v8  ;;  %v4388_v47 = vsel %vm4387_vm7, %v4386_v14, %v4385_v52  ;;  %v4399_v22 = vsel %vm4378_vm4, %v4398_v42, %v4321_v20  ;;  %v3353_v7 = vadd.f32 %v6590_v37, %v8209_v5 }
 0x305   : > { %3915 = vst.msk [vmem:[#allocation4 + $0x74] sm:$0x3] %vm700_vm2, %v3773_v27  ;;  %v4406_v38 = vrot.slane %v8614_v16, 3  ;;  %v3940_v9 = vld [vmem:[#allocation4 + $0x26] sm:$0x1]  ;;  %v4391_v48 = vsel %vm4390_vm8, %v4389_v49, %v4388_v47  ;;  %v4401_v30 = vsel %vm4381_vm5, %v4400_v26, %v4399_v22  ;;  %v4408_v32 = vrot.slane %v8616_v54, 2 }
 0x306   : > { %v3941_v51 = vld [vmem:[#allocation4 + $0x28] sm:$0x1]  ;;  %v3942_v41 = vld [vmem:[#allocation4 + $0x2a] sm:$0x1]  ;;  %v4004_v58 = vld [vmem:[#allocation4 + $0x27] sm:$0x1]  ;;  %v4394_v20 = vsel %vm4393_vm9, %v4392_v25, %v4391_v48  ;;  %v4403_v16 = vsel %vm4384_vm6, %v4402_v35, %v4401_v30  ;;  %v3351_v59 = vadd.f32 %v3310_v29, %v8213_v57  ;;  %v4065_v60 = vadd.f32 %v4001_v15, %v3937_v56 }
 0x307   : > { %v4410_v61 = vrot.slane %v8620_v31, 1  ;;  %v3943_v1 = vld [vmem:[#allocation4 + $0x2c] sm:$0x1]  ;;  %v4005_v4 = vld [vmem:[#allocation4 + $0x29] sm:$0x1]  ;;  %v4397_v31 = vsel %vm4396_vm10, %v4395_v23, %v4394_v20  ;;  %v4405_v14 = vsel %vm4387_vm7, %v4404_v21, %v4403_v16  ;;  %v4066_v42 = vadd.f32 %v4002_v24, %v3938_v44 }
 0x308   : > { %v4006_v12 = vld [vmem:[#allocation4 + $0x2b] sm:$0x1]  ;;  %3916 = vst.msk [vmem:[#allocation4 + $0x76] sm:$0x3] %vm700_vm2, %v3775_v62  ;;  %v3944_v17 = vld [vmem:[#allocation4 + $0x2e] sm:$0x1]  ;;  %v4407_v5 = vsel %vm4390_vm8, %v4406_v38, %v4405_v14  ;;  %v4067_v21 = vadd.f32 %v4003_v36, %v3939_v18  ;;  %v4068_v56 = vadd.f32 %v4004_v58, %v3940_v9  ;;  %v4069_v44 = vadd.f32 %v4005_v4, %v3941_v51 }
 0x309   : > { %v3945_v55 = vld [vmem:[#allocation4 + $0x30] sm:$0x1]  ;;  %v3946_v34 = vld [vmem:[#allocation4 + $0x32] sm:$0x1]  ;;  %v4007_v46 = vld [vmem:[#allocation4 + $0x2d] sm:$0x1]  ;;  %v4409_v62 = vsel %vm4393_vm9, %v4408_v32, %v4407_v5  ;;  %v4070_v15 = vadd.f32 %v4006_v12, %v3942_v41 }
 0x30a   : > { %v4008_v54 = vld [vmem:[#allocation4 + $0x2f] sm:$0x1]  ;;  %v3947_v45 = vld [vmem:[#allocation4 + $0x34] sm:$0x1]  ;;  %v3948_v49 = vld [vmem:[#allocation4 + $0x36] sm:$0x1]  ;;  %v4411_v24 = vsel %vm4396_vm10, %v4410_v61, %v4409_v62 }
 0x30b   : > { %v3949_v27 = vld [vmem:[#allocation4 + $0x38] sm:$0x1]  ;;  %v3950_v8 = vld [vmem:[#allocation4 + $0x3a] sm:$0x1]  ;;  %v4009_v25 = vld [vmem:[#allocation4 + $0x31] sm:$0x1]  ;;  %v4072_v14 = vadd.f32 %v4008_v54, %v3944_v17 }
 0x30c   : > { %v6698_v57 = vld [vmem:[%s8880_s4] ss:$0 sm:$0xff]  ;;  %v3951_v26 = vld [vmem:[#allocation4 + $0x3c] sm:$0x1]  ;;  %v3952_v35 = vld [vmem:[#allocation4 + $0x3e] sm:$0x1] }
 0x30d   : > { %v3392_v37 = vadd.f32 %v6698_v57, %v3353_v7  ;;  %v3390_v52 = vadd.f32 %v6698_v57, %v3351_v59  ;;  %v4010_v23 = vld [vmem:[#allocation4 + $0x33] sm:$0x1]  ;;  %v4011_v29 = vld [vmem:[#allocation4 + $0x35] sm:$0x1]  ;;  %v4012_v47 = vld [vmem:[#allocation4 + $0x37] sm:$0x1]  ;;  %v4071_v7 = vadd.f32 %v4007_v46, %v3943_v1  ;;  %v4496_v59 = vpack.c.b16 %v4411_v24, %v4397_v31 }
 0x30e   : > { %v4013_v22 = vld [vmem:[#allocation4 + $0x39] sm:$0x1]  ;;  %v4014_v48 = vld [vmem:[#allocation4 + $0x3b] sm:$0x1]  ;;  %v4015_v20 = vld [vmem:[#allocation4 + $0x3d] sm:$0x1]  ;;  %v4073_v57 = vadd.f32 %v4009_v25, %v3945_v55  ;;  %v4074_v28 = vadd.f32 %v4010_v23, %v3946_v34  ;;  %v4075_v18 = vadd.f32 %v4011_v29, %v3947_v45  ;;  %v4076_v36 = vadd.f32 %v4012_v47, %v3948_v49 }
 0x30f   : > { %v3424_v38 = vmax.f32 %v3392_v37, 0.0  ;;  %v3422_v30 = vmax.f32 %v3390_v52, 0.0  ;;  %v4016_v16 = vld [vmem:[#allocation4 + $0x3f] sm:$0x1]  ;;  %v4077_v9 = vadd.f32 %v4013_v22, %v3949_v27  ;;  %v4078_v51 = vadd.f32 %v4014_v48, %v3950_v8  ;;  %6593 = vmatprep.mubr.msk.bf16.mxu0 %vm452_vm1, %v4496_v59 }
 0x310   : > { %v4079_v41 = vadd.f32 %v4015_v20, %v3951_v26  ;;  %v4080_v58 = vadd.f32 %v4016_v16, %v3952_v35  ;;  %v4129_v32 = vmul.f32 0.25, %v4065_v60  ;;  %v4130_v61 = vmul.f32 0.25, %v4066_v42 }
 0x311   : > { %3456 = vst.msk [vmem:[#allocation3 + $0xf8] sm:$0xff] %vm452_vm1, %v3424_v38  ;;  %3454 = vst.msk [vmem:[#allocation3 + $0xe8] sm:$0xff] %vm452_vm1, %v3422_v30  ;;  %v4131_v4 = vmul.f32 0.25, %v4067_v21  ;;  %v4132_v1 = vmul.f32 0.25, %v4068_v56  ;;  %v4133_v12 = vmul.f32 0.25, %v4069_v44  ;;  %v4134_v17 = vmul.f32 0.25, %v4070_v15 }
 0x312   : > { %v4135_v55 = vmul.f32 0.25, %v4071_v7  ;;  %v4136_v34 = vmul.f32 0.25, %v4072_v14  ;;  %v4137_v46 = vmul.f32 0.25, %v4073_v57  ;;  %v4138_v54 = vmul.f32 0.25, %v4074_v28 }
 0x313   : > { %v4139_v31 = vmul.f32 0.25, %v4075_v18  ;;  %v4140_v25 = vmul.f32 0.25, %v4076_v36  ;;  %v4141_v45 = vmul.f32 0.25, %v4077_v9  ;;  %v4142_v49 = vmul.f32 0.25, %v4078_v51 }
 0x314   : > { %v4143_v27 = vmul.f32 0.25, %v4079_v41  ;;  %v4144_v8 = vmul.f32 0.25, %v4080_v58  ;;  %v4193_v5 = vpack.c.bf16 %v4129_v32, %v4129_v32  ;;  %v4194_v37 = vpack.c.bf16 %v4130_v61, %v4130_v61 }
 0x315   : > { %v4195_v52 = vpack.c.bf16 %v4131_v4, %v4131_v4  ;;  %v4196_v26 = vpack.c.bf16 %v4132_v1, %v4132_v1  ;;  %v4197_v60 = vpack.c.bf16 %v4133_v12, %v4133_v12  ;;  %v4198_v42 = vpack.c.bf16 %v4134_v17, %v4134_v17 }
 0x316   : > { %v4199_v29 = vpack.c.bf16 %v4135_v55, %v4135_v55  ;;  %v4200_v21 = vpack.c.bf16 %v4136_v34, %v4136_v34  ;;  %v4201_v62 = vpack.c.bf16 %v4137_v46, %v4137_v46  ;;  %v4202_v47 = vpack.c.bf16 %v4138_v54, %v4138_v54 }
 0x317   : > { %v4203_v28 = vpack.c.bf16 %v4139_v31, %v4139_v31  ;;  %v4204_v48 = vpack.c.bf16 %v4140_v25, %v4140_v25  ;;  %v4205_v56 = vpack.c.bf16 %v4141_v45, %v4141_v45  ;;  %v4206_v44 = vpack.c.bf16 %v4142_v49, %v4142_v49 }
 0x318   : > { %v3488_v35 = vld [vmem:[#allocation3 + $0xf8] sm:$0xff]  ;;  %v3472_v23 = vld [vmem:[#allocation3 + $0xe8] sm:$0xff]  ;;  %v4207_v15 = vpack.c.bf16 %v4143_v27, %v4143_v27  ;;  %v4208_v24 = vpack.c.bf16 %v4144_v8, %v4144_v8  ;;  %v4329_v38 = vunpack.c.l.b16 %v4193_v5  ;;  %v4330_v16 = vunpack.c.l.b16 %v4194_v37 }
 0x319   : > { %v3504_v22 = vadd.f32 %v3488_v35, %v3472_v23  ;;  %v4331_v7 = vunpack.c.l.b16 %v4195_v52  ;;  %v4332_v59 = vunpack.c.l.b16 %v4196_v26  ;;  %v4333_v14 = vunpack.c.l.b16 %v4197_v60 }
 0x31a   : > { %v4334_v57 = vunpack.c.l.b16 %v4198_v42  ;;  %v4335_v18 = vunpack.c.l.b16 %v4199_v29  ;;  %v4336_v51 = vunpack.c.l.b16 %v4200_v21  ;;  %v4337_v41 = vunpack.c.l.b16 %v4201_v62 }
 0x31b   : > { %v3776_v30 = vcombine.high %v3504_v22, %v3504_v22  ;;  %v3783_v20 = vrot.slane %v3504_v22, %v8964_v43  ;;  %v4338_v58 = vunpack.c.l.b16 %v4202_v47  ;;  %v4339_v32 = vunpack.c.l.b16 %v4203_v28 }
 0x31c   : > { %v4340_v61 = vunpack.c.l.b16 %v4204_v48  ;;  %v4341_v4 = vunpack.c.l.b16 %v4205_v56  ;;  %v4342_v12 = vunpack.c.l.b16 %v4206_v44  ;;  %v4343_v17 = vunpack.c.l.b16 %v4207_v15 }
 0x31d   : > { %v3790_v36 = vrot.slane %v3776_v30, %v8964_v43  ;;  %v3791_v9 = vcombine.high %v3783_v20, %v3783_v20  ;;  %3917 = vst.msk [vmem:[#allocation4 + $0x78] sm:$0x3] %vm700_vm2, %v3783_v20  ;;  %v4344_v55 = vunpack.c.l.b16 %v4208_v24  ;;  %v4412_v34 = vrot.slane %v4330_v16, 7  ;;  %v3954_v20 = vld [vmem:[#allocation4 + $0x42] sm:$0x1] }
 0x31e   : > { %v4414_v46 = vrot.slane %v4331_v7, 6  ;;  %v4416_v43 = vrot.slane %v4332_v59, 5  ;;  %v4418_v54 = vrot.slane %v4333_v14, 4  ;;  %v4420_v31 = vrot.slane %v4334_v57, 3  ;;  %v4018_v16 = vld [vmem:[#allocation4 + $0x43] sm:$0x1] }
 0x31f   : > { %v3792_v1 = vcombine.high %v3790_v36, %v3790_v36  ;;  %3918 = vst.msk [vmem:[#allocation4 + $0x7a] sm:$0x3] %vm700_vm2, %v3791_v9  ;;  %3919 = vst.msk [vmem:[#allocation4 + $0x7c] sm:$0x3] %vm700_vm2, %v3790_v36  ;;  %v4422_v25 = vrot.slane %v4335_v18, 2  ;;  %v4424_v45 = vrot.slane %v4336_v51, 1  ;;  %v4413_v27 = vsel %vm4378_vm4, %v4412_v34, %v4329_v38 }
 0x320   : > { %v4426_v49 = vrot.slane %v4338_v58, 7  ;;  %v4428_v8 = vrot.slane %v4339_v32, 6  ;;  %v4430_v5 = vrot.slane %v4340_v61, 5  ;;  %v4432_v37 = vrot.slane %v4341_v4, 4  ;;  %v3955_v14 = vld [vmem:[#allocation4 + $0x44] sm:$0x1] }
 0x321   : > { %3920 = vst.msk [vmem:[#allocation4 + $0x7e] sm:$0x3] %vm700_vm2, %v3792_v1  ;;  %v4415_v52 = vsel %vm4381_vm5, %v4414_v46, %v4413_v27  ;;  %v4434_v60 = vrot.slane %v4342_v12, 3  ;;  %v4436_v42 = vrot.slane %v4343_v17, 2  ;;  %v4438_v29 = vrot.slane %v4344_v55, 1 }
 0x322   : > { %v4427_v26 = vsel %vm4378_vm4, %v4426_v49, %v4337_v41  ;;  %v4417_v35 = vsel %vm4384_vm6, %v4416_v43, %v4415_v52  ;;  %v5594_v21 = vrot.slane %v8307_v53, 6  ;;  %v5596_v22 = vrot.slane %v8309_v0, 5  ;;  %v3953_v0 = vld [vmem:[#allocation4 + $0x40] sm:$0x1]  ;;  %v3956_v57 = vld [vmem:[#allocation4 + $0x46] sm:$0x1] }
 0x323   : > { %v4429_v23 = vsel %vm4381_vm5, %v4428_v8, %v4427_v26  ;;  %v4419_v62 = vsel %vm4387_vm7, %v4418_v54, %v4417_v35  ;;  %v5598_v28 = vrot.slane %v8311_v50, 4  ;;  %v5600_v15 = vrot.slane %v8313_v39, 3  ;;  %v4017_v50 = vld [vmem:[#allocation4 + $0x41] sm:$0x1]  ;;  %v3957_v18 = vld [vmem:[#allocation4 + $0x48] sm:$0x1] }
 0x324   : > { %v4431_v47 = vsel %vm4384_vm6, %v4430_v5, %v4429_v23  ;;  %v4421_v48 = vsel %vm4390_vm8, %v4420_v31, %v4419_v62  ;;  %v5595_v44 = vsel %vm4381_vm5, %v5594_v21, %v8379_v19  ;;  %v5602_v30 = vrot.slane %v8319_v10, 2  ;;  %v4019_v36 = vld [vmem:[#allocation4 + $0x45] sm:$0x1]  ;;  %v4020_v9 = vld [vmem:[#allocation4 + $0x47] sm:$0x1]  ;;  %v8979_v52 = vld [vmem:[#allocation31_spill] sm:$0xff] }
 0x325   : > { %v4433_v56 = vsel %vm4387_vm7, %v4432_v37, %v4431_v47  ;;  %v4423_v24 = vsel %vm4393_vm9, %v4422_v25, %v4421_v48  ;;  %v5597_v38 = vsel %vm4384_vm6, %v5596_v22, %v5595_v44  ;;  %v5604_v39 = vrot.slane %v8321_v33, 1  ;;  %v4021_v51 = vld [vmem:[#allocation4 + $0x49] sm:$0x1]  ;;  %v3958_v61 = vld [vmem:[#allocation4 + $0x4a] sm:$0x1] }
 0x326   : > { %v4435_v53 = vsel %vm4390_vm8, %v4434_v60, %v4433_v56  ;;  %v4425_v7 = vsel %vm4396_vm10, %v4424_v45, %v4423_v24  ;;  %v5599_v19 = vsel %vm4387_vm7, %v5598_v28, %v5597_v38  ;;  %v5606_v58 = vrot.slane %v8330_v2, 7  ;;  %v3959_v4 = vld [vmem:[#allocation4 + $0x4c] sm:$0x1]  ;;  %v3960_v1 = vld [vmem:[#allocation4 + $0x4e] sm:$0x1] }
 0x327   : > { %v4437_v59 = vsel %vm4393_vm9, %v4436_v42, %v4435_v53  ;;  %v5601_v41 = vsel %vm4390_vm8, %v5600_v15, %v5599_v19  ;;  %v5608_v32 = vrot.slane %v8332_v6, 6  ;;  %v4022_v12 = vld [vmem:[#allocation4 + $0x4b] sm:$0x1]  ;;  %v4023_v17 = vld [vmem:[#allocation4 + $0x4d] sm:$0x1]  ;;  %v5610_v34 = vrot.slane %v8340_v13, 5 }
 0x328   : > { %v4439_v10 = vsel %vm4396_vm10, %v4438_v29, %v4437_v59  ;;  %v5603_v55 = vsel %vm4393_vm9, %v5602_v30, %v5601_v41  ;;  %v5612_v46 = vrot.slane %v8342_v3, 4  ;;  %v3961_v43 = vld [vmem:[#allocation4 + $0x50] sm:$0x1]  ;;  %v3962_v54 = vld [vmem:[#allocation4 + $0x52] sm:$0x1]  ;;  %v5607_v6 = vsel %vm4378_vm4, %v5606_v58, %v8323_v63 }
 0x329   : > { %v4497_v33 = vpack.c.b16 %v4439_v10, %v4425_v7  ;;  %v3963_v31 = vld [vmem:[#allocation4 + $0x54] sm:$0x1]  ;;  %v4024_v25 = vld [vmem:[#allocation4 + $0x4f] sm:$0x1]  ;;  %v4025_v45 = vld [vmem:[#allocation4 + $0x51] sm:$0x1]  ;;  %v5605_v2 = vsel %vm4396_vm10, %v5604_v39, %v5603_v55  ;;  %v5609_v3 = vsel %vm4381_vm5, %v5608_v32, %v5607_v6  ;;  %v4081_v35 = vadd.f32 %v4017_v50, %v3953_v0 }
 0x32a   : > { %v5614_v49 = vrot.slane %v8353_v40, 3  ;;  %v5616_v27 = vrot.slane %v8355_v11, 2  ;;  %v3964_v8 = vld [vmem:[#allocation4 + $0x56] sm:$0x1]  ;;  %v3965_v5 = vld [vmem:[#allocation4 + $0x58] sm:$0x1]  ;;  %v4082_v23 = vadd.f32 %v4018_v16, %v3954_v20  ;;  %v5611_v63 = vsel %vm4384_vm6, %v5610_v34, %v5609_v3 }
 0x32b   : > { %v4026_v37 = vld [vmem:[#allocation4 + $0x53] sm:$0x1]  ;;  %v4027_v13 = vld [vmem:[#allocation4 + $0x55] sm:$0x1]  ;;  %6594 = vmatmul.mubr.msk.bf16.vlgmr.msra.gmra.mxu0 %vm452_vm1, %v4497_v33  ;;  %v5618_v26 = vrot.slane %v8979_v52, 1  ;;  %v4083_v11 = vadd.f32 %v4019_v36, %v3955_v14  ;;  %v4084_v62 = vadd.f32 %v4020_v9, %v3956_v57  ;;  %v4085_v47 = vadd.f32 %v4021_v51, %v3957_v18 }
 0x32c   : > { %v3966_v60 = vld [vmem:[#allocation4 + $0x5a] sm:$0x1]  ;;  %v3967_v42 = vld [vmem:[#allocation4 + $0x5c] sm:$0x1]  ;;  %v4028_v29 = vld [vmem:[#allocation4 + $0x57] sm:$0x1]  ;;  %v5613_v22 = vsel %vm4387_vm7, %v5612_v46, %v5611_v63  ;;  %v4086_v44 = vadd.f32 %v4022_v12, %v3958_v61  ;;  %v4087_v15 = vadd.f32 %v4023_v17, %v3959_v4  ;;  %v4088_v24 = vadd.f32 %v4024_v25, %v3960_v1 }
 0x32d   : > { %v4029_v40 = vld [vmem:[#allocation4 + $0x59] sm:$0x1]  ;;  %v4030_v21 = vld [vmem:[#allocation4 + $0x5b] sm:$0x1]  ;;  %v3968_v28 = vld [vmem:[#allocation4 + $0x5e] sm:$0x1]  ;;  %v5615_v53 = vsel %vm4390_vm8, %v5614_v49, %v5613_v22  ;;  %v4089_v38 = vadd.f32 %v4025_v45, %v3961_v43  ;;  %v4090_v30 = vadd.f32 %v4026_v37, %v3962_v54  ;;  %v4091_v0 = vadd.f32 %v4027_v13, %v3963_v31 }
 0x32e   : > { %v4031_v48 = vld [vmem:[#allocation4 + $0x5d] sm:$0x1]  ;;  %v4032_v56 = vld [vmem:[#allocation4 + $0x5f] sm:$0x1]  ;;  %v5617_v20 = vsel %vm4393_vm9, %v5616_v27, %v5615_v53  ;;  %v4092_v50 = vadd.f32 %v4028_v29, %v3964_v8  ;;  %v4093_v16 = vadd.f32 %v4029_v40, %v3965_v5  ;;  %v4094_v7 = vadd.f32 %v4030_v21, %v3966_v60 }
 0x32f   : > { %v5619_v59 = vsel %vm4396_vm10, %v5618_v26, %v5617_v20  ;;  %v4095_v19 = vadd.f32 %v4031_v48, %v3967_v42  ;;  %v4096_v39 = vadd.f32 %v4032_v56, %v3968_v28  ;;  %v4145_v14 = vmul.f32 0.25, %v4081_v35  ;;  %v5140_v20 = vld [vmem:[#allocation6 + $0x40] sm:$0x1] }
 0x330   : > { %v5677_v57 = vpack.c.b16 %v5619_v59, %v5605_v2  ;;  %v4146_v18 = vmul.f32 0.25, %v4082_v23  ;;  %v4147_v36 = vmul.f32 0.25, %v4083_v11  ;;  %v4148_v9 = vmul.f32 0.25, %v4084_v62 }
 0x331   : > { %v4149_v51 = vmul.f32 0.25, %v4085_v47  ;;  %v4150_v10 = vmul.f32 0.25, %v4086_v44  ;;  %v4151_v41 = vmul.f32 0.25, %v4087_v15  ;;  %v4152_v58 = vmul.f32 0.25, %v4088_v24 }
 0x332   : > { %6604 = vmatmul.mubr.msk.bf16.vlgmr.msra.gmra.mxu1 %vm452_vm1, %v5677_v57  ;;  %v4153_v32 = vmul.f32 0.25, %v4089_v38  ;;  %v4154_v61 = vmul.f32 0.25, %v4090_v30  ;;  %v4155_v4 = vmul.f32 0.25, %v4091_v0  ;;  %v4156_v1 = vmul.f32 0.25, %v4092_v50  ;;  %v5141_v50 = vld [vmem:[#allocation6 + $0x42] sm:$0x1] }
 0x333   : > { %v4157_v12 = vmul.f32 0.25, %v4093_v16  ;;  %v4158_v17 = vmul.f32 0.25, %v4094_v7  ;;  %v4159_v33 = vmul.f32 0.25, %v4095_v19  ;;  %v4160_v55 = vmul.f32 0.25, %v4096_v39  ;;  %v5142_v16 = vld [vmem:[#allocation6 + $0x44] sm:$0x1] }
 0x334   : > { %v4209_v34 = vpack.c.bf16 %v4145_v14, %v4145_v14  ;;  %v4210_v46 = vpack.c.bf16 %v4146_v18, %v4146_v18  ;;  %v4211_v43 = vpack.c.bf16 %v4147_v36, %v4147_v36  ;;  %v4212_v54 = vpack.c.bf16 %v4148_v9, %v4148_v9  ;;  %v5143_v14 = vld [vmem:[#allocation6 + $0x46] sm:$0x1]  ;;  %v5144_v57 = vld [vmem:[#allocation6 + $0x48] sm:$0x1]  ;;  %v5204_v18 = vld [vmem:[#allocation6 + $0x41] sm:$0x1] }
 0x335   : > { %v4213_v31 = vpack.c.bf16 %v4149_v51, %v4149_v51  ;;  %v4214_v25 = vpack.c.bf16 %v4150_v10, %v4150_v10  ;;  %v4215_v45 = vpack.c.bf16 %v4151_v41, %v4151_v41  ;;  %v4216_v2 = vpack.c.bf16 %v4152_v58, %v4152_v58  ;;  %v5145_v41 = vld [vmem:[#allocation6 + $0x4a] sm:$0x1]  ;;  %v5146_v58 = vld [vmem:[#allocation6 + $0x4c] sm:$0x1] }
 0x336   : > { %v4217_v6 = vpack.c.bf16 %v4153_v32, %v4153_v32  ;;  %v4218_v49 = vpack.c.bf16 %v4154_v61, %v4154_v61  ;;  %v4219_v27 = vpack.c.bf16 %v4155_v4, %v4155_v4  ;;  %v4220_v8 = vpack.c.bf16 %v4156_v1, %v4156_v1  ;;  %v5205_v32 = vld [vmem:[#allocation6 + $0x43] sm:$0x1]  ;;  %v5206_v61 = vld [vmem:[#allocation6 + $0x45] sm:$0x1] }
 0x337   : > { %v4221_v5 = vpack.c.bf16 %v4157_v12, %v4157_v12  ;;  %v4222_v37 = vpack.c.bf16 %v4158_v17, %v4158_v17  ;;  %v4223_v13 = vpack.c.bf16 %v4159_v33, %v4159_v33  ;;  %v4224_v3 = vpack.c.bf16 %v4160_v55, %v4160_v55  ;;  %v8980_v17 = vld [vmem:[#allocation13_spill] sm:$0xff]  ;;  %v5148_v55 = vld [vmem:[#allocation6 + $0x50] sm:$0x1] }
 0x338   : > { %v4345_v52 = vunpack.c.l.b16 %v4209_v34  ;;  %v4346_v26 = vunpack.c.l.b16 %v4210_v46  ;;  %v4347_v60 = vunpack.c.l.b16 %v4211_v43  ;;  %v4348_v42 = vunpack.c.l.b16 %v4212_v54  ;;  %v5149_v34 = vld [vmem:[#allocation6 + $0x52] sm:$0x1]  ;;  %v5150_v46 = vld [vmem:[#allocation6 + $0x54] sm:$0x1]  ;;  %v5207_v43 = vld [vmem:[#allocation6 + $0x47] sm:$0x1] }
 0x339   : > { %v4349_v35 = vunpack.c.l.b16 %v4213_v31  ;;  %v4350_v23 = vunpack.c.l.b16 %v4214_v25  ;;  %v8708_v63 = vunpack.c.l.b16 %v4215_v45  ;;  %v8710_v29 = vunpack.c.l.b16 %v4216_v2  ;;  %v5208_v54 = vld [vmem:[#allocation6 + $0x49] sm:$0x1]  ;;  %v8981_v45 = vld [vmem:[#allocation14_spill] sm:$0xff] }
 0x33a   : > { %v4353_v40 = vunpack.c.l.b16 %v4217_v6  ;;  %v4354_v21 = vunpack.c.l.b16 %v4218_v49  ;;  %v4355_v11 = vunpack.c.l.b16 %v4219_v27  ;;  %v4356_v62 = vunpack.c.l.b16 %v4220_v8  ;;  %v5151_v6 = vld [vmem:[#allocation6 + $0x56] sm:$0x1]  ;;  %v5152_v49 = vld [vmem:[#allocation6 + $0x58] sm:$0x1]  ;;  %v5153_v27 = vld [vmem:[#allocation6 + $0x5a] sm:$0x1] }
 0x33b   : > { %v4357_v47 = vunpack.c.l.b16 %v4221_v5  ;;  %v4358_v22 = vunpack.c.l.b16 %v4222_v37  ;;  %v8712_v28 = vunpack.c.l.b16 %v4223_v13  ;;  %v8714_v48 = vunpack.c.l.b16 %v4224_v3  ;;  %v5209_v8 = vld [vmem:[#allocation6 + $0x4b] sm:$0x1]  ;;  %v5210_v5 = vld [vmem:[#allocation6 + $0x4d] sm:$0x1] }
 0x33c   : > { %v4440_v56 = vrot.slane %v4346_v26, 7  ;;  %v4442_v44 = vrot.slane %v4347_v60, 6  ;;  %v4444_v15 = vrot.slane %v4348_v42, 5  ;;  %v4446_v24 = vrot.slane %v4349_v35, 4  ;;  %v5213_v26 = vld [vmem:[#allocation6 + $0x53] sm:$0x1] }
 0x33d   : > { %v4448_v53 = vrot.slane %v4350_v23, 3  ;;  %v4450_v38 = vrot.slane %v8708_v63, 2  ;;  %v4452_v30 = vrot.slane %v8710_v29, 1  ;;  %v4454_v0 = vrot.slane %v4354_v21, 7  ;;  %v5214_v60 = vld [vmem:[#allocation6 + $0x55] sm:$0x1] }
 0x33e   : > { %v4441_v7 = vsel %vm4378_vm4, %v4440_v56, %v4345_v52  ;;  %v4456_v59 = vrot.slane %v4355_v11, 6  ;;  %v4458_v19 = vrot.slane %v4356_v62, 5  ;;  %v4460_v39 = vrot.slane %v4357_v47, 4  ;;  %v5212_v52 = vld [vmem:[#allocation6 + $0x51] sm:$0x1] }
 0x33f   : > { %v4443_v36 = vsel %vm4381_vm5, %v4442_v44, %v4441_v7  ;;  %v4455_v9 = vsel %vm4378_vm4, %v4454_v0, %v4353_v40  ;;  %v4462_v51 = vrot.slane %v4358_v22, 3  ;;  %v4464_v10 = vrot.slane %v8712_v28, 2  ;;  %v5215_v29 = vld [vmem:[#allocation6 + $0x57] sm:$0x1]  ;;  %v5216_v40 = vld [vmem:[#allocation6 + $0x59] sm:$0x1] }
 0x340   : > { %v4445_v4 = vsel %vm4384_vm6, %v4444_v15, %v4443_v36  ;;  %v4457_v1 = vsel %vm4381_vm5, %v4456_v59, %v4455_v9  ;;  %v4466_v12 = vrot.slane %v8714_v48, 1  ;;  %v4877_v33 = vcombine.high %v8980_v17, %v8980_v17  ;;  %v5217_v21 = vld [vmem:[#allocation6 + $0x5b] sm:$0x1]  ;;  %v5154_v28 = vld [vmem:[#allocation6 + $0x5c] sm:$0x1] }
 0x341   : > { %v4447_v31 = vsel %vm4387_vm7, %v4446_v24, %v4445_v4  ;;  %v4459_v25 = vsel %vm4384_vm6, %v4458_v19, %v4457_v1  ;;  %v4911_v2 = vcombine.high %v8981_v45, %v8981_v45  ;;  %v5268_v37 = vadd.f32 %v5204_v18, %v5140_v20  ;;  %v5218_v48 = vld [vmem:[#allocation6 + $0x5d] sm:$0x1] }
 0x342   : > { %v4449_v13 = vsel %vm4390_vm8, %v4448_v53, %v4447_v31  ;;  %v4461_v3 = vsel %vm4387_vm7, %v4460_v39, %v4459_v25  ;;  %5083 = vst.msk [vmem:[#allocation6 + $0x4e] sm:$0x3] %vm700_vm2, %v4877_v33  ;;  %v5269_v42 = vadd.f32 %v5205_v32, %v5141_v50  ;;  %v5270_v35 = vadd.f32 %v5206_v61, %v5142_v16 }
 0x343   : > { %v4451_v23 = vsel %vm4393_vm9, %v4450_v38, %v4449_v13  ;;  %v4463_v63 = vsel %vm4390_vm8, %v4462_v51, %v4461_v3  ;;  %5091 = vst.msk [vmem:[#allocation6 + $0x5e] sm:$0x3] %vm700_vm2, %v4911_v2  ;;  %v5271_v11 = vadd.f32 %v5207_v43, %v5143_v14  ;;  %v5272_v62 = vadd.f32 %v5208_v54, %v5144_v57 }
 0x344   : > { %v4453_v47 = vsel %vm4396_vm10, %v4452_v30, %v4451_v23  ;;  %v4465_v22 = vsel %vm4393_vm9, %v4464_v10, %v4463_v63  ;;  %v5273_v56 = vadd.f32 %v5209_v8, %v5145_v41  ;;  %v5274_v44 = vadd.f32 %v5210_v5, %v5146_v58 }
 0x345   : > { %v4467_v15 = vsel %vm4396_vm10, %v4466_v12, %v4465_v22  ;;  %v5276_v24 = vadd.f32 %v5212_v52, %v5148_v55  ;;  %v5277_v53 = vadd.f32 %v5213_v26, %v5149_v34  ;;  %v5278_v38 = vadd.f32 %v5214_v60, %v5150_v46 }
 0x346   : > { %v4498_v0 = vpack.c.b16 %v4467_v15, %v4453_v47  ;;  %v5279_v20 = vadd.f32 %v5215_v29, %v5151_v6  ;;  %v5280_v50 = vadd.f32 %v5216_v40, %v5152_v49  ;;  %v5281_v16 = vadd.f32 %v5217_v21, %v5153_v27 }
 0x347   : > { %v5282_v7 = vadd.f32 %v5218_v48, %v5154_v28  ;;  %v5332_v59 = vmul.f32 0.25, %v5268_v37  ;;  %v5333_v19 = vmul.f32 0.25, %v5269_v42  ;;  %v5334_v39 = vmul.f32 0.25, %v5270_v35 }
 0x348   : > { %6597 = vmatprep.mubr.msk.bf16.mxu0 %vm452_vm1, %v4498_v0  ;;  %v5335_v30 = vmul.f32 0.25, %v5271_v11  ;;  %v5336_v14 = vmul.f32 0.25, %v5272_v62  ;;  %v5337_v57 = vmul.f32 0.25, %v5273_v56  ;;  %v5338_v18 = vmul.f32 0.25, %v5274_v44 }
 0x349   : > { %v5147_v36 = vld [vmem:[#allocation6 + $0x4e] sm:$0x1]  ;;  %v5211_v9 = vld [vmem:[#allocation6 + $0x4f] sm:$0x1]  ;;  %v5340_v51 = vmul.f32 0.25, %v5276_v24  ;;  %v5341_v10 = vmul.f32 0.25, %v5277_v53  ;;  %v5396_v41 = vpack.c.bf16 %v5332_v59, %v5332_v59  ;;  %v5397_v12 = vpack.c.bf16 %v5333_v19, %v5333_v19 }
 0x34a   : > { %v5155_v58 = vld [vmem:[#allocation6 + $0x5e] sm:$0x1]  ;;  %v5219_v32 = vld [vmem:[#allocation6 + $0x5f] sm:$0x1]  ;;  %v5275_v61 = vadd.f32 %v5211_v9, %v5147_v36  ;;  %v5342_v4 = vmul.f32 0.25, %v5278_v38  ;;  %v5343_v1 = vmul.f32 0.25, %v5279_v20  ;;  %v5398_v43 = vpack.c.bf16 %v5334_v39, %v5334_v39 }
 0x34b   : > { %v5283_v17 = vadd.f32 %v5219_v32, %v5155_v58  ;;  %v5344_v33 = vmul.f32 0.25, %v5280_v50  ;;  %v5345_v55 = vmul.f32 0.25, %v5281_v16  ;;  %v5346_v34 = vmul.f32 0.25, %v5282_v7  ;;  %v5156_v38 = vld [vmem:[#allocation6 + $0x60] sm:$0x1] }
 0x34c   : > { %v5339_v46 = vmul.f32 0.25, %v5275_v61  ;;  %v5399_v54 = vpack.c.bf16 %v5335_v30, %v5335_v30  ;;  %v5400_v31 = vpack.c.bf16 %v5336_v14, %v5336_v14  ;;  %v5401_v45 = vpack.c.bf16 %v5337_v57, %v5337_v57  ;;  %v5157_v7 = vld [vmem:[#allocation6 + $0x62] sm:$0x1]  ;;  %v5158_v59 = vld [vmem:[#allocation6 + $0x64] sm:$0x1] }
 0x34d   : > { %v5347_v25 = vmul.f32 0.25, %v5283_v17  ;;  %v5402_v2 = vpack.c.bf16 %v5338_v18, %v5338_v18  ;;  %v5405_v6 = vpack.c.bf16 %v5341_v10, %v5341_v10  ;;  %v5406_v27 = vpack.c.bf16 %v5342_v4, %v5342_v4  ;;  %v5220_v19 = vld [vmem:[#allocation6 + $0x61] sm:$0x1]  ;;  %v5159_v18 = vld [vmem:[#allocation6 + $0x66] sm:$0x1] }
 0x34e   : > { %v5403_v49 = vpack.c.bf16 %v5339_v46, %v5339_v46  ;;  %v5407_v8 = vpack.c.bf16 %v5343_v1, %v5343_v1  ;;  %v5408_v5 = vpack.c.bf16 %v5344_v33, %v5344_v33  ;;  %v5404_v37 = vpack.c.bf16 %v5340_v51, %v5340_v51  ;;  %v5160_v36 = vld [vmem:[#allocation6 + $0x68] sm:$0x1]  ;;  %v5221_v9 = vld [vmem:[#allocation6 + $0x63] sm:$0x1]  ;;  %v5161_v32 = vld [vmem:[#allocation6 + $0x6a] sm:$0x1] }
 0x34f   : > { %v5409_v13 = vpack.c.bf16 %v5345_v55, %v5345_v55  ;;  %v5410_v3 = vpack.c.bf16 %v5346_v34, %v5346_v34  ;;  %v5411_v52 = vpack.c.bf16 %v5347_v25, %v5347_v25  ;;  %v5533_v26 = vunpack.c.l.b16 %v5397_v12  ;;  %v5162_v61 = vld [vmem:[#allocation6 + $0x6c] sm:$0x1]  ;;  %v5163_v4 = vld [vmem:[#allocation6 + $0x6e] sm:$0x1]  ;;  %v5222_v1 = vld [vmem:[#allocation6 + $0x65] sm:$0x1] }
 0x350   : > { %v5534_v60 = vunpack.c.l.b16 %v5398_v43  ;;  %v5535_v42 = vunpack.c.l.b16 %v5399_v54  ;;  %v5536_v35 = vunpack.c.l.b16 %v5400_v31  ;;  %v5532_v23 = vunpack.c.l.b16 %v5396_v41  ;;  %v5223_v12 = vld [vmem:[#allocation6 + $0x67] sm:$0x1]  ;;  %v5165_v34 = vld [vmem:[#allocation6 + $0x72] sm:$0x1]  ;;  %v5166_v46 = vld [vmem:[#allocation6 + $0x74] sm:$0x1] }
 0x351   : > { %v5537_v63 = vunpack.c.l.b16 %v5401_v45  ;;  %v5538_v29 = vunpack.c.l.b16 %v5402_v2  ;;  %v8741_v40 = vunpack.c.l.b16 %v5403_v49  ;;  %v5541_v21 = vunpack.c.l.b16 %v5405_v6  ;;  %v5167_v43 = vld [vmem:[#allocation6 + $0x76] sm:$0x1]  ;;  %v5224_v54 = vld [vmem:[#allocation6 + $0x69] sm:$0x1]  ;;  %v5225_v31 = vld [vmem:[#allocation6 + $0x6b] sm:$0x1] }
 0x352   : > { %v5542_v11 = vunpack.c.l.b16 %v5406_v27  ;;  %v5543_v62 = vunpack.c.l.b16 %v5407_v8  ;;  %v5544_v47 = vunpack.c.l.b16 %v5408_v5  ;;  %v5540_v22 = vunpack.c.l.b16 %v5404_v37  ;;  %v5164_v6 = vld [vmem:[#allocation6 + $0x70] sm:$0x1]  ;;  %v5168_v49 = vld [vmem:[#allocation6 + $0x78] sm:$0x1]  ;;  %v5169_v27 = vld [vmem:[#allocation6 + $0x7a] sm:$0x1] }
 0x353   : > { %v5545_v28 = vunpack.c.l.b16 %v5409_v13  ;;  %v8743_v48 = vunpack.c.l.b16 %v5410_v3  ;;  %v5620_v56 = vrot.slane %v5533_v26, 7  ;;  %v8745_v44 = vunpack.c.l.b16 %v5411_v52  ;;  %v5226_v8 = vld [vmem:[#allocation6 + $0x6d] sm:$0x1]  ;;  %v5227_v5 = vld [vmem:[#allocation6 + $0x6f] sm:$0x1] }
 0x354   : > { %v5622_v15 = vrot.slane %v5534_v60, 6  ;;  %v5624_v24 = vrot.slane %v5535_v42, 5  ;;  %v5626_v53 = vrot.slane %v5536_v35, 4  ;;  %v5628_v20 = vrot.slane %v5537_v63, 3  ;;  %v5229_v52 = vld [vmem:[#allocation6 + $0x73] sm:$0x1] }
 0x355   : > { %v5621_v0 = vsel %vm4378_vm4, %v5620_v56, %v5532_v23  ;;  %v5630_v50 = vrot.slane %v5538_v29, 2  ;;  %v5634_v16 = vrot.slane %v5541_v21, 7  ;;  %v5636_v30 = vrot.slane %v5542_v11, 6  ;;  %v5230_v26 = vld [vmem:[#allocation6 + $0x75] sm:$0x1] }
 0x356   : > { %v5623_v39 = vsel %vm4381_vm5, %v5622_v15, %v5621_v0  ;;  %v5638_v14 = vrot.slane %v5543_v62, 5  ;;  %v5640_v57 = vrot.slane %v5544_v47, 4  ;;  %v5632_v10 = vrot.slane %v8741_v40, 1  ;;  %v5231_v60 = vld [vmem:[#allocation6 + $0x77] sm:$0x1] }
 0x357   : > { %v5625_v51 = vsel %vm4384_vm6, %v5624_v24, %v5623_v39  ;;  %v5635_v41 = vsel %vm4378_vm4, %v5634_v16, %v5540_v22  ;;  %v5642_v58 = vrot.slane %v5545_v28, 3  ;;  %v5644_v55 = vrot.slane %v8743_v48, 2  ;;  %v5228_v29 = vld [vmem:[#allocation6 + $0x71] sm:$0x1]  ;;  %v5232_v40 = vld [vmem:[#allocation6 + $0x79] sm:$0x1] }
 0x358   : > { %v5627_v17 = vsel %vm4387_vm7, %v5626_v53, %v5625_v51  ;;  %v5637_v33 = vsel %vm4381_vm5, %v5636_v30, %v5635_v41  ;;  %v5646_v2 = vrot.slane %v8745_v44, 1  ;;  %v5284_v37 = vadd.f32 %v5220_v19, %v5156_v38  ;;  %v5233_v21 = vld [vmem:[#allocation6 + $0x7b] sm:$0x1]  ;;  %v5170_v22 = vld [vmem:[#allocation6 + $0x7c] sm:$0x1] }
 0x359   : > { %v5629_v25 = vsel %vm4390_vm8, %v5628_v20, %v5627_v17  ;;  %v5639_v45 = vsel %vm4384_vm6, %v5638_v14, %v5637_v33  ;;  %v5285_v42 = vadd.f32 %v5221_v9, %v5157_v7  ;;  %v5286_v35 = vadd.f32 %v5222_v1, %v5158_v59  ;;  %v5234_v28 = vld [vmem:[#allocation6 + $0x7d] sm:$0x1]  ;;  %v5171_v24 = vld [vmem:[#allocation6 + $0x7e] sm:$0x1]  ;;  %v5235_v53 = vld [vmem:[#allocation6 + $0x7f] sm:$0x1] }
 0x35a   : > { %v5631_v13 = vsel %vm4393_vm9, %v5630_v50, %v5629_v25  ;;  %v5641_v3 = vsel %vm4387_vm7, %v5640_v57, %v5639_v45  ;;  %v5287_v11 = vadd.f32 %v5223_v12, %v5159_v18  ;;  %v5288_v62 = vadd.f32 %v5224_v54, %v5160_v36 }
 0x35b   : > { %v5633_v23 = vsel %vm4396_vm10, %v5632_v10, %v5631_v13  ;;  %v5643_v63 = vsel %vm4390_vm8, %v5642_v58, %v5641_v3  ;;  %v5289_v48 = vadd.f32 %v5225_v31, %v5161_v32  ;;  %v5290_v56 = vadd.f32 %v5226_v8, %v5162_v61 }
 0x35c   : > { %v5645_v47 = vsel %vm4393_vm9, %v5644_v55, %v5643_v63  ;;  %v5291_v44 = vadd.f32 %v5227_v5, %v5163_v4  ;;  %v5293_v38 = vadd.f32 %v5229_v52, %v5165_v34  ;;  %v5294_v0 = vadd.f32 %v5230_v26, %v5166_v46 }
 0x35d   : > { %v5647_v15 = vsel %vm4396_vm10, %v5646_v2, %v5645_v47  ;;  %v5295_v20 = vadd.f32 %v5231_v60, %v5167_v43  ;;  %v5292_v16 = vadd.f32 %v5228_v29, %v5164_v6  ;;  %v5296_v7 = vadd.f32 %v5232_v40, %v5168_v49 }
 0x35e   : > { %v5678_v50 = vpack.c.b16 %v5647_v15, %v5633_v23  ;;  %v5297_v59 = vadd.f32 %v5233_v21, %v5169_v27  ;;  %v5298_v19 = vadd.f32 %v5234_v28, %v5170_v22  ;;  %v5349_v39 = vmul.f32 0.25, %v5285_v42 }
 0x35f   : > { %v5350_v30 = vmul.f32 0.25, %v5286_v35  ;;  %v5351_v14 = vmul.f32 0.25, %v5287_v11  ;;  %v5299_v57 = vadd.f32 %v5235_v53, %v5171_v24  ;;  %v5348_v18 = vmul.f32 0.25, %v5284_v37 }
 0x360   : > { %6607 = vmatprep.mubr.msk.bf16.mxu1 %vm452_vm1, %v5678_v50  ;;  %v5352_v36 = vmul.f32 0.25, %v5288_v62  ;;  %v5353_v9 = vmul.f32 0.25, %v5289_v48  ;;  %v5354_v51 = vmul.f32 0.25, %v5290_v56  ;;  %v5357_v10 = vmul.f32 0.25, %v5293_v38  ;;  %v3969_v56 = vld [vmem:[#allocation4 + $0x60] sm:$0x1] }
 0x361   : > { %v5358_v41 = vmul.f32 0.25, %v5294_v0  ;;  %v5359_v58 = vmul.f32 0.25, %v5295_v20  ;;  %v5355_v32 = vmul.f32 0.25, %v5291_v44  ;;  %v5356_v61 = vmul.f32 0.25, %v5292_v16  ;;  %v4033_v44 = vld [vmem:[#allocation4 + $0x61] sm:$0x1] }
 0x362   : > { %v5360_v4 = vmul.f32 0.25, %v5296_v7  ;;  %v5361_v1 = vmul.f32 0.25, %v5297_v59  ;;  %v5362_v12 = vmul.f32 0.25, %v5298_v19  ;;  %v5413_v17 = vpack.c.bf16 %v5349_v39, %v5349_v39  ;;  %v3970_v0 = vld [vmem:[#allocation4 + $0x62] sm:$0x1] }
 0x363   : > { %v5414_v33 = vpack.c.bf16 %v5350_v30, %v5350_v30  ;;  %v5415_v55 = vpack.c.bf16 %v5351_v14, %v5351_v14  ;;  %v5363_v34 = vmul.f32 0.25, %v5299_v57  ;;  %v5412_v46 = vpack.c.bf16 %v5348_v18, %v5348_v18  ;;  %v3971_v20 = vld [vmem:[#allocation4 + $0x64] sm:$0x1]  ;;  %v4034_v50 = vld [vmem:[#allocation4 + $0x63] sm:$0x1] }
 0x364   : > { %v5416_v43 = vpack.c.bf16 %v5352_v36, %v5352_v36  ;;  %v5417_v54 = vpack.c.bf16 %v5353_v9, %v5353_v9  ;;  %v5418_v31 = vpack.c.bf16 %v5354_v51, %v5354_v51  ;;  %v5421_v25 = vpack.c.bf16 %v5357_v10, %v5357_v10  ;;  %v3972_v39 = vld [vmem:[#allocation4 + $0x66] sm:$0x1]  ;;  %v3973_v30 = vld [vmem:[#allocation4 + $0x68] sm:$0x1]  ;;  %v4035_v14 = vld [vmem:[#allocation4 + $0x65] sm:$0x1] }
 0x365   : > { %v5422_v45 = vpack.c.bf16 %v5358_v41, %v5358_v41  ;;  %v5423_v2 = vpack.c.bf16 %v5359_v58, %v5359_v58  ;;  %v5419_v6 = vpack.c.bf16 %v5355_v32, %v5355_v32  ;;  %v5420_v49 = vpack.c.bf16 %v5356_v61, %v5356_v61  ;;  %v3974_v51 = vld [vmem:[#allocation4 + $0x6a] sm:$0x1]  ;;  %v3975_v10 = vld [vmem:[#allocation4 + $0x6c] sm:$0x1]  ;;  %v4036_v41 = vld [vmem:[#allocation4 + $0x67] sm:$0x1] }
 0x366   : > { %v5424_v27 = vpack.c.bf16 %v5360_v4, %v5360_v4  ;;  %v5425_v8 = vpack.c.bf16 %v5361_v1, %v5361_v1  ;;  %v5426_v5 = vpack.c.bf16 %v5362_v12, %v5362_v12  ;;  %v5549_v37 = vunpack.c.l.b16 %v5413_v17  ;;  %v4037_v58 = vld [vmem:[#allocation4 + $0x69] sm:$0x1]  ;;  %v3976_v12 = vld [vmem:[#allocation4 + $0x6e] sm:$0x1]  ;;  %v3978_v17 = vld [vmem:[#allocation4 + $0x72] sm:$0x1] }
 0x367   : > { %v5550_v13 = vunpack.c.l.b16 %v5414_v33  ;;  %v5551_v3 = vunpack.c.l.b16 %v5415_v55  ;;  %v5427_v52 = vpack.c.bf16 %v5363_v34, %v5363_v34  ;;  %v5548_v26 = vunpack.c.l.b16 %v5412_v46  ;;  %v3979_v33 = vld [vmem:[#allocation4 + $0x74] sm:$0x1]  ;;  %v4038_v55 = vld [vmem:[#allocation4 + $0x6b] sm:$0x1]  ;;  %v4039_v34 = vld [vmem:[#allocation4 + $0x6d] sm:$0x1] }
 0x368   : > { %v5552_v60 = vunpack.c.l.b16 %v5416_v43  ;;  %v5553_v42 = vunpack.c.l.b16 %v5417_v54  ;;  %v5554_v35 = vunpack.c.l.b16 %v5418_v31  ;;  %v5557_v23 = vunpack.c.l.b16 %v5421_v25  ;;  %v3977_v31 = vld [vmem:[#allocation4 + $0x70] sm:$0x1]  ;;  %v3980_v25 = vld [vmem:[#allocation4 + $0x76] sm:$0x1] }
 0x369   : > { %v5558_v63 = vunpack.c.l.b16 %v5422_v45  ;;  %v5559_v29 = vunpack.c.l.b16 %v5423_v2  ;;  %v8765_v40 = vunpack.c.l.b16 %v5419_v6  ;;  %v5556_v21 = vunpack.c.l.b16 %v5420_v49  ;;  %v4040_v45 = vld [vmem:[#allocation4 + $0x6f] sm:$0x1]  ;;  %v4041_v2 = vld [vmem:[#allocation4 + $0x71] sm:$0x1] }
 0x36a   : > { %v5560_v11 = vunpack.c.l.b16 %v5424_v27  ;;  %v5561_v62 = vunpack.c.l.b16 %v5425_v8  ;;  %v5562_v47 = vunpack.c.l.b16 %v5426_v5  ;;  %v5648_v22 = vrot.slane %v5549_v37, 7  ;;  %v4042_v8 = vld [vmem:[#allocation4 + $0x73] sm:$0x1]  ;;  %v4043_v5 = vld [vmem:[#allocation4 + $0x75] sm:$0x1] }
 0x36b   : > { %v5650_v28 = vrot.slane %v5550_v13, 6  ;;  %v5652_v48 = vrot.slane %v5551_v3, 5  ;;  %v5563_v15 = vunpack.c.l.b16 %v5427_v52  ;;  %v5654_v24 = vrot.slane %v5552_v60, 4  ;;  %v4044_v37 = vld [vmem:[#allocation4 + $0x77] sm:$0x1] }
 0x36c   : > { %v5656_v53 = vrot.slane %v5553_v42, 3  ;;  %v5662_v38 = vrot.slane %v5557_v23, 7  ;;  %v5649_v16 = vsel %vm4378_vm4, %v5648_v22, %v5548_v26  ;;  %v5664_v7 = vrot.slane %v5558_v63, 6  ;;  %v3981_v60 = vld [vmem:[#allocation4 + $0x78] sm:$0x1] }
 0x36d   : > { %v5666_v59 = vrot.slane %v5559_v29, 5  ;;  %v5668_v19 = vrot.slane %v5560_v11, 4  ;;  %v5651_v57 = vsel %vm4381_vm5, %v5650_v28, %v5649_v16  ;;  %v5658_v18 = vrot.slane %v5554_v35, 2  ;;  %v3982_v42 = vld [vmem:[#allocation4 + $0x7a] sm:$0x1] }
 0x36e   : > { %v5663_v36 = vsel %vm4378_vm4, %v5662_v38, %v5556_v21  ;;  %v5670_v9 = vrot.slane %v5561_v62, 3  ;;  %v5653_v32 = vsel %vm4384_vm6, %v5652_v48, %v5651_v57  ;;  %v5660_v61 = vrot.slane %v8765_v40, 1  ;;  %v4045_v35 = vld [vmem:[#allocation4 + $0x79] sm:$0x1]  ;;  %v3983_v21 = vld [vmem:[#allocation4 + $0x7c] sm:$0x1] }
 0x36f   : > { %v5665_v4 = vsel %vm4381_vm5, %v5664_v7, %v5663_v36  ;;  %v5672_v1 = vrot.slane %v5562_v47, 2  ;;  %v5655_v46 = vsel %vm4387_vm7, %v5654_v24, %v5653_v32  ;;  %v5674_v54 = vrot.slane %v5563_v15, 1  ;;  %v4046_v11 = vld [vmem:[#allocation4 + $0x7b] sm:$0x1]  ;;  %v4047_v62 = vld [vmem:[#allocation4 + $0x7d] sm:$0x1] }
 0x370   : > { %v5667_v43 = vsel %vm4384_vm6, %v5666_v59, %v5665_v4  ;;  %v4097_v6 = vadd.f32 %v4033_v44, %v3969_v56  ;;  %v5657_v49 = vsel %vm4390_vm8, %v5656_v53, %v5655_v46  ;;  %v4098_v13 = vadd.f32 %v4034_v50, %v3970_v0  ;;  %v3984_v48 = vld [vmem:[#allocation4 + $0x7e] sm:$0x1]  ;;  %v4048_v56 = vld [vmem:[#allocation4 + $0x7f] sm:$0x1] }
 0x371   : > { %v5669_v27 = vsel %vm4387_vm7, %v5668_v19, %v5667_v43  ;;  %v4099_v3 = vadd.f32 %v4035_v14, %v3971_v20  ;;  %v5659_v52 = vsel %vm4393_vm9, %v5658_v18, %v5657_v49  ;;  %v4100_v23 = vadd.f32 %v4036_v41, %v3972_v39 }
 0x372   : > { %v5671_v26 = vsel %vm4390_vm8, %v5670_v9, %v5669_v27  ;;  %v4101_v63 = vadd.f32 %v4037_v58, %v3973_v30  ;;  %v5661_v29 = vsel %vm4396_vm10, %v5660_v61, %v5659_v52  ;;  %v4102_v47 = vadd.f32 %v4038_v55, %v3974_v51 }
 0x373   : > { %v5673_v40 = vsel %vm4393_vm9, %v5672_v1, %v5671_v26  ;;  %v4103_v22 = vadd.f32 %v4039_v34, %v3975_v10  ;;  %v4104_v44 = vadd.f32 %v4040_v45, %v3976_v12  ;;  %v4106_v15 = vadd.f32 %v4042_v8, %v3978_v17 }
 0x374   : > { %v5675_v28 = vsel %vm4396_vm10, %v5674_v54, %v5673_v40  ;;  %v4107_v24 = vadd.f32 %v4043_v5, %v3979_v33  ;;  %v4105_v38 = vadd.f32 %v4041_v2, %v3977_v31  ;;  %v4108_v0 = vadd.f32 %v4044_v37, %v3980_v25 }
 0x375   : > { %v5679_v53 = vpack.c.b16 %v5675_v28, %v5661_v29  ;;  %v4109_v20 = vadd.f32 %v4045_v35, %v3981_v60  ;;  %v4110_v50 = vadd.f32 %v4046_v11, %v3982_v42  ;;  %v4111_v16 = vadd.f32 %v4047_v62, %v3983_v21 }
 0x376   : > { %v4162_v7 = vmul.f32 0.25, %v4098_v13  ;;  %v4163_v59 = vmul.f32 0.25, %v4099_v3  ;;  %v4112_v19 = vadd.f32 %v4048_v56, %v3984_v48  ;;  %v4164_v39 = vmul.f32 0.25, %v4100_v23 }
 0x377   : > { %6608 = vmatmul.mubr.msk.bf16.gmra.mxu1 %vm452_vm1, %v5679_v53  ;;  %v4165_v30 = vmul.f32 0.25, %v4101_v63  ;;  %v4166_v14 = vmul.f32 0.25, %v4102_v47  ;;  %v4161_v57 = vmul.f32 0.25, %v4097_v6  ;;  %v4167_v18 = vmul.f32 0.25, %v4103_v22 }
 0x378   : > { %v4170_v36 = vmul.f32 0.25, %v4106_v15  ;;  %v4171_v9 = vmul.f32 0.25, %v4107_v24  ;;  %v4168_v51 = vmul.f32 0.25, %v4104_v44  ;;  %v4169_v10 = vmul.f32 0.25, %v4105_v38 }
 0x379   : > { %v4172_v41 = vmul.f32 0.25, %v4108_v0  ;;  %v4173_v58 = vmul.f32 0.25, %v4109_v20  ;;  %v4174_v32 = vmul.f32 0.25, %v4110_v50  ;;  %v4175_v61 = vmul.f32 0.25, %v4111_v16 }
 0x37a   : > { %v4226_v4 = vpack.c.bf16 %v4162_v7, %v4162_v7  ;;  %v4227_v1 = vpack.c.bf16 %v4163_v59, %v4163_v59  ;;  %v4176_v12 = vmul.f32 0.25, %v4112_v19  ;;  %v4228_v17 = vpack.c.bf16 %v4164_v39, %v4164_v39 }
 0x37b   : > { %v4229_v33 = vpack.c.bf16 %v4165_v30, %v4165_v30  ;;  %v4230_v55 = vpack.c.bf16 %v4166_v14, %v4166_v14  ;;  %v4225_v34 = vpack.c.bf16 %v4161_v57, %v4161_v57  ;;  %v4231_v46 = vpack.c.bf16 %v4167_v18, %v4167_v18 }
 0x37c   : > { %v4234_v43 = vpack.c.bf16 %v4170_v36, %v4170_v36  ;;  %v4235_v54 = vpack.c.bf16 %v4171_v9, %v4171_v9  ;;  %v4232_v31 = vpack.c.bf16 %v4168_v51, %v4168_v51  ;;  %v4233_v25 = vpack.c.bf16 %v4169_v10, %v4169_v10 }
 0x37d   : > { %v4236_v45 = vpack.c.bf16 %v4172_v41, %v4172_v41  ;;  %v4237_v2 = vpack.c.bf16 %v4173_v58, %v4173_v58  ;;  %v4238_v6 = vpack.c.bf16 %v4174_v32, %v4174_v32  ;;  %v4239_v49 = vpack.c.bf16 %v4175_v61, %v4175_v61 }
 0x37e   : > { %v4362_v27 = vunpack.c.l.b16 %v4226_v4  ;;  %v4363_v8 = vunpack.c.l.b16 %v4227_v1  ;;  %v4240_v5 = vpack.c.bf16 %v4176_v12, %v4176_v12  ;;  %v4364_v37 = vunpack.c.l.b16 %v4228_v17  ;;  %v6054_v4 = vld [vmem:[%s8882_s6] ss:$0 sm:$0xff] }
 0x37f   : > { %v4365_v13 = vunpack.c.l.b16 %v4229_v33  ;;  %v4366_v3 = vunpack.c.l.b16 %v4230_v55  ;;  %v4361_v52 = vunpack.c.l.b16 %v4225_v34  ;;  %v4367_v26 = vunpack.c.l.b16 %v4231_v46  ;;  %v6059_v1 = vld [vmem:[%s8884_s8] ss:$0 sm:$0xff] }
 0x380   : > { %v4370_v60 = vunpack.c.l.b16 %v4234_v43  ;;  %v4371_v42 = vunpack.c.l.b16 %v4235_v54  ;;  %v4368_v35 = vunpack.c.l.b16 %v4232_v31  ;;  %v4369_v23 = vunpack.c.l.b16 %v4233_v25 }
 0x381   : > { %v4372_v63 = vunpack.c.l.b16 %v4236_v45  ;;  %v4373_v29 = vunpack.c.l.b16 %v4237_v2  ;;  %v4374_v40 = vunpack.c.l.b16 %v4238_v6  ;;  %v4468_v21 = vrot.slane %v4362_v27, 7 }
 0x382   : > { %v4470_v11 = vrot.slane %v4363_v8, 6  ;;  %v4472_v62 = vrot.slane %v4364_v37, 5  ;;  %v4375_v47 = vunpack.c.l.b16 %v4239_v49  ;;  %v4376_v22 = vunpack.c.l.b16 %v4240_v5 }
 0x383   : > { %v4474_v28 = vrot.slane %v4365_v13, 4  ;;  %v4476_v48 = vrot.slane %v4366_v3, 3  ;;  %v4469_v56 = vsel %vm4378_vm4, %v4468_v21, %v4361_v52  ;;  %v4482_v44 = vrot.slane %v4370_v60, 7 }
 0x384   : > { %v4484_v15 = vrot.slane %v4371_v42, 6  ;;  %v4486_v24 = vrot.slane %v4372_v63, 5  ;;  %v4471_v53 = vsel %vm4381_vm5, %v4470_v11, %v4469_v56  ;;  %v4478_v38 = vrot.slane %v4367_v26, 2 }
 0x385   : > { %v4488_v0 = vrot.slane %v4373_v29, 4  ;;  %v4473_v20 = vsel %vm4384_vm6, %v4472_v62, %v4471_v53  ;;  %v4483_v50 = vsel %vm4378_vm4, %v4482_v44, %v4369_v23  ;;  %v4490_v16 = vrot.slane %v4374_v40, 3 }
 0x386   : > { %v4475_v7 = vsel %vm4387_vm7, %v4474_v28, %v4473_v20  ;;  %v4485_v59 = vsel %vm4381_vm5, %v4484_v15, %v4483_v50  ;;  %v4492_v19 = vrot.slane %v4375_v47, 2  ;;  %v4480_v30 = vrot.slane %v4368_v35, 1 }
 0x387   : > { %v4477_v39 = vsel %vm4390_vm8, %v4476_v48, %v4475_v7  ;;  %v4487_v14 = vsel %vm4384_vm6, %v4486_v24, %v4485_v59  ;;  %v4494_v57 = vrot.slane %v4376_v22, 1 }
 0x388   : > { %v4479_v18 = vsel %vm4393_vm9, %v4478_v38, %v4477_v39  ;;  %v4489_v36 = vsel %vm4387_vm7, %v4488_v0, %v4487_v14 }
 0x389   : > { %v4491_v9 = vsel %vm4390_vm8, %v4490_v16, %v4489_v36  ;;  %v4481_v10 = vsel %vm4396_vm10, %v4480_v30, %v4479_v18 }
 0x38a   : > { %v4493_v51 = vsel %vm4393_vm9, %v4492_v19, %v4491_v9 }
 0x38b   : > { %v4495_v41 = vsel %vm4396_vm10, %v4494_v57, %v4493_v51 }
 0x38c   : > { %v4499_v58 = vpack.c.b16 %v4495_v41, %v4481_v10 }
 0x38e   : > { %6598 = vmatmul.mubr.msk.bf16.gmra.mxu0 %vm452_vm1, %v4499_v58 }
 0x3eb   : > { %v6595_v32 = vpop.f32.mrf.mxu0 }
 0x3ec   : > { %v4558_v17 = vadd.f32 %v6595_v32, %v6054_v4 }
 0x3ed   : > { %v4549_v61 = vpop.f32.mrf.mxu0 }
 0x3ee   : > { %v4550_v34 = vadd.f32 %v6054_v4, %v4549_v61 }
 0x3ef   : > { %v6596_v12 = vpop.f32.mrf.mxu0 }
 0x3f0   : > { %v4561_v25 = vadd.f32 %v6596_v12, %v6054_v4 }
 0x3f1   : > { %v4552_v43 = vpop.f32.mrf.mxu0 }
 0x3f2   : > { %v6605_v33 = vpop.f32.mrf.mxu1  ;;  %v4553_v27 = vadd.f32 %v6054_v4, %v4552_v43 }
 0x3f3   : > { %v5738_v55 = vadd.f32 %v6605_v33, %v6059_v1 }
 0x3f4   : > { %v5729_v46 = vpop.f32.mrf.mxu1 }
 0x3f5   : > { %v5762_v54 = vadd.f32 %v5738_v55, %v4558_v17  ;;  %v5730_v31 = vadd.f32 %v6059_v1, %v5729_v46 }
 0x3f6   : > { %v6606_v45 = vpop.f32.mrf.mxu1 }
 0x3f7   : > { %v5770_v2 = vmax.f32 %v5762_v54, 0.0  ;;  %v5760_v6 = vadd.f32 %v5730_v31, %v4550_v34  ;;  %v5741_v49 = vadd.f32 %v6606_v45, %v6059_v1 }
 0x3f8   : > { %v5732_v8 = vpop.f32.mrf.mxu1 }
 0x3f9   : > { %5779 = vst.msk [vmem:[%s8807_s26 + $0x10] sm:$0xff] %vm5776_vm11, %v5770_v2  ;;  %v5768_v5 = vmax.f32 %v5760_v6, 0.0  ;;  %v5763_v37 = vadd.f32 %v5741_v49, %v4561_v25  ;;  %v5733_v13 = vadd.f32 %v6059_v1, %v5732_v8 }
 0x3fb   : > { %5777 = vst.msk [vmem:[%s8807_s26] sm:$0xff] %vm5776_vm11, %v5768_v5  ;;  %v5771_v3 = vmax.f32 %v5763_v37, 0.0  ;;  %v5761_v52 = vadd.f32 %v5733_v13, %v4553_v27 }
 0x3fd   : > { %5780 = vst.msk [vmem:[%s8807_s26 + $0x18] sm:$0xff] %vm5776_vm11, %v5771_v3  ;;  %v5769_v26 = vmax.f32 %v5761_v52, 0.0 }
 0x3ff   : > { %5778 = vst.msk [vmem:[%s8807_s26 + $0x8] sm:$0xff] %vm5776_vm11, %v5769_v26 }
 0x437   : > { %v6609_v60 = vpop.f32.mrf.mxu1 }
 0x438   : > { %v5754_v35 = vadd.f32 %v6609_v60, %v6059_v1 }
 0x439   : > { %v5745_v42 = vpop.f32.mrf.mxu1 }
 0x43a   : > { %v5746_v21 = vadd.f32 %v6059_v1, %v5745_v42 }
 0x43b   : > { %v6610_v23 = vpop.f32.mrf.mxu1 }
 0x43c   : > { %v5757_v28 = vadd.f32 %v6610_v23, %v6059_v1 }
 0x43d   : > { %v5748_v47 = vpop.f32.mrf.mxu1 }
 0x43e   : > { %v5749_v24 = vadd.f32 %v6059_v1, %v5748_v47 }
 0x44e   : > { %v6599_v63 = vpop.f32.mrf.mxu0 }
 0x44f   : > { %v4574_v29 = vadd.f32 %v6599_v63, %v6054_v4 }
 0x450   : > { %v4565_v40 = vpop.f32.mrf.mxu0 }
 0x451   : > { %v5766_v11 = vadd.f32 %v5754_v35, %v4574_v29  ;;  %v4566_v62 = vadd.f32 %v6054_v4, %v4565_v40 }
 0x452   : > { %v6600_v22 = vpop.f32.mrf.mxu0 }
 0x453   : > { %v5774_v48 = vmax.f32 %v5766_v11, 0.0  ;;  %v5764_v56 = vadd.f32 %v5746_v21, %v4566_v62  ;;  %v4577_v44 = vadd.f32 %v6600_v22, %v6054_v4 }
 0x454   : > { %v4568_v15 = vpop.f32.mrf.mxu0 }
 0x455   : > { %5783 = vst.msk [vmem:[%s8807_s26 + $0x30] sm:$0xff] %vm5776_vm11, %v5774_v48  ;;  %v5772_v53 = vmax.f32 %v5764_v56, 0.0  ;;  %v5767_v38 = vadd.f32 %v5757_v28, %v4577_v44  ;;  %v4569_v0 = vadd.f32 %v6054_v4, %v4568_v15 }
 0x457   : > { %5781 = vst.msk [vmem:[%s8807_s26 + $0x20] sm:$0xff] %vm5776_vm11, %v5772_v53  ;;  %v5775_v20 = vmax.f32 %v5767_v38, 0.0  ;;  %v5765_v50 = vadd.f32 %v5749_v24, %v4569_v0 }
 0x459   : > { %5784 = vst.msk [vmem:[%s8807_s26 + $0x38] sm:$0xff] %vm5776_vm11, %v5775_v20  ;;  %v5773_v16 = vmax.f32 %v5765_v50, 0.0 }
 0x45b   : > { %5782 = vst.msk [vmem:[%s8807_s26 + $0x28] sm:$0xff] %vm5776_vm11, %v5773_v16 }
 0x45c   : > { %6712 = shalt.err (!%p6709_p3)
}
 0x45d   : > { %s6713_s22 = scalar_lea.hbm %s8826_s16, 1024  ;;  %s6717_s27 = scalar_lea.hbm %s8885_s9, 2048 }
 0x45e   : > { %p6714_p4 = scmp.ne.s32.totalorder %s8826_s16, %s6713_s22  ;;  %p6718_p9 = scmp.lt.s32.totalorder %s8826_s16, %s8885_s9 }
 0x45f   : > { %p6719_p10 = scmp.lt.s32.totalorder %s6717_s27, %s6713_s22 }
 0x460   : > { %p6715_p7 = pnand %p6714_p4, %p6854_p5 }
 0x461   : > { %p6720_p11 = por %p6719_p10, %p6718_p9 }
 0x462   : > { %p6716_p8 = pneg %p6715_p7 }
 0x464   : > { %p6721_p12 = pnand %p6720_p11, %p6716_p8 }
 0x466   : > { %6724 = shalt.err (!%p6721_p12)
}
 0x467   : > { %s6764_s17 = smov 128   ;;  %s6765_s21 = smov 8  }
 0x468   : > { %6623 = dma.vmem_to_hbm [thread:$0]  (%p6854_p5), %s8828_s28, 1024, %s8826_s16, %s8836_s13, %s6764_s17, %s6764_s17, %s6765_s21  }
 0x469 PF: > { %p6629_p13 = scmp.ge.s32.totalorder %s6759_s12, 2  ;;  %s5814_s23 = sand.u32 1, %s6747_s30  }
 0x46a   : > { %s5815_s24 = scalar_lea.sflag [#allocation8], %s5814_s23 }
 0x46b   : > { %p6626_p0 = pnand %p6629_p13, %p6858_p6 }
 0x46d   : > { %p6627_p1 = pneg %p6626_p0 }
 0x46f   : > { %6742 = dma.done.wait (%p6627_p1), %s5815_s24, 1024  }
 0x470   : > { %6744 = vsyncadd (%p6627_p1), %s5815_s24, 4294966272  ;;  %p19_p2 = scmp.ge.s32.totalorder %s6841_s15, 4   ;;  %s8982_s30 = smov %s6751_s10 }
 0x471   : > { %s8983_s10 = smov %s6755_s11  ;;  %s8984_s11 = smov %s6852_s18 }
 0x472   : > { %s8985_s12 = smov %s6841_s15  ;;  %21 = sbr.rel (!%p19_p2) target bundleno = 3 (0x3), region = 102 }
 0x477   :  { %5820 = vsyncpa [#allocation8], 1 }
 0x478   :  { %5822 = vsyncpa [#allocation8 + $0x1], 1 }

</bundles_post_ra>
